<compile_context>
chip_gen: v5e
topology: v5e:2x2
jax: 0.10.0
libtpu: 0.0.40
codegen_flags: <defaults>
</compile_context>

<pallas_src>
import jax
import jax.numpy as jnp
import numpy as np
from jax.experimental import pallas as pl
from jax.experimental.pallas import tpu as pltpu

HIDDEN = 512
LANE = 128


def _round_up(x, m):
    return (x + m - 1) // m * m


def _vae_kernel(x_ref, eps_ref, mask_ref,
                w1e_ref, b1e_ref, wms_ref, bms_ref,
                w1d_ref, b1d_ref, w2d_ref, b2d_ref, w3d_ref, b3d_ref,
                out_ref, kl_ref):
    f32 = jnp.float32
    bf16 = jnp.bfloat16

    x = x_ref[...].astype(bf16)                                    # (TB, D)

    # ---------------- encoder ----------------
    h = jnp.dot(x, w1e_ref[...], preferred_element_type=f32) + b1e_ref[...]
    h = jnp.maximum(h, 0.0)

    # fused (mu || logits) projection, lane-padded to 2*LP (LP = latent rounded up to 128)
    ms = jnp.dot(h.astype(bf16), wms_ref[...], preferred_element_type=f32) + bms_ref[...]
    lp = ms.shape[-1] // 2
    mu = ms[:, :lp]                                                # (TB, LP)
    logits = ms[:, lp:]                                            # (TB, LP)
    sigma = jnp.exp(logits)
    z = mu + sigma * eps_ref[...]                                  # padded lanes stay exactly 0

    # KL: 0.5 * sum(sigma^2 + mu^2 - log(sigma^2) - 1), with log(sigma^2) = 2*logits.
    # Padded latent lanes (mu = logits = 0) contribute exactly 0; padded batch rows masked.
    kl_elem = sigma * sigma + mu * mu - 2.0 * logits - 1.0
    kl_ref[0, 0] = 0.5 * jnp.sum(mask_ref[...] * kl_elem)

    # ---------------- decoder ----------------
    # F.normalize(z, p=2, dim=-1) == z * rsqrt(max(sum(z^2), 1e-24))
    sumsq = jnp.sum(z * z, axis=-1, keepdims=True)
    zn = z * jax.lax.rsqrt(jnp.maximum(sumsq, 1e-24))

    h1 = jnp.dot(zn.astype(bf16), w1d_ref[...], preferred_element_type=f32) + b1d_ref[...]
    h1 = jnp.maximum(h1, 0.0)
    h2 = jnp.dot(h1.astype(bf16), w2d_ref[...], preferred_element_type=f32) + b2d_ref[...]
    h2 = jnp.maximum(h2, 0.0)
    out_ref[...] = (
        jnp.dot(h2.astype(bf16), w3d_ref[...], preferred_element_type=f32) + b3d_ref[...]
    ).astype(out_ref.dtype)


def _prepare_kernel_params(p, latent_dim):
    """Fuse mu/logits weights into a lane-padded block and cast weights to bf16."""
    H = HIDDEN
    LP = _round_up(latent_dim, LANE)
    bf16 = jnp.bfloat16

    wms = jnp.zeros((H, 2 * LP), jnp.float32)
    wms = wms.at[:, :latent_dim].set(p["w2e"])
    wms = wms.at[:, LP:LP + latent_dim].set(p["w3e"])
    bms = jnp.zeros((1, 2 * LP), jnp.float32)
    bms = bms.at[:, :latent_dim].set(p["b2e"])
    bms = bms.at[:, LP:LP + latent_dim].set(p["b3e"])

    w1d = jnp.zeros((LP, H), jnp.float32).at[:latent_dim].set(p["w1d"])

    return {
        "w1e": p["w1e"].astype(bf16), "b1e": p["b1e"],
        "wms": wms.astype(bf16),      "bms": bms,
        "w1d": w1d.astype(bf16),      "b1d": p["b1d"],
        "w2d": p["w2d"].astype(bf16), "b2d": p["b2d"],
        "w3d": p["w3d"].astype(bf16), "b3d": p["b3d"],
    }


def vae_forward_pallas(x_flat, eps, params, latent_dim):
    """x_flat: (B, input_dim) f32, eps: (B, latent_dim) f32. Returns (out, kl)."""
    B, D = x_flat.shape
    H = HIDDEN
    LP = _round_up(latent_dim, LANE)

    TB = min(128, _round_up(max(B, 1), 8))      # batch tile (>=8 sublanes, <=128 MXU rows)
    B_pad = _round_up(B, TB)
    G = B_pad // TB

    # Pad batch rows with zeros; pad latent lanes of eps up to LP; row mask kills the
    # KL contribution of padded rows (padded output rows are sliced off below).
    x_p = jnp.zeros((B_pad, D), jnp.float32).at[:B].set(x_flat)
    eps_p = jnp.zeros((B_pad, LP), jnp.float32).at[:B, :latent_dim].set(eps)
    mask = jnp.zeros((B_pad, 1), jnp.float32).at[:B].set(1.0)

    kp = _prepare_kernel_params(params, latent_dim)

    inputs = (x_p, eps_p, mask,
              kp["w1e"], kp["b1e"], kp["wms"], kp["bms"],
              kp["w1d"], kp["b1d"], kp["w2d"], kp["b2d"], kp["w3d"], kp["b3d"])

    def resident(shape):
        # weights: same block for every grid step -> fetched once, stay in VMEM
        return pl.BlockSpec(shape, lambda i: (0, 0))

    in_specs = [
        pl.BlockSpec((TB, D), lambda i: (i, 0)),      # x (streamed over batch)
        pl.BlockSpec((TB, LP), lambda i: (i, 0)),     # eps
        pl.BlockSpec((TB, 1), lambda i: (i, 0)),      # row mask
        resident((D, H)), resident((1, H)),           # w1e, b1e
        resident((H, 2 * LP)), resident((1, 2 * LP)), # fused mu/logits weight, bias
        resident((LP, H)), resident((1, H)),          # w1d, b1d
        resident((H, H)), resident((1, H)),           # w2d, b2d
        resident((H, D)), resident((1, D)),           # w3d, b3d
    ]

    out, kl_parts = pl.pallas_call(
        _vae_kernel,
        grid=(G,),
        out_shape=(
            jax.ShapeDtypeStruct((B_pad, D), jnp.float32),
            jax.ShapeDtypeStruct((G, 1), jnp.float32),     # per-tile KL partial (SMEM)
        ),
        in_specs=in_specs,
        out_specs=(
            pl.BlockSpec((TB, D), lambda i: (i, 0)),
            pl.BlockSpec((1, 1), lambda i: (i, 0),
                         memory_space=pltpu.MemorySpace.SMEM),
        ),
        compiler_params=pltpu.CompilerParams(
            dimension_semantics=("parallel",),
            vmem_limit_bytes=32 * 1024 * 1024,
        ),
    )(*inputs)

    return out[:B], jnp.sum(kl_parts)


def init_params(key, input_dim, latent_dim):
    """Deterministic init mimicking torch.nn.Linear default (U[-1/sqrt(fan_in), +])."""
    def linear(k, fan_in, fan_out):
        kw, kb = jax.random.split(k)
        bound = 1.0 / np.sqrt(fan_in)
        w = jax.random.uniform(kw, (fan_in, fan_out), jnp.float32, -bound, bound)
        b = jax.random.uniform(kb, (1, fan_out), jnp.float32, -bound, bound)
        return w, b

    keys = jax.random.split(key, 6)
    p = {}
    p["w1e"], p["b1e"] = linear(keys[0], input_dim, HIDDEN)   # encoder.linear1
    p["w2e"], p["b2e"] = linear(keys[1], HIDDEN, latent_dim)  # encoder.linear2 (mu)
    p["w3e"], p["b3e"] = linear(keys[2], HIDDEN, latent_dim)  # encoder.linear3 (exp'd)
    p["w1d"], p["b1d"] = linear(keys[3], latent_dim, HIDDEN)  # decoder.linear1
    p["w2d"], p["b2d"] = linear(keys[4], HIDDEN, HIDDEN)      # decoder.linear2
    p["w3d"], p["b3d"] = linear(keys[5], HIDDEN, input_dim)   # decoder.linear3
    return p


def vae_forward_ref(x_flat, eps, p):
    """Pure-JAX reference mirroring the kernel's bf16-weight / f32-accumulate math."""
    bf16 = jnp.bfloat16

    def mm(a, w):
        return jnp.dot(a.astype(bf16), w.astype(bf16), preferred_element_type=jnp.float32)

    h = jnp.maximum(mm(x_flat, p["w1e"]) + p["b1e"], 0.0)
    mu = mm(h, p["w2e"]) + p["b2e"]
    logits = mm(h, p["w3e"]) + p["b3e"]
    sigma = jnp.exp(logits)
    z = mu + sigma * eps
    kl = 0.5 * jnp.sum(sigma * sigma + mu * mu - 2.0 * logits - 1.0)
    sumsq = jnp.sum(z * z, axis=-1, keepdims=True)
    zn = z * jax.lax.rsqrt(jnp.maximum(sumsq, 1e-24))
    h1 = jnp.maximum(mm(zn, p["w1d"]) + p["b1d"], 0.0)
    h2 = jnp.maximum(mm(h1, p["w2d"]) + p["b2d"], 0.0)
    return mm(h2, p["w3d"]) + p["b3d"], kl


if __name__ == "__main__":
    # x mirrors an NCHW image batch that the encoder flattens: (2, 4, 16, 16) -> input_dim=1024
    B, C, Hh, Ww = 2, 4, 16, 16
    input_dim = C * Hh * Ww
    latent_dim = 32

    key = jax.random.PRNGKey(0)
    kx, keps, kparam = jax.random.split(key, 3)

    x = jax.random.normal(kx, (B, C, Hh, Ww), jnp.float32)
    x_flat = x.reshape(B, -1)                                    # torch.flatten(x, start_dim=1)
    eps = jax.random.normal(keps, (B, latent_dim), jnp.float32)  # torch.randn_like(sigma)

    params = init_params(kparam, input_dim, latent_dim)

    out, kl = vae_forward_pallas(x_flat, eps, params, latent_dim)
    jax.block_until_ready(out)
    jax.block_until_ready(kl)

    out_ref, kl_ref = vae_forward_ref(x_flat, eps, params)
    assert np.allclose(np.asarray(out), np.asarray(out_ref), rtol=2e-3, atol=2e-3)
    assert np.allclose(np.asarray(kl), np.asarray(kl_ref), rtol=2e-3, atol=1e-2)

    print("KERNEL_OK")
</pallas_src>

<mosaic_0001>
module attributes {stable_mosaic.version = 11 : i64} {
  func.func @_vae_kernel(%arg0: i32, %arg1: memref<8x1024xf32, #tpu.memory_space<vmem>>, %arg2: memref<8x128xf32, #tpu.memory_space<vmem>>, %arg3: memref<8x1xf32, #tpu.memory_space<vmem>>, %arg4: memref<1024x512xbf16, #tpu.memory_space<vmem>>, %arg5: memref<1x512xf32, #tpu.memory_space<vmem>>, %arg6: memref<512x256xbf16, #tpu.memory_space<vmem>>, %arg7: memref<1x256xf32, #tpu.memory_space<vmem>>, %arg8: memref<128x512xbf16, #tpu.memory_space<vmem>>, %arg9: memref<1x512xf32, #tpu.memory_space<vmem>>, %arg10: memref<512x512xbf16, #tpu.memory_space<vmem>>, %arg11: memref<1x512xf32, #tpu.memory_space<vmem>>, %arg12: memref<512x1024xbf16, #tpu.memory_space<vmem>>, %arg13: memref<1x1024xf32, #tpu.memory_space<vmem>>, %arg14: memref<8x1024xf32, #tpu.memory_space<vmem>>, %arg15: memref<1x1xf32, #tpu.memory_space<smem>>) attributes {dimension_semantics = [#tpu.dimension_semantics<parallel>], iteration_bounds = array<i64: 1>, scalar_prefetch = 0 : i64, scratch_operands = 0 : i64, tpu.core_type = #tpu.core_type<tc>, window_params = [{transform_indices = @transform_0, window_bounds = array<i64: 8, 1024>}, {transform_indices = @transform_1, window_bounds = array<i64: 8, 128>}, {transform_indices = @transform_2, window_bounds = array<i64: 8, 1>}, {pipeline_mode = #tpu.pipeline_mode<synchronous>, transform_indices = @transform_3, window_bounds = array<i64: 1024, 512>}, {pipeline_mode = #tpu.pipeline_mode<synchronous>, transform_indices = @transform_4, window_bounds = array<i64: 1, 512>}, {pipeline_mode = #tpu.pipeline_mode<synchronous>, transform_indices = @transform_5, window_bounds = array<i64: 512, 256>}, {pipeline_mode = #tpu.pipeline_mode<synchronous>, transform_indices = @transform_6, window_bounds = array<i64: 1, 256>}, {pipeline_mode = #tpu.pipeline_mode<synchronous>, transform_indices = @transform_7, window_bounds = array<i64: 128, 512>}, {pipeline_mode = #tpu.pipeline_mode<synchronous>, transform_indices = @transform_8, window_bounds = array<i64: 1, 512>}, {pipeline_mode = #tpu.pipeline_mode<synchronous>, transform_indices = @transform_9, window_bounds = array<i64: 512, 512>}, {pipeline_mode = #tpu.pipeline_mode<synchronous>, transform_indices = @transform_10, window_bounds = array<i64: 1, 512>}, {pipeline_mode = #tpu.pipeline_mode<synchronous>, transform_indices = @transform_11, window_bounds = array<i64: 512, 1024>}, {pipeline_mode = #tpu.pipeline_mode<synchronous>, transform_indices = @transform_12, window_bounds = array<i64: 1, 1024>}, {transform_indices = @transform_13, window_bounds = array<i64: 8, 1024>}, {transform_indices = @transform_14, window_bounds = array<i64: 1, 1>}]} {
    %c0 = arith.constant 0 : index
    %c0_0 = arith.constant 0 : index
    %0 = vector.load %arg1[%c0, %c0_0] : memref<8x1024xf32, #tpu.memory_space<vmem>>, vector<8x1024xf32>
    %1 = arith.truncf %0 : vector<8x1024xf32> to vector<8x1024xbf16>
    %c0_1 = arith.constant 0 : index
    %c0_2 = arith.constant 0 : index
    %2 = vector.load %arg4[%c0_1, %c0_2] : memref<1024x512xbf16, #tpu.memory_space<vmem>>, vector<1024x512xbf16>
    %cst = arith.constant dense<0.000000e+00> : vector<8x512xf32>
    %3 = tpu.matmul %1, %2, %cst {dimension_numbers = #tpu.dot_dimension_numbers<[1], [0], [0], [1], [0, 0, 1, 1], [], []>} : vector<8x1024xbf16>, vector<1024x512xbf16>, vector<8x512xf32> -> vector<8x512xf32>
    %c0_3 = arith.constant 0 : index
    %c0_4 = arith.constant 0 : index
    %4 = vector.load %arg5[%c0_3, %c0_4] : memref<1x512xf32, #tpu.memory_space<vmem>>, vector<1x512xf32>
    %5 = vector.broadcast %4 : vector<1x512xf32> to vector<8x512xf32>
    %6 = arith.addf %3, %5 : vector<8x512xf32>
    %cst_5 = arith.constant 0.000000e+00 : f32
    %7 = vector.broadcast %cst_5 : f32 to vector<8x512xf32>
    %8 = arith.maximumf %6, %7 : vector<8x512xf32>
    %9 = arith.truncf %8 : vector<8x512xf32> to vector<8x512xbf16>
    %c0_6 = arith.constant 0 : index
    %c0_7 = arith.constant 0 : index
    %10 = vector.load %arg6[%c0_6, %c0_7] : memref<512x256xbf16, #tpu.memory_space<vmem>>, vector<512x256xbf16>
    %cst_8 = arith.constant dense<0.000000e+00> : vector<8x256xf32>
    %11 = tpu.matmul %9, %10, %cst_8 {dimension_numbers = #tpu.dot_dimension_numbers<[1], [0], [0], [1], [0, 0, 1, 1], [], []>} : vector<8x512xbf16>, vector<512x256xbf16>, vector<8x256xf32> -> vector<8x256xf32>
    %c0_9 = arith.constant 0 : index
    %c0_10 = arith.constant 0 : index
    %12 = vector.load %arg7[%c0_9, %c0_10] : memref<1x256xf32, #tpu.memory_space<vmem>>, vector<1x256xf32>
    %13 = vector.broadcast %12 : vector<1x256xf32> to vector<8x256xf32>
    %14 = arith.addf %11, %13 : vector<8x256xf32>
    %15 = vector.extract_strided_slice %14 {offsets = [0, 0], sizes = [8, 128], strides = [1, 1]} : vector<8x256xf32> to vector<8x128xf32>
    %16 = vector.extract_strided_slice %14 {offsets = [0, 128], sizes = [8, 128], strides = [1, 1]} : vector<8x256xf32> to vector<8x128xf32>
    %17 = math.exp %16 : vector<8x128xf32>
    %c0_11 = arith.constant 0 : index
    %c0_12 = arith.constant 0 : index
    %18 = vector.load %arg2[%c0_11, %c0_12] : memref<8x128xf32, #tpu.memory_space<vmem>>, vector<8x128xf32>
    %19 = arith.mulf %17, %18 : vector<8x128xf32>
    %20 = arith.addf %15, %19 : vector<8x128xf32>
    %21 = arith.mulf %17, %17 : vector<8x128xf32>
    %22 = arith.mulf %15, %15 : vector<8x128xf32>
    %23 = arith.addf %21, %22 : vector<8x128xf32>
    %cst_13 = arith.constant 2.000000e+00 : f32
    %24 = vector.broadcast %cst_13 : f32 to vector<8x128xf32>
    %25 = arith.mulf %24, %16 : vector<8x128xf32>
    %26 = arith.subf %23, %25 : vector<8x128xf32>
    %cst_14 = arith.constant 1.000000e+00 : f32
    %27 = vector.broadcast %cst_14 : f32 to vector<8x128xf32>
    %28 = arith.subf %26, %27 : vector<8x128xf32>
    %c0_15 = arith.constant 0 : index
    %c0_16 = arith.constant 0 : index
    %29 = vector.load %arg3[%c0_15, %c0_16] : memref<8x1xf32, #tpu.memory_space<vmem>>, vector<8x1xf32>
    %30 = vector.broadcast %29 : vector<8x1xf32> to vector<8x128xf32>
    %31 = arith.mulf %30, %28 : vector<8x128xf32>
    %32 = vector.shape_cast %31 : vector<8x128xf32> to vector<1x8x128xf32>
    %cst_17 = arith.constant dense<0.000000e+00> : vector<1xf32>
    %33 = vector.multi_reduction <add>, %32, %cst_17 [1, 2] : vector<1x8x128xf32> to vector<1xf32>
    %34 = vector.shape_cast %33 : vector<1xf32> to vector<1x1x1xf32>
    %35 = vector.extract %34[0, 0, 0] : f32 from vector<1x1x1xf32>
    %cst_18 = arith.constant 5.000000e-01 : f32
    %36 = arith.mulf %cst_18, %35 : f32
    %c0_19 = arith.constant 0 : index
    %c0_20 = arith.constant 0 : index
    %37 = memref.load %arg15[%c0_19, %c0_20] : memref<1x1xf32, #tpu.memory_space<smem>>
    memref.store %36, %arg15[%c0_19, %c0_20] : memref<1x1xf32, #tpu.memory_space<smem>>
    %38 = arith.mulf %20, %20 : vector<8x128xf32>
    %cst_21 = arith.constant dense<0.000000e+00> : vector<8xf32>
    %39 = vector.multi_reduction <add>, %38, %cst_21 [1] : vector<8x128xf32> to vector<8xf32>
    %40 = vector.shape_cast %39 : vector<8xf32> to vector<8x1xf32>
    %cst_22 = arith.constant 1.000000e-24 : f32
    %41 = vector.broadcast %cst_22 : f32 to vector<8x1xf32>
    %42 = arith.maximumf %40, %41 : vector<8x1xf32>
    %43 = math.rsqrt %42 : vector<8x1xf32>
    %44 = vector.broadcast %43 : vector<8x1xf32> to vector<8x128xf32>
    %45 = arith.mulf %20, %44 : vector<8x128xf32>
    %46 = arith.truncf %45 : vector<8x128xf32> to vector<8x128xbf16>
    %c0_23 = arith.constant 0 : index
    %c0_24 = arith.constant 0 : index
    %47 = vector.load %arg8[%c0_23, %c0_24] : memref<128x512xbf16, #tpu.memory_space<vmem>>, vector<128x512xbf16>
    %cst_25 = arith.constant dense<0.000000e+00> : vector<8x512xf32>
    %48 = tpu.matmul %46, %47, %cst_25 {dimension_numbers = #tpu.dot_dimension_numbers<[1], [0], [0], [1], [0, 0, 1, 1], [], []>} : vector<8x128xbf16>, vector<128x512xbf16>, vector<8x512xf32> -> vector<8x512xf32>
    %c0_26 = arith.constant 0 : index
    %c0_27 = arith.constant 0 : index
    %49 = vector.load %arg9[%c0_26, %c0_27] : memref<1x512xf32, #tpu.memory_space<vmem>>, vector<1x512xf32>
    %50 = vector.broadcast %49 : vector<1x512xf32> to vector<8x512xf32>
    %51 = arith.addf %48, %50 : vector<8x512xf32>
    %cst_28 = arith.constant 0.000000e+00 : f32
    %52 = vector.broadcast %cst_28 : f32 to vector<8x512xf32>
    %53 = arith.maximumf %51, %52 : vector<8x512xf32>
    %54 = arith.truncf %53 : vector<8x512xf32> to vector<8x512xbf16>
    %c0_29 = arith.constant 0 : index
    %c0_30 = arith.constant 0 : index
    %55 = vector.load %arg10[%c0_29, %c0_30] : memref<512x512xbf16, #tpu.memory_space<vmem>>, vector<512x512xbf16>
    %cst_31 = arith.constant dense<0.000000e+00> : vector<8x512xf32>
    %56 = tpu.matmul %54, %55, %cst_31 {dimension_numbers = #tpu.dot_dimension_numbers<[1], [0], [0], [1], [0, 0, 1, 1], [], []>} : vector<8x512xbf16>, vector<512x512xbf16>, vector<8x512xf32> -> vector<8x512xf32>
    %c0_32 = arith.constant 0 : index
    %c0_33 = arith.constant 0 : index
    %57 = vector.load %arg11[%c0_32, %c0_33] : memref<1x512xf32, #tpu.memory_space<vmem>>, vector<1x512xf32>
    %58 = vector.broadcast %57 : vector<1x512xf32> to vector<8x512xf32>
    %59 = arith.addf %56, %58 : vector<8x512xf32>
    %cst_34 = arith.constant 0.000000e+00 : f32
    %60 = vector.broadcast %cst_34 : f32 to vector<8x512xf32>
    %61 = arith.maximumf %59, %60 : vector<8x512xf32>
    %62 = arith.truncf %61 : vector<8x512xf32> to vector<8x512xbf16>
    %c0_35 = arith.constant 0 : index
    %c0_36 = arith.constant 0 : index
    %63 = vector.load %arg12[%c0_35, %c0_36] : memref<512x1024xbf16, #tpu.memory_space<vmem>>, vector<512x1024xbf16>
    %cst_37 = arith.constant dense<0.000000e+00> : vector<8x1024xf32>
    %64 = tpu.matmul %62, %63, %cst_37 {dimension_numbers = #tpu.dot_dimension_numbers<[1], [0], [0], [1], [0, 0, 1, 1], [], []>} : vector<8x512xbf16>, vector<512x1024xbf16>, vector<8x1024xf32> -> vector<8x1024xf32>
    %c0_38 = arith.constant 0 : index
    %c0_39 = arith.constant 0 : index
    %65 = vector.load %arg13[%c0_38, %c0_39] : memref<1x1024xf32, #tpu.memory_space<vmem>>, vector<1x1024xf32>
    %66 = vector.broadcast %65 : vector<1x1024xf32> to vector<8x1024xf32>
    %67 = arith.addf %64, %66 : vector<8x1024xf32>
    %c0_40 = arith.constant 0 : index
    %c0_41 = arith.constant 0 : index
    %68 = vector.load %arg14[%c0_40, %c0_41] : memref<8x1024xf32, #tpu.memory_space<vmem>>, vector<8x1024xf32>
    tpu.vector_store %arg14[%c0_40, %c0_41], %67 {strides = array<i32>} : memref<8x1024xf32, #tpu.memory_space<vmem>>, vector<8x1024xf32>,
    return
  }
  func.func @transform_0(%arg0: i32) -> (i32, i32) {
    %c0_i32 = arith.constant 0 : i32
    %c0_i32_0 = arith.constant 0 : i32
    return %arg0, %c0_i32 : i32, i32
  }
  func.func @transform_1(%arg0: i32) -> (i32, i32) {
    %c0_i32 = arith.constant 0 : i32
    %c0_i32_0 = arith.constant 0 : i32
    return %arg0, %c0_i32 : i32, i32
  }
  func.func @transform_2(%arg0: i32) -> (i32, i32) {
    %c0_i32 = arith.constant 0 : i32
    %c0_i32_0 = arith.constant 0 : i32
    return %arg0, %c0_i32 : i32, i32
  }
  func.func @transform_3(%arg0: i32) -> (i32, i32) {
    %c0_i32 = arith.constant 0 : i32
    %c0_i32_0 = arith.constant 0 : i32
    %c0_i32_1 = arith.constant 0 : i32
    return %c0_i32, %c0_i32_0 : i32, i32
  }
  func.func @transform_4(%arg0: i32) -> (i32, i32) {
    %c0_i32 = arith.constant 0 : i32
    %c0_i32_0 = arith.constant 0 : i32
    %c0_i32_1 = arith.constant 0 : i32
    return %c0_i32, %c0_i32_0 : i32, i32
  }
  func.func @transform_5(%arg0: i32) -> (i32, i32) {
    %c0_i32 = arith.constant 0 : i32
    %c0_i32_0 = arith.constant 0 : i32
    %c0_i32_1 = arith.constant 0 : i32
    return %c0_i32, %c0_i32_0 : i32, i32
  }
  func.func @transform_6(%arg0: i32) -> (i32, i32) {
    %c0_i32 = arith.constant 0 : i32
    %c0_i32_0 = arith.constant 0 : i32
    %c0_i32_1 = arith.constant 0 : i32
    return %c0_i32, %c0_i32_0 : i32, i32
  }
  func.func @transform_7(%arg0: i32) -> (i32, i32) {
    %c0_i32 = arith.constant 0 : i32
    %c0_i32_0 = arith.constant 0 : i32
    %c0_i32_1 = arith.constant 0 : i32
    return %c0_i32, %c0_i32_0 : i32, i32
  }
  func.func @transform_8(%arg0: i32) -> (i32, i32) {
    %c0_i32 = arith.constant 0 : i32
    %c0_i32_0 = arith.constant 0 : i32
    %c0_i32_1 = arith.constant 0 : i32
    return %c0_i32, %c0_i32_0 : i32, i32
  }
  func.func @transform_9(%arg0: i32) -> (i32, i32) {
    %c0_i32 = arith.constant 0 : i32
    %c0_i32_0 = arith.constant 0 : i32
    %c0_i32_1 = arith.constant 0 : i32
    return %c0_i32, %c0_i32_0 : i32, i32
  }
  func.func @transform_10(%arg0: i32) -> (i32, i32) {
    %c0_i32 = arith.constant 0 : i32
    %c0_i32_0 = arith.constant 0 : i32
    %c0_i32_1 = arith.constant 0 : i32
    return %c0_i32, %c0_i32_0 : i32, i32
  }
  func.func @transform_11(%arg0: i32) -> (i32, i32) {
    %c0_i32 = arith.constant 0 : i32
    %c0_i32_0 = arith.constant 0 : i32
    %c0_i32_1 = arith.constant 0 : i32
    return %c0_i32, %c0_i32_0 : i32, i32
  }
  func.func @transform_12(%arg0: i32) -> (i32, i32) {
    %c0_i32 = arith.constant 0 : i32
    %c0_i32_0 = arith.constant 0 : i32
    %c0_i32_1 = arith.constant 0 : i32
    return %c0_i32, %c0_i32_0 : i32, i32
  }
  func.func @transform_13(%arg0: i32) -> (i32, i32) {
    %c0_i32 = arith.constant 0 : i32
    %c0_i32_0 = arith.constant 0 : i32
    return %arg0, %c0_i32 : i32, i32
  }
  func.func @transform_14(%arg0: i32) -> (i32, i32) {
    %c0_i32 = arith.constant 0 : i32
    %c0_i32_0 = arith.constant 0 : i32
    return %arg0, %c0_i32 : i32, i32
  }
}

</mosaic_0001>

<bundles_post_ra>
// kernel: tpu_custom_call.1
= control target key start
LH: loop header
LB: loop body
LE: loop exit
PB: predicated region body
PF: predicated region fallthrough
CT: control target
= control target key end

     0   :  { %20 = vsyncpa [#allocation3], 0  ;;  %s10359_s0 = inlined_call_operand.hbm [shape: f32[8,1024], index: 0, kind: input, shape index: {}]   ;;  %s10360_s1 = inlined_call_operand.vmem [shape: f32[8,128], index: 1, kind: input, shape index: {}]   ;;  %s10361_s2 = inlined_call_operand.vmem [shape: f32[8,1], index: 2, kind: input, shape index: {}]   ;;  %s10362_s3 = inlined_call_operand.hbm [shape: bf16[1024,512], index: 3, kind: input, shape index: {}]   ;;  %s10363_s4 = inlined_call_operand.hbm [shape: f32[1,512], index: 4, kind: input, shape index: {}]   ;;  %s10364_s5 = inlined_call_operand.hbm [shape: bf16[512,256], index: 5, kind: input, shape index: {}]   ;;  %s10365_s6 = inlined_call_operand.hbm [shape: f32[1,256], index: 6, kind: input, shape index: {}]   ;;  %s10366_s7 = inlined_call_operand.hbm [shape: bf16[128,512], index: 7, kind: input, shape index: {}]   ;;  %s10367_s8 = inlined_call_operand.hbm [shape: f32[1,512], index: 8, kind: input, shape index: {}]   ;;  %s10368_s9 = inlined_call_operand.hbm [shape: bf16[512,512], index: 9, kind: input, shape index: {}]   ;;  %s10369_s10 = inlined_call_operand.hbm [shape: f32[1,512], index: 10, kind: input, shape index: {}]   ;;  %s10370_s11 = inlined_call_operand.hbm [shape: bf16[512,1024], index: 11, kind: input, shape index: {}]   ;;  %s10371_s12 = inlined_call_operand.vmem [shape: f32[1,1024], index: 12, kind: input, shape index: {}]   ;;  %s10372_s13 = inlined_call_operand.hbm [shape: f32[8,1024], index: 13, kind: output, shape index: {0}]   ;;  %s10373_s14 = inlined_call_operand.hbm [shape: f32[1,1], index: 14, kind: output, shape index: {1}]  }
   0x1   :  { %21 = vsyncpa [#allocation7], 0 }
   0x2   :  { %22 = vsyncpa [#allocation10], 0 }
   0x3   :  { %23 = vsyncpa [#allocation13], 0 }
   0x4   :  { %24 = vsyncpa [#allocation16], 0 }
   0x5   :  { %25 = vsyncpa [#allocation19], 0 }
   0x6   :  { %26 = vsyncpa [#allocation4], 0  ;;  %s47_s15 = sshll.u32 %s10362_s3, 4  ;;  %s48_s15 = int_to_ptr.hbm [resolvable:$true] %s47_s15 }
   0x7   :  { %27 = vsyncpa [#allocation5], 0  ;;  %s9991_s16 = smov [#allocation6]   ;;  %s71_s20 = sshll.u32 %s10364_s5, 4  ;;  %s72_s20 = int_to_ptr.hbm [resolvable:$true] %s71_s20 }
   0x8   :  { %s49_s17 = sshll.u32 %s9991_s16, 4  ;;  %s9992_s21 = smov 256   ;;  %s50_s17 = int_to_ptr.vmem [resolvable:$true] %s49_s17 }
   0x9   :  { %s9993_s22 = smov 16   ;;  %s9994_s23 = smov [#allocation9]  }
   0xa   :  { %55 = dma.hbm_to_vmem [thread:$0]  %s48_s15, 32768, %s50_s17, [#allocation7], %s9992_s21, %s9992_s21, %s9993_s22  }
   0xb   :  { %s73_s24 = sshll.u32 %s9994_s23, 4  ;;  %s9995_s25 = smov 128   ;;  %s74_s24 = int_to_ptr.vmem [resolvable:$true] %s73_s24 }
   0xc   :  { %s9996_s26 = smov 8   ;;  %s95_s28 = sshll.u32 %s10366_s7, 4  ;;  %s96_s28 = int_to_ptr.hbm [resolvable:$true] %s95_s28 }
   0xd   :  { %79 = dma.hbm_to_vmem [thread:$0]  %s72_s20, 8192, %s74_s24, [#allocation10], %s9995_s25, %s9995_s25, %s9996_s26  }
   0xe   :  { %s9997_s29 = smov [#allocation12]   ;;  %s119_s18 = sshll.u32 %s10368_s9, 4  ;;  %s120_s18 = int_to_ptr.hbm [resolvable:$true] %s119_s18 }
   0xf   :  { %s97_s30 = sshll.u32 %s9997_s29, 4  ;;  %s9998_s15 = smov [#allocation15]   ;;  %s98_s30 = int_to_ptr.vmem [resolvable:$true] %s97_s30 }
  0x10   :  { %103 = dma.hbm_to_vmem [thread:$0]  %s96_s28, 4096, %s98_s30, [#allocation13], %s9992_s21, %s9992_s21, %s9993_s22  }
  0x11   :  { %s121_s17 = sshll.u32 %s9998_s15, 4  ;;  %s33_s20 = sshll.u32 %s10359_s0, 4  ;;  %s122_s17 = int_to_ptr.vmem [resolvable:$true] %s121_s17  ;;  %s34_s20 = int_to_ptr.hbm [resolvable:$true] %s33_s20 }
  0x12   :  { %127 = dma.hbm_to_vmem [thread:$0]  %s120_s18, 16384, %s122_s17, [#allocation16], %s9992_s21, %s9992_s21, %s9993_s22  }
  0x13   :  { %s61_s25 = sshll.u32 %s10363_s4, 4  ;;  %s9999_s26 = smov [#allocation2]   ;;  %s62_s25 = int_to_ptr.hbm [resolvable:$true] %s61_s25 }
  0x14   :  { %s35_s3 = sshll.u32 %s9999_s26, 4  ;;  %s10000_s9 = smov [#allocation8]   ;;  %s36_s3 = int_to_ptr.vmem [resolvable:$true] %s35_s3 }
  0x15   :  { %38 = dma.hbm_to_vmem [thread:$0]  %s34_s20, 1024, %s36_s3, [#allocation3]  }
  0x16   :  { %s63_s27 = sshll.u32 %s10000_s9, 4  ;;  %s85_s30 = sshll.u32 %s10365_s6, 4  ;;  %s64_s27 = int_to_ptr.vmem [resolvable:$true] %s63_s27  ;;  %s86_s30 = int_to_ptr.hbm [resolvable:$true] %s85_s30 }
  0x17   :  { %66 = dma.hbm_to_vmem [thread:$0]  %s62_s25, 64, %s64_s27, [#allocation7]  }
  0x18   :  { %s109_s22 = sshll.u32 %s10367_s8, 4  ;;  %s10001_s16 = smov [#allocation11]   ;;  %s110_s22 = int_to_ptr.hbm [resolvable:$true] %s109_s22 }
  0x19   :  { %s87_s4 = sshll.u32 %s10001_s16, 4  ;;  %s10002_s5 = smov [#allocation14]   ;;  %s88_s4 = int_to_ptr.vmem [resolvable:$true] %s87_s4 }
  0x1a   :  { %90 = dma.hbm_to_vmem [thread:$0]  %s86_s30, 32, %s88_s4, [#allocation10]  }
  0x1b   :  { %s111_s18 = sshll.u32 %s10002_s5, 4  ;;  %s133_s19 = sshll.u32 %s10369_s10, 4  ;;  %s112_s18 = int_to_ptr.vmem [resolvable:$true] %s111_s18  ;;  %s134_s19 = int_to_ptr.hbm [resolvable:$true] %s133_s19 }
  0x1c   :  { %114 = dma.hbm_to_vmem [thread:$0]  %s110_s22, 64, %s112_s18, [#allocation13]  }
  0x1d   :  { %s143_s20 = sshll.u32 %s10370_s11, 4  ;;  %s10003_s7 = smov [#allocation17]   ;;  %s144_s20 = int_to_ptr.hbm [resolvable:$true] %s143_s20 }
  0x1e   :  { %s135_s8 = sshll.u32 %s10003_s7, 4  ;;  %s10004_s24 = smov [#allocation18]   ;;  %s136_s8 = int_to_ptr.vmem [resolvable:$true] %s135_s8 }
  0x1f   :  { %138 = dma.hbm_to_vmem [thread:$0]  %s134_s19, 64, %s136_s8, [#allocation16]  }
  0x20   :  { %s145_s25 = sshll.u32 %s10004_s24, 4  ;;  %s10005_s26 = smov 512   ;;  %s146_s25 = int_to_ptr.vmem [resolvable:$true] %s145_s25 }
  0x21   :  { %s10006_s3 = smov 32  }
  0x22   :  { %151 = dma.hbm_to_vmem [thread:$0]  %s144_s20, 32768, %s146_s25, [#allocation19], %s10005_s26, %s10005_s26, %s10006_s3  }
  0x23   :  { %9975 = dma.done.wait [#allocation3], 1024  }
  0x24   :  { %9976 = vsyncadd [#allocation3], 4294966272 }
  0x25   :  { %9977 = dma.done.wait [#allocation7], 32832  }
  0x26   :  { %9978 = vsyncadd [#allocation7], 4294934464 }
  0x27   :  { %9979 = dma.done.wait [#allocation10], 8224  }
  0x28   :  { %9980 = vsyncadd [#allocation10], 4294959072 }
  0x29   :  { %9981 = dma.done.wait [#allocation13], 4160  }
  0x2a   :  { %9982 = vsyncadd [#allocation13], 4294963136 }
  0x2b   :  { %9983 = dma.done.wait [#allocation16], 16448  }
  0x2c   :  { %9984 = vsyncadd [#allocation16], 4294950848 }
  0x2d   :  { %9985 = dma.done.wait [#allocation19], 32768  }
  0x2e   :  { %9986 = vsyncadd [#allocation19], 4294934528  ;;  %v6105_v0 = vld [vmem:[#allocation6 + $0xe0] sm:$0xf]  ;;  %v8966_v1 = vld [vmem:[#allocation6 + $0xec] sm:$0xf0] }
  0x2f   :  { %v6233_v2 = vld [vmem:[#allocation6 + $0x1e0] sm:$0xf]  ;;  %v6106_v3 = vor.u32 %v8966_v1, %v6105_v0  ;;  %v8998_v4 = vld [vmem:[#allocation6 + $0x1ec] sm:$0xf0]  ;;  %s5970_s0 = sshll.u32 %s10373_s14, 4  ;;  %s10008_s21 = smov [#allocation21]   ;;  %s5971_s0 = int_to_ptr.hbm [resolvable:$true] %s5970_s0 }
  0x30   :  { %v6361_v5 = vld [vmem:[#allocation6 + $0x2e0] sm:$0xf]  ;;  %v9030_v6 = vld [vmem:[#allocation6 + $0x2ec] sm:$0xf0]  ;;  %v6234_v7 = vor.u32 %v8998_v4, %v6233_v2  ;;  %s10009_s14 = smov [#allocation20]   ;;  %s5961_s5 = sshll.u32 %s10372_s13, 4  ;;  %s5962_s5 = int_to_ptr.hbm [resolvable:$true] %s5961_s5 }
  0x31   :  { %v6362_v8 = vor.u32 %v9030_v6, %v6361_v5  ;;  %v6489_v9 = vld [vmem:[#allocation6 + $0x3e0] sm:$0xf]  ;;  %v9062_v10 = vld [vmem:[#allocation6 + $0x3ec] sm:$0xf0]  ;;  %1756 = vmatpush.bf16.msra.mxu0 %v6106_v3  ;;  %s5959_s22 = sshll.u32 %s10009_s14, 4  ;;  %s5960_s22 = int_to_ptr.vmem [resolvable:$true] %s5959_s22 }
  0x32   :  { %v6089_v11 = vld [vmem:[#allocation6 + $0xc0] sm:$0xf]  ;;  %v6490_v12 = vor.u32 %v9062_v10, %v6489_v9  ;;  %v8962_v13 = vld [vmem:[#allocation6 + $0xcc] sm:$0xf0]  ;;  %1769 = vmatpush.bf16.msra.mxu1 %v6234_v7 }
  0x33   :  { %v6217_v14 = vld [vmem:[#allocation6 + $0x1c0] sm:$0xf]  ;;  %v8994_v15 = vld [vmem:[#allocation6 + $0x1cc] sm:$0xf0]  ;;  %1782 = vmatpush.bf16.msra.mxu2 %v6362_v8  ;;  %v6090_v16 = vor.u32 %v8962_v13, %v6089_v11 }
  0x34   :  { %v6218_v17 = vor.u32 %v8994_v15, %v6217_v14  ;;  %v6345_v18 = vld [vmem:[#allocation6 + $0x2c0] sm:$0xf]  ;;  %v9026_v19 = vld [vmem:[#allocation6 + $0x2cc] sm:$0xf0]  ;;  %1795 = vmatpush.bf16.msra.mxu3 %v6490_v12 }
  0x35   :  { %v6473_v20 = vld [vmem:[#allocation6 + $0x3c0] sm:$0xf]  ;;  %v6346_v21 = vor.u32 %v9026_v19, %v6345_v18  ;;  %v9058_v22 = vld [vmem:[#allocation6 + $0x3cc] sm:$0xf0]  ;;  %1757 = vmatpush.bf16.msra.mxu0 %v6090_v16 }
  0x36   :  { %v6073_v23 = vld [vmem:[#allocation6 + $0xa0] sm:$0xf]  ;;  %v8958_v24 = vld [vmem:[#allocation6 + $0xac] sm:$0xf0]  ;;  %v6474_v25 = vor.u32 %v9058_v22, %v6473_v20  ;;  %1770 = vmatpush.bf16.msra.mxu1 %v6218_v17 }
  0x37   :  { %v6201_v26 = vld [vmem:[#allocation6 + $0x1a0] sm:$0xf]  ;;  %v8990_v27 = vld [vmem:[#allocation6 + $0x1ac] sm:$0xf0]  ;;  %v6074_v29 = vor.u32 %v8958_v24, %v6073_v23  ;;  %1783 = vmatpush.bf16.msra.mxu2 %v6346_v21 }
  0x38   :  { %v6329_v28 = vld [vmem:[#allocation6 + $0x2a0] sm:$0xf]  ;;  %v9022_v30 = vld [vmem:[#allocation6 + $0x2ac] sm:$0xf0]  ;;  %v6202_v33 = vor.u32 %v8990_v27, %v6201_v26  ;;  %1796 = vmatpush.bf16.msra.mxu3 %v6474_v25 }
  0x39   :  { %v6457_v31 = vld [vmem:[#allocation6 + $0x3a0] sm:$0xf]  ;;  %v9054_v32 = vld [vmem:[#allocation6 + $0x3ac] sm:$0xf0]  ;;  %v6330_v34 = vor.u32 %v9022_v30, %v6329_v28  ;;  %1758 = vmatpush.bf16.msra.mxu0 %v6074_v29 }
  0x3a   :  { %v6057_v35 = vld [vmem:[#allocation6 + $0x80] sm:$0xf]  ;;  %v8954_v36 = vld [vmem:[#allocation6 + $0x8c] sm:$0xf0]  ;;  %v6458_v38 = vor.u32 %v9054_v32, %v6457_v31  ;;  %1771 = vmatpush.bf16.msra.mxu1 %v6202_v33 }
  0x3b   :  { %v6185_v37 = vld [vmem:[#allocation6 + $0x180] sm:$0xf]  ;;  %v8986_v39 = vld [vmem:[#allocation6 + $0x18c] sm:$0xf0]  ;;  %v6058_v44 = vor.u32 %v8954_v36, %v6057_v35  ;;  %1784 = vmatpush.bf16.msra.mxu2 %v6330_v34 }
  0x3c   :  { %v6313_v40 = vld [vmem:[#allocation6 + $0x280] sm:$0xf]  ;;  %v9018_v41 = vld [vmem:[#allocation6 + $0x28c] sm:$0xf0]  ;;  %v6186_v45 = vor.u32 %v8986_v39, %v6185_v37  ;;  %1797 = vmatpush.bf16.msra.mxu3 %v6458_v38 }
  0x3d   :  { %v6441_v42 = vld [vmem:[#allocation6 + $0x380] sm:$0xf]  ;;  %v9050_v43 = vld [vmem:[#allocation6 + $0x38c] sm:$0xf0]  ;;  %v6314_v46 = vor.u32 %v9018_v41, %v6313_v40  ;;  %1759 = vmatpush.bf16.msra.mxu0 %v6058_v44 }
  0x3e   :  { %v6041_v47 = vld [vmem:[#allocation6 + $0x60] sm:$0xf]  ;;  %v8950_v48 = vld [vmem:[#allocation6 + $0x6c] sm:$0xf0]  ;;  %v6442_v50 = vor.u32 %v9050_v43, %v6441_v42  ;;  %1772 = vmatpush.bf16.msra.mxu1 %v6186_v45 }
  0x3f   :  { %v6169_v49 = vld [vmem:[#allocation6 + $0x160] sm:$0xf]  ;;  %v8982_v51 = vld [vmem:[#allocation6 + $0x16c] sm:$0xf0]  ;;  %v6042_v56 = vor.u32 %v8950_v48, %v6041_v47  ;;  %1785 = vmatpush.bf16.msra.mxu2 %v6314_v46 }
  0x40   :  { %v6297_v52 = vld [vmem:[#allocation6 + $0x260] sm:$0xf]  ;;  %v9014_v53 = vld [vmem:[#allocation6 + $0x26c] sm:$0xf0]  ;;  %v6170_v57 = vor.u32 %v8982_v51, %v6169_v49  ;;  %1798 = vmatpush.bf16.msra.mxu3 %v6442_v50 }
  0x41   :  { %v6425_v54 = vld [vmem:[#allocation6 + $0x360] sm:$0xf]  ;;  %v9046_v55 = vld [vmem:[#allocation6 + $0x36c] sm:$0xf0]  ;;  %v6298_v58 = vor.u32 %v9014_v53, %v6297_v52  ;;  %1760 = vmatpush.bf16.msra.mxu0 %v6042_v56 }
  0x42   :  { %v6025_v59 = vld [vmem:[#allocation6 + $0x40] sm:$0xf]  ;;  %v8946_v60 = vld [vmem:[#allocation6 + $0x4c] sm:$0xf0]  ;;  %v6426_v62 = vor.u32 %v9046_v55, %v6425_v54  ;;  %1773 = vmatpush.bf16.msra.mxu1 %v6170_v57 }
  0x43   :  { %v6153_v61 = vld [vmem:[#allocation6 + $0x140] sm:$0xf]  ;;  %v8978_v63 = vld [vmem:[#allocation6 + $0x14c] sm:$0xf0]  ;;  %v6026_v4 = vor.u32 %v8946_v60, %v6025_v59  ;;  %1786 = vmatpush.bf16.msra.mxu2 %v6298_v58 }
  0x44   :  { %v6281_v0 = vld [vmem:[#allocation6 + $0x240] sm:$0xf]  ;;  %v9010_v1 = vld [vmem:[#allocation6 + $0x24c] sm:$0xf0]  ;;  %v6154_v5 = vor.u32 %v8978_v63, %v6153_v61  ;;  %1799 = vmatpush.bf16.msra.mxu3 %v6426_v62 }
  0x45   :  { %v6409_v2 = vld [vmem:[#allocation6 + $0x340] sm:$0xf]  ;;  %v9042_v3 = vld [vmem:[#allocation6 + $0x34c] sm:$0xf0]  ;;  %v6282_v6 = vor.u32 %v9010_v1, %v6281_v0  ;;  %1761 = vmatpush.bf16.msra.mxu0 %v6026_v4 }
  0x46   :  { %v6009_v7 = vld [vmem:[#allocation6 + $0x20] sm:$0xf]  ;;  %v8942_v8 = vld [vmem:[#allocation6 + $0x2c] sm:$0xf0]  ;;  %v6410_v10 = vor.u32 %v9042_v3, %v6409_v2  ;;  %1774 = vmatpush.bf16.msra.mxu1 %v6154_v5 }
  0x47   :  { %v6137_v9 = vld [vmem:[#allocation6 + $0x120] sm:$0xf]  ;;  %v8974_v11 = vld [vmem:[#allocation6 + $0x12c] sm:$0xf0]  ;;  %v6010_v16 = vor.u32 %v8942_v8, %v6009_v7  ;;  %1787 = vmatpush.bf16.msra.mxu2 %v6282_v6 }
  0x48   :  { %v6265_v12 = vld [vmem:[#allocation6 + $0x220] sm:$0xf]  ;;  %v9006_v13 = vld [vmem:[#allocation6 + $0x22c] sm:$0xf0]  ;;  %v6138_v19 = vor.u32 %v8974_v11, %v6137_v9  ;;  %1800 = vmatpush.bf16.msra.mxu3 %v6410_v10  ;;  %v197_v10 = vld [vmem:[#allocation2 + $0x18] sm:$0xff] }
  0x49   :  { %v6393_v14 = vld [vmem:[#allocation6 + $0x320] sm:$0xf]  ;;  %v9038_v15 = vld [vmem:[#allocation6 + $0x32c] sm:$0xf0]  ;;  %v6266_v20 = vor.u32 %v9006_v13, %v6265_v12  ;;  %1762 = vmatpush.bf16.msra.mxu0 %v6010_v16 }
  0x4a   :  { %v5993_v17 = vld [vmem:[#allocation6] sm:$0xf]  ;;  %v8938_v18 = vld [vmem:[#allocation6 + $0xc] sm:$0xf0]  ;;  %v6394_v24 = vor.u32 %v9038_v15, %v6393_v14  ;;  %1775 = vmatpush.bf16.msra.mxu1 %v6138_v19  ;;  %v10119_v15 = vpack.c.bf16 %v197_v10, %v197_v10  ;;  %v195_v19 = vld [vmem:[#allocation2 + $0x8] sm:$0xff] }
  0x4b   :  { %v6121_v21 = vld [vmem:[#allocation6 + $0x100] sm:$0xf]  ;;  %v8970_v22 = vld [vmem:[#allocation6 + $0x10c] sm:$0xf0]  ;;  %v5994_v31 = vor.u32 %v8938_v18, %v5993_v17  ;;  %1788 = vmatpush.bf16.msra.mxu2 %v6266_v20  ;;  %v6235_v10 = vld [vmem:[#allocation6 + $0x1f0] sm:$0xf0] }
  0x4c   :  { %v6249_v23 = vld [vmem:[#allocation6 + $0x200] sm:$0xf]  ;;  %v9002_v25 = vld [vmem:[#allocation6 + $0x20c] sm:$0xf0]  ;;  %v6122_v35 = vor.u32 %v8970_v22, %v6121_v21  ;;  %1801 = vmatpush.bf16.msra.mxu3 %v6394_v24 }
  0x4d   :  { %v6377_v26 = vld [vmem:[#allocation6 + $0x300] sm:$0xf]  ;;  %v9034_v27 = vld [vmem:[#allocation6 + $0x30c] sm:$0xf0]  ;;  %v6250_v36 = vor.u32 %v9002_v25, %v6249_v23  ;;  %1763 = vmatpush.bf16.msra.mxu0 %v5994_v31  ;;  %v10124_v25 = vpack.c.bf16 %v195_v19, %v195_v19 }
  0x4e   :  { %v6617_v28 = vld [vmem:[#allocation6 + $0x4e0] sm:$0xf]  ;;  %v9094_v29 = vld [vmem:[#allocation6 + $0x4ec] sm:$0xf0]  ;;  %v6378_v39 = vor.u32 %v9034_v27, %v6377_v26  ;;  %1776 = vmatpush.bf16.msra.mxu1 %v6122_v35 }
  0x4f   :  { %v6745_v30 = vld [vmem:[#allocation6 + $0x5e0] sm:$0xf]  ;;  %v9126_v32 = vld [vmem:[#allocation6 + $0x5ec] sm:$0xf0]  ;;  %v6618_v40 = vor.u32 %v9094_v29, %v6617_v28  ;;  %1789 = vmatpush.bf16.msra.mxu2 %v6250_v36 }
  0x50   :  { %v6873_v33 = vld [vmem:[#allocation6 + $0x6e0] sm:$0xf]  ;;  %v9158_v34 = vld [vmem:[#allocation6 + $0x6ec] sm:$0xf0]  ;;  %v6746_v41 = vor.u32 %v9126_v32, %v6745_v30  ;;  %1802 = vmatpush.bf16.msra.mxu3 %v6378_v39 }
  0x51   :  { %v7001_v37 = vld [vmem:[#allocation6 + $0x7e0] sm:$0xf]  ;;  %v9190_v38 = vld [vmem:[#allocation6 + $0x7ec] sm:$0xf0]  ;;  %v6874_v42 = vor.u32 %v9158_v34, %v6873_v33  ;;  %1808 = vmatpush.bf16.msrb.mxu0 %v6618_v40  ;;  %1777 = vmatmul.bf16.vlgmr.msra.gmra.mxu1 %v10124_v25 }
  0x52   :  { %v6601_v43 = vld [vmem:[#allocation6 + $0x4c0] sm:$0xf]  ;;  %v9090_v44 = vld [vmem:[#allocation6 + $0x4cc] sm:$0xf0]  ;;  %v7002_v46 = vor.u32 %v9190_v38, %v7001_v37  ;;  %1821 = vmatpush.bf16.msrb.mxu1 %v6746_v41 }
  0x53   :  { %v6729_v45 = vld [vmem:[#allocation6 + $0x5c0] sm:$0xf]  ;;  %v9122_v47 = vld [vmem:[#allocation6 + $0x5cc] sm:$0xf0]  ;;  %v6602_v52 = vor.u32 %v9090_v44, %v6601_v43  ;;  %1834 = vmatpush.bf16.msrb.mxu2 %v6874_v42  ;;  %1803 = vmatmul.bf16.vlgmr.msra.gmra.mxu3 %v10119_v15 }
  0x54   :  { %v6857_v48 = vld [vmem:[#allocation6 + $0x6c0] sm:$0xf]  ;;  %v9154_v49 = vld [vmem:[#allocation6 + $0x6cc] sm:$0xf0]  ;;  %v6730_v54 = vor.u32 %v9122_v47, %v6729_v45  ;;  %1847 = vmatpush.bf16.msrb.mxu3 %v7002_v46 }
  0x55   :  { %v6985_v50 = vld [vmem:[#allocation6 + $0x7c0] sm:$0xf]  ;;  %v9186_v51 = vld [vmem:[#allocation6 + $0x7cc] sm:$0xf0]  ;;  %v6858_v55 = vor.u32 %v9154_v49, %v6857_v48  ;;  %1809 = vmatpush.bf16.msrb.mxu0 %v6602_v52 }
  0x56   :  { %v6585_v53 = vld [vmem:[#allocation6 + $0x4a0] sm:$0xf]  ;;  %v9086_v56 = vld [vmem:[#allocation6 + $0x4ac] sm:$0xf0]  ;;  %v6986_v59 = vor.u32 %v9186_v51, %v6985_v50  ;;  %1822 = vmatpush.bf16.msrb.mxu1 %v6730_v54 }
  0x57   :  { %v6713_v57 = vld [vmem:[#allocation6 + $0x5a0] sm:$0xf]  ;;  %v9118_v58 = vld [vmem:[#allocation6 + $0x5ac] sm:$0xf0]  ;;  %v6586_v0 = vor.u32 %v9086_v56, %v6585_v53  ;;  %1835 = vmatpush.bf16.msrb.mxu2 %v6858_v55 }
  0x58   :  { %v6841_v60 = vld [vmem:[#allocation6 + $0x6a0] sm:$0xf]  ;;  %v9150_v61 = vld [vmem:[#allocation6 + $0x6ac] sm:$0xf0]  ;;  %v6714_v1 = vor.u32 %v9118_v58, %v6713_v57  ;;  %1848 = vmatpush.bf16.msrb.mxu3 %v6986_v59 }
  0x59   :  { %v6969_v62 = vld [vmem:[#allocation6 + $0x7a0] sm:$0xf]  ;;  %v9182_v63 = vld [vmem:[#allocation6 + $0x7ac] sm:$0xf0]  ;;  %v6842_v5 = vor.u32 %v9150_v61, %v6841_v60  ;;  %1810 = vmatpush.bf16.msrb.mxu0 %v6586_v0 }
  0x5a   :  { %v6569_v2 = vld [vmem:[#allocation6 + $0x480] sm:$0xf]  ;;  %v196_v3 = vld [vmem:[#allocation2 + $0x10] sm:$0xff]  ;;  %v6970_v11 = vor.u32 %v9182_v63, %v6969_v62  ;;  %1823 = vmatpush.bf16.msrb.mxu1 %v6714_v1 }
  0x5b   :  { %v194_v4 = vld [vmem:[#allocation2] sm:$0xff]  ;;  %v9082_v6 = vld [vmem:[#allocation6 + $0x48c] sm:$0xf0]  ;;  %v10115_v8 = vpack.c.bf16 %v196_v3, %v196_v3  ;;  %1836 = vmatpush.bf16.msrb.mxu2 %v6842_v5  ;;  %v6107_v5 = vld [vmem:[#allocation6 + $0xf0] sm:$0xf0] }
  0x5c   :  { %v6697_v7 = vld [vmem:[#allocation6 + $0x580] sm:$0xf]  ;;  %v10117_v9 = vpack.c.bf16 %v194_v4, %v194_v4  ;;  %v9114_v12 = vld [vmem:[#allocation6 + $0x58c] sm:$0xf0]  ;;  %v6570_v18 = vor.u32 %v9082_v6, %v6569_v2  ;;  %1849 = vmatpush.bf16.msrb.mxu3 %v6970_v11  ;;  %v8964_v4 = vld [vmem:[#allocation6 + $0xe4] sm:$0xf] }
  0x5d   :  { %v6825_v13 = vld [vmem:[#allocation6 + $0x680] sm:$0xf]  ;;  %v9146_v14 = vld [vmem:[#allocation6 + $0x68c] sm:$0xf0]  ;;  %1790 = vmatmul.bf16.vlgmr.msra.gmra.mxu2 %v10115_v8  ;;  %v6698_v20 = vor.u32 %v9114_v12, %v6697_v7  ;;  %v8996_v6 = vld [vmem:[#allocation6 + $0x1e4] sm:$0xf] }
  0x5e   :  { %v6953_v16 = vld [vmem:[#allocation6 + $0x780] sm:$0xf]  ;;  %v9178_v17 = vld [vmem:[#allocation6 + $0x78c] sm:$0xf0]  ;;  %1764 = vmatmul.bf16.vlgmr.msra.gmra.mxu0 %v10117_v9  ;;  %v6826_v21 = vor.u32 %v9146_v14, %v6825_v13  ;;  %v9028_v11 = vld [vmem:[#allocation6 + $0x2e4] sm:$0xf] }
  0x5f   :  { %v6553_v22 = vld [vmem:[#allocation6 + $0x460] sm:$0xf]  ;;  %v9078_v23 = vld [vmem:[#allocation6 + $0x46c] sm:$0xf0]  ;;  %v6954_v26 = vor.u32 %v9178_v17, %v6953_v16  ;;  %1811 = vmatpush.bf16.msrb.mxu0 %v6570_v18  ;;  %1824 = vmatpush.bf16.msrb.mxu1 %v6698_v20  ;;  %v6363_v12 = vld [vmem:[#allocation6 + $0x2f0] sm:$0xf0]  ;;  %v6110_v20 = vor.u32 %v8964_v4, %v6107_v5 }
  0x60   :  { %v6681_v24 = vld [vmem:[#allocation6 + $0x560] sm:$0xf]  ;;  %v9110_v27 = vld [vmem:[#allocation6 + $0x56c] sm:$0xf0]  ;;  %v6554_v32 = vor.u32 %v9078_v23, %v6553_v22  ;;  %1837 = vmatpush.bf16.msrb.mxu2 %v6826_v21  ;;  %v9060_v16 = vld [vmem:[#allocation6 + $0x3e4] sm:$0xf] }
  0x61   :  { %v6809_v28 = vld [vmem:[#allocation6 + $0x660] sm:$0xf]  ;;  %v9142_v29 = vld [vmem:[#allocation6 + $0x66c] sm:$0xf0]  ;;  %v6682_v33 = vor.u32 %v9110_v27, %v6681_v24  ;;  %1850 = vmatpush.bf16.msrb.mxu3 %v6954_v26  ;;  %v6491_v17 = vld [vmem:[#allocation6 + $0x3f0] sm:$0xf0]  ;;  %v6238_v24 = vor.u32 %v8996_v6, %v6235_v10  ;;  %v6366_v26 = vor.u32 %v9028_v11, %v6363_v12 }
  0x62   :  { %v6937_v30 = vld [vmem:[#allocation6 + $0x760] sm:$0xf]  ;;  %v9174_v31 = vld [vmem:[#allocation6 + $0x76c] sm:$0xf0]  ;;  %v6810_v34 = vor.u32 %v9142_v29, %v6809_v28  ;;  %v8960_v21 = vld [vmem:[#allocation6 + $0xc4] sm:$0xf] }
  0x63   :  { %v6537_v35 = vld [vmem:[#allocation6 + $0x440] sm:$0xf]  ;;  %v9074_v36 = vld [vmem:[#allocation6 + $0x44c] sm:$0xf0]  ;;  %v6938_v38 = vor.u32 %v9174_v31, %v6937_v30  ;;  %1812 = vmatpush.bf16.msrb.mxu0 %v6554_v32  ;;  %1825 = vmatpush.bf16.msrb.mxu1 %v6682_v33  ;;  %v201_v23 = vld [vmem:[#allocation2 + $0x38] sm:$0xff]  ;;  %v6494_v30 = vor.u32 %v9060_v16, %v6491_v17 }
  0x64   :  { %v6665_v37 = vld [vmem:[#allocation6 + $0x540] sm:$0xf]  ;;  %v9106_v39 = vld [vmem:[#allocation6 + $0x54c] sm:$0xf0]  ;;  %v6538_v44 = vor.u32 %v9074_v36, %v6537_v35  ;;  %1838 = vmatpush.bf16.msrb.mxu2 %v6810_v34  ;;  %v6091_v27 = vld [vmem:[#allocation6 + $0xd0] sm:$0xf0] }
  0x65   :  { %v6793_v40 = vld [vmem:[#allocation6 + $0x640] sm:$0xf]  ;;  %v9138_v41 = vld [vmem:[#allocation6 + $0x64c] sm:$0xf0]  ;;  %v6666_v45 = vor.u32 %v9106_v39, %v6665_v37  ;;  %1851 = vmatpush.bf16.msrb.mxu3 %v6938_v38  ;;  %v8992_v28 = vld [vmem:[#allocation6 + $0x1c4] sm:$0xf]  ;;  %v10131_v38 = vpack.c.bf16 %v201_v23, %v201_v23  ;;  %v6094_v39 = vor.u32 %v8960_v21, %v6091_v27 }
  0x66   :  { %v6921_v42 = vld [vmem:[#allocation6 + $0x740] sm:$0xf]  ;;  %v9170_v43 = vld [vmem:[#allocation6 + $0x74c] sm:$0xf0]  ;;  %v6794_v46 = vor.u32 %v9138_v41, %v6793_v40  ;;  %v199_v29 = vld [vmem:[#allocation2 + $0x28] sm:$0xff] }
  0x67   :  { %v6521_v47 = vld [vmem:[#allocation6 + $0x420] sm:$0xf]  ;;  %v9070_v48 = vld [vmem:[#allocation6 + $0x42c] sm:$0xf0]  ;;  %v6922_v50 = vor.u32 %v9170_v43, %v6921_v42  ;;  %1813 = vmatpush.bf16.msrb.mxu0 %v6538_v44  ;;  %1826 = vmatpush.bf16.msrb.mxu1 %v6666_v45  ;;  %v6219_v31 = vld [vmem:[#allocation6 + $0x1d0] sm:$0xf0]  ;;  %v10133_v40 = vpack.c.bf16 %v199_v29, %v199_v29 }
  0x68   :  { %v6649_v49 = vld [vmem:[#allocation6 + $0x520] sm:$0xf]  ;;  %v9102_v51 = vld [vmem:[#allocation6 + $0x52c] sm:$0xf0]  ;;  %v6522_v56 = vor.u32 %v9070_v48, %v6521_v47  ;;  %1839 = vmatpush.bf16.msrb.mxu2 %v6794_v46  ;;  %v9024_v32 = vld [vmem:[#allocation6 + $0x2c4] sm:$0xf]  ;;  %v6222_v41 = vor.u32 %v8992_v28, %v6219_v31 }
  0x69   :  { %v6777_v52 = vld [vmem:[#allocation6 + $0x620] sm:$0xf]  ;;  %v9134_v53 = vld [vmem:[#allocation6 + $0x62c] sm:$0xf0]  ;;  %v6650_v59 = vor.u32 %v9102_v51, %v6649_v49  ;;  %1852 = vmatpush.bf16.msrb.mxu3 %v6922_v50  ;;  %v6347_v33 = vld [vmem:[#allocation6 + $0x2d0] sm:$0xf0] }
  0x6a   :  { %v6905_v54 = vld [vmem:[#allocation6 + $0x720] sm:$0xf]  ;;  %v9166_v55 = vld [vmem:[#allocation6 + $0x72c] sm:$0xf0]  ;;  %v6778_v60 = vor.u32 %v9134_v53, %v6777_v52  ;;  %v9056_v35 = vld [vmem:[#allocation6 + $0x3c4] sm:$0xf]  ;;  %v6350_v42 = vor.u32 %v9024_v32, %v6347_v33 }
  0x6b   :  { %v6505_v57 = vld [vmem:[#allocation6 + $0x400] sm:$0xf]  ;;  %v9066_v58 = vld [vmem:[#allocation6 + $0x40c] sm:$0xf0]  ;;  %v6906_v0 = vor.u32 %v9166_v55, %v6905_v54  ;;  %1814 = vmatpush.bf16.msrb.mxu0 %v6522_v56  ;;  %1827 = vmatpush.bf16.msrb.mxu1 %v6650_v59  ;;  %v6475_v36 = vld [vmem:[#allocation6 + $0x3d0] sm:$0xf0] }
  0x6c   :  { %v6633_v61 = vld [vmem:[#allocation6 + $0x500] sm:$0xf]  ;;  %v9098_v62 = vld [vmem:[#allocation6 + $0x50c] sm:$0xf0]  ;;  %v6506_v7 = vor.u32 %v9066_v58, %v6505_v57  ;;  %1840 = vmatpush.bf16.msrb.mxu2 %v6778_v60  ;;  %v8956_v43 = vld [vmem:[#allocation6 + $0xa4] sm:$0xf]  ;;  %v6478_v46 = vor.u32 %v9056_v35, %v6475_v36 }
  0x6d   :  { %v6761_v63 = vld [vmem:[#allocation6 + $0x600] sm:$0xf]  ;;  %v9130_v1 = vld [vmem:[#allocation6 + $0x60c] sm:$0xf0]  ;;  %v6634_v13 = vor.u32 %v9098_v62, %v6633_v61  ;;  %1853 = vmatpush.bf16.msrb.mxu3 %v6906_v0  ;;  %v6075_v44 = vld [vmem:[#allocation6 + $0xb0] sm:$0xf0] }
  0x6e   :  { %v6889_v2 = vld [vmem:[#allocation6 + $0x700] sm:$0xf]  ;;  %v9162_v3 = vld [vmem:[#allocation6 + $0x70c] sm:$0xf0]  ;;  %v6762_v14 = vor.u32 %v9130_v1, %v6761_v63  ;;  %v8988_v45 = vld [vmem:[#allocation6 + $0x1a4] sm:$0xf]  ;;  %v6078_v52 = vor.u32 %v8956_v43, %v6075_v44 }
  0x6f   :  { %v200_v18 = vld [vmem:[#allocation2 + $0x30] sm:$0xff]  ;;  %v6890_v19 = vor.u32 %v9162_v3, %v6889_v2  ;;  %v198_v22 = vld [vmem:[#allocation2 + $0x20] sm:$0xff]  ;;  %1815 = vmatpush.bf16.msrb.mxu0 %v6506_v7  ;;  %1828 = vmatpush.bf16.msrb.mxu1 %v6634_v13 }
  0x70   :  { %v10127_v34 = vpack.c.bf16 %v200_v18, %v200_v18  ;;  %1841 = vmatpush.bf16.msrb.mxu2 %v6762_v14  ;;  %v10129_v37 = vpack.c.bf16 %v198_v22, %v198_v22  ;;  %v6203_v47 = vld [vmem:[#allocation6 + $0x1b0] sm:$0xf0]  ;;  %v9020_v48 = vld [vmem:[#allocation6 + $0x2a4] sm:$0xf] }
  0x71   :  { %1854 = vmatpush.bf16.msrb.mxu3 %v6890_v19  ;;  %v6331_v49 = vld [vmem:[#allocation6 + $0x2b0] sm:$0xf0]  ;;  %v9052_v50 = vld [vmem:[#allocation6 + $0x3a4] sm:$0xf]  ;;  %v6206_v53 = vor.u32 %v8988_v45, %v6203_v47 }
  0x72   :  { %v6459_v51 = vld [vmem:[#allocation6 + $0x3b0] sm:$0xf0]  ;;  %1816 = vmatmul.bf16.vlgmr.msrb.gmra.mxu0 %v10129_v37  ;;  %1829 = vmatmul.bf16.vlgmr.msrb.gmra.mxu1 %v10133_v40  ;;  %v6334_v54 = vor.u32 %v9020_v48, %v6331_v49  ;;  %v8952_v55 = vld [vmem:[#allocation6 + $0x84] sm:$0xf] }
  0x73   :  { %1860 = vmatpush.bf16.msra.mxu0 %v6110_v20  ;;  %1873 = vmatpush.bf16.msra.mxu1 %v6238_v24  ;;  %v6059_v56 = vld [vmem:[#allocation6 + $0x90] sm:$0xf0]  ;;  %v8984_v57 = vld [vmem:[#allocation6 + $0x184] sm:$0xf]  ;;  %v6462_v58 = vor.u32 %v9052_v50, %v6459_v51 }
  0x74   :  { %1886 = vmatpush.bf16.msra.mxu2 %v6366_v26  ;;  %1855 = vmatmul.bf16.vlgmr.msrb.gmra.mxu3 %v10131_v38  ;;  %v6187_v59 = vld [vmem:[#allocation6 + $0x190] sm:$0xf0]  ;;  %v9016_v60 = vld [vmem:[#allocation6 + $0x284] sm:$0xf]  ;;  %v6062_v0 = vor.u32 %v8952_v55, %v6059_v56 }
  0x75   :  { %1899 = vmatpush.bf16.msra.mxu3 %v6494_v30  ;;  %1842 = vmatmul.bf16.vlgmr.msrb.gmra.mxu2 %v10127_v34  ;;  %v6315_v61 = vld [vmem:[#allocation6 + $0x290] sm:$0xf0]  ;;  %v9048_v62 = vld [vmem:[#allocation6 + $0x384] sm:$0xf]  ;;  %v6190_v1 = vor.u32 %v8984_v57, %v6187_v59 }
  0x76   :  { %v6443_v63 = vld [vmem:[#allocation6 + $0x390] sm:$0xf0]  ;;  %v6318_v2 = vor.u32 %v9016_v60, %v6315_v61  ;;  %v8948_v3 = vld [vmem:[#allocation6 + $0x64] sm:$0xf] }
  0x77   :  { %1861 = vmatpush.bf16.msra.mxu0 %v6094_v39  ;;  %1874 = vmatpush.bf16.msra.mxu1 %v6222_v41  ;;  %v6043_v4 = vld [vmem:[#allocation6 + $0x70] sm:$0xf0]  ;;  %v8980_v5 = vld [vmem:[#allocation6 + $0x164] sm:$0xf]  ;;  %v6446_v6 = vor.u32 %v9048_v62, %v6443_v63 }
  0x78   :  { %1887 = vmatpush.bf16.msra.mxu2 %v6350_v42  ;;  %v6171_v7 = vld [vmem:[#allocation6 + $0x170] sm:$0xf0]  ;;  %v9012_v10 = vld [vmem:[#allocation6 + $0x264] sm:$0xf]  ;;  %v6046_v14 = vor.u32 %v8948_v3, %v6043_v4 }
  0x79   :  { %1900 = vmatpush.bf16.msra.mxu3 %v6478_v46  ;;  %v6299_v11 = vld [vmem:[#allocation6 + $0x270] sm:$0xf0]  ;;  %v9044_v12 = vld [vmem:[#allocation6 + $0x364] sm:$0xf]  ;;  %v6174_v16 = vor.u32 %v8980_v5, %v6171_v7 }
  0x7a   :  { %v6427_v13 = vld [vmem:[#allocation6 + $0x370] sm:$0xf0]  ;;  %v6302_v17 = vor.u32 %v9012_v10, %v6299_v11  ;;  %v8944_v18 = vld [vmem:[#allocation6 + $0x44] sm:$0xf] }
  0x7b   :  { %1862 = vmatpush.bf16.msra.mxu0 %v6078_v52  ;;  %1875 = vmatpush.bf16.msra.mxu1 %v6206_v53  ;;  %v6027_v19 = vld [vmem:[#allocation6 + $0x50] sm:$0xf0]  ;;  %v8976_v20 = vld [vmem:[#allocation6 + $0x144] sm:$0xf]  ;;  %v6430_v21 = vor.u32 %v9044_v12, %v6427_v13 }
  0x7c   :  { %1888 = vmatpush.bf16.msra.mxu2 %v6334_v54  ;;  %v6155_v22 = vld [vmem:[#allocation6 + $0x150] sm:$0xf0]  ;;  %v9008_v23 = vld [vmem:[#allocation6 + $0x244] sm:$0xf]  ;;  %v6030_v28 = vor.u32 %v8944_v18, %v6027_v19 }
  0x7d   :  { %1901 = vmatpush.bf16.msra.mxu3 %v6462_v58  ;;  %v6283_v24 = vld [vmem:[#allocation6 + $0x250] sm:$0xf0]  ;;  %v9040_v26 = vld [vmem:[#allocation6 + $0x344] sm:$0xf]  ;;  %v6158_v29 = vor.u32 %v8976_v20, %v6155_v22 }
  0x7e   :  { %v6411_v27 = vld [vmem:[#allocation6 + $0x350] sm:$0xf0]  ;;  %v6286_v30 = vor.u32 %v9008_v23, %v6283_v24  ;;  %v8940_v31 = vld [vmem:[#allocation6 + $0x24] sm:$0xf] }
  0x7f   :  { %1863 = vmatpush.bf16.msra.mxu0 %v6062_v0  ;;  %1876 = vmatpush.bf16.msra.mxu1 %v6190_v1  ;;  %v6011_v32 = vld [vmem:[#allocation6 + $0x30] sm:$0xf0]  ;;  %v8972_v33 = vld [vmem:[#allocation6 + $0x124] sm:$0xf]  ;;  %v6414_v35 = vor.u32 %v9040_v26, %v6411_v27 }
  0x80   :  { %1889 = vmatpush.bf16.msra.mxu2 %v6318_v2  ;;  %v6139_v36 = vld [vmem:[#allocation6 + $0x130] sm:$0xf0]  ;;  %v9004_v39 = vld [vmem:[#allocation6 + $0x224] sm:$0xf]  ;;  %v6014_v44 = vor.u32 %v8940_v31, %v6011_v32 }
  0x81   :  { %1902 = vmatpush.bf16.msra.mxu3 %v6446_v6  ;;  %v6267_v41 = vld [vmem:[#allocation6 + $0x230] sm:$0xf0]  ;;  %v9036_v42 = vld [vmem:[#allocation6 + $0x324] sm:$0xf]  ;;  %v6142_v47 = vor.u32 %v8972_v33, %v6139_v36 }
  0x82   :  { %v6395_v43 = vld [vmem:[#allocation6 + $0x330] sm:$0xf0]  ;;  %v8936_v45 = vld [vmem:[#allocation6 + $0x4] sm:$0xf]  ;;  %v6270_v48 = vor.u32 %v9004_v39, %v6267_v41 }
  0x83   :  { %1864 = vmatpush.bf16.msra.mxu0 %v6046_v14  ;;  %1877 = vmatpush.bf16.msra.mxu1 %v6174_v16  ;;  %v5995_v46 = vld [vmem:[#allocation6 + $0x10] sm:$0xf0]  ;;  %v8968_v49 = vld [vmem:[#allocation6 + $0x104] sm:$0xf]  ;;  %v6398_v52 = vor.u32 %v9036_v42, %v6395_v43 }
  0x84   :  { %1890 = vmatpush.bf16.msra.mxu2 %v6302_v17  ;;  %v6123_v50 = vld [vmem:[#allocation6 + $0x110] sm:$0xf0]  ;;  %v9000_v51 = vld [vmem:[#allocation6 + $0x204] sm:$0xf]  ;;  %v5998_v59 = vor.u32 %v8936_v45, %v5995_v46 }
  0x85   :  { %1903 = vmatpush.bf16.msra.mxu3 %v6430_v21  ;;  %v6251_v53 = vld [vmem:[#allocation6 + $0x210] sm:$0xf0]  ;;  %v9032_v54 = vld [vmem:[#allocation6 + $0x304] sm:$0xf]  ;;  %v6126_v63 = vor.u32 %v8968_v49, %v6123_v50 }
  0x86   :  { %v6379_v55 = vld [vmem:[#allocation6 + $0x310] sm:$0xf0]  ;;  %v9092_v56 = vld [vmem:[#allocation6 + $0x4e4] sm:$0xf]  ;;  %v6254_v0 = vor.u32 %v9000_v51, %v6251_v53 }
  0x87   :  { %1865 = vmatpush.bf16.msra.mxu0 %v6030_v28  ;;  %1878 = vmatpush.bf16.msra.mxu1 %v6158_v29  ;;  %v6619_v57 = vld [vmem:[#allocation6 + $0x4f0] sm:$0xf0]  ;;  %v9124_v58 = vld [vmem:[#allocation6 + $0x5e4] sm:$0xf]  ;;  %v6382_v3 = vor.u32 %v9032_v54, %v6379_v55 }
  0x88   :  { %1891 = vmatpush.bf16.msra.mxu2 %v6286_v30  ;;  %v6747_v60 = vld [vmem:[#allocation6 + $0x5f0] sm:$0xf0]  ;;  %v9156_v61 = vld [vmem:[#allocation6 + $0x6e4] sm:$0xf]  ;;  %v6622_v4 = vor.u32 %v9092_v56, %v6619_v57 }
  0x89   :  { %1904 = vmatpush.bf16.msra.mxu3 %v6414_v35  ;;  %v6875_v62 = vld [vmem:[#allocation6 + $0x6f0] sm:$0xf0]  ;;  %v9188_v1 = vld [vmem:[#allocation6 + $0x7e4] sm:$0xf]  ;;  %v6750_v5 = vor.u32 %v9124_v58, %v6747_v60 }
  0x8a   :  { %v7003_v2 = vld [vmem:[#allocation6 + $0x7f0] sm:$0xf0]  ;;  %v6878_v6 = vor.u32 %v9156_v61, %v6875_v62  ;;  %v9088_v7 = vld [vmem:[#allocation6 + $0x4c4] sm:$0xf] }
  0x8b   :  { %1866 = vmatpush.bf16.msra.mxu0 %v6014_v44  ;;  %1879 = vmatpush.bf16.msra.mxu1 %v6142_v47  ;;  %v6603_v10 = vld [vmem:[#allocation6 + $0x4d0] sm:$0xf0]  ;;  %v9120_v11 = vld [vmem:[#allocation6 + $0x5c4] sm:$0xf]  ;;  %v7006_v12 = vor.u32 %v9188_v1, %v7003_v2 }
  0x8c   :  { %1892 = vmatpush.bf16.msra.mxu2 %v6270_v48  ;;  %v6731_v13 = vld [vmem:[#allocation6 + $0x5d0] sm:$0xf0]  ;;  %v9152_v14 = vld [vmem:[#allocation6 + $0x6c4] sm:$0xf]  ;;  %v6606_v19 = vor.u32 %v9088_v7, %v6603_v10 }
  0x8d   :  { %1905 = vmatpush.bf16.msra.mxu3 %v6398_v52  ;;  %v6859_v16 = vld [vmem:[#allocation6 + $0x6d0] sm:$0xf0]  ;;  %v9184_v17 = vld [vmem:[#allocation6 + $0x7c4] sm:$0xf]  ;;  %v6734_v20 = vor.u32 %v9120_v11, %v6731_v13 }
  0x8e   :  { %v6987_v18 = vld [vmem:[#allocation6 + $0x7d0] sm:$0xf0]  ;;  %v6862_v21 = vor.u32 %v9152_v14, %v6859_v16  ;;  %v9084_v22 = vld [vmem:[#allocation6 + $0x4a4] sm:$0xf] }
  0x8f   :  { %1867 = vmatpush.bf16.msra.mxu0 %v5998_v59  ;;  %1880 = vmatpush.bf16.msra.mxu1 %v6126_v63  ;;  %v6587_v23 = vld [vmem:[#allocation6 + $0x4b0] sm:$0xf0]  ;;  %v9116_v24 = vld [vmem:[#allocation6 + $0x5a4] sm:$0xf]  ;;  %v6990_v26 = vor.u32 %v9184_v17, %v6987_v18 }
  0x90   :  { %1893 = vmatpush.bf16.msra.mxu2 %v6254_v0  ;;  %v6715_v27 = vld [vmem:[#allocation6 + $0x5b0] sm:$0xf0]  ;;  %v9148_v28 = vld [vmem:[#allocation6 + $0x6a4] sm:$0xf]  ;;  %v6590_v32 = vor.u32 %v9084_v22, %v6587_v23 }
  0x91   :  { %1906 = vmatpush.bf16.msra.mxu3 %v6382_v3  ;;  %v6843_v29 = vld [vmem:[#allocation6 + $0x6b0] sm:$0xf0]  ;;  %v9180_v30 = vld [vmem:[#allocation6 + $0x7a4] sm:$0xf]  ;;  %v6718_v33 = vor.u32 %v9116_v24, %v6715_v27 }
  0x92   :  { %v6971_v31 = vld [vmem:[#allocation6 + $0x7b0] sm:$0xf0]  ;;  %1868 = vmatmul.bf16.vlgmr.msra.gmra.mxu0 %v10117_v9  ;;  %1881 = vmatmul.bf16.vlgmr.msra.gmra.mxu1 %v10124_v25  ;;  %v6846_v35 = vor.u32 %v9148_v28, %v6843_v29  ;;  %v9080_v36 = vld [vmem:[#allocation6 + $0x484] sm:$0xf] }
  0x93   :  { %1912 = vmatpush.bf16.msrb.mxu0 %v6622_v4  ;;  %1925 = vmatpush.bf16.msrb.mxu1 %v6750_v5  ;;  %v6571_v39 = vld [vmem:[#allocation6 + $0x490] sm:$0xf0]  ;;  %v9112_v41 = vld [vmem:[#allocation6 + $0x584] sm:$0xf]  ;;  %v6974_v42 = vor.u32 %v9180_v30, %v6971_v31 }
  0x94   :  { %1938 = vmatpush.bf16.msrb.mxu2 %v6878_v6  ;;  %1907 = vmatmul.bf16.vlgmr.msra.gmra.mxu3 %v10119_v15  ;;  %v6699_v43 = vld [vmem:[#allocation6 + $0x590] sm:$0xf0]  ;;  %v9144_v44 = vld [vmem:[#allocation6 + $0x684] sm:$0xf]  ;;  %v6574_v48 = vor.u32 %v9080_v36, %v6571_v39  ;;  %v6113_v39 = vld [vmem:[#allocation6 + $0xe8] sm:$0xf] }
  0x95   :  { %1951 = vmatpush.bf16.msrb.mxu3 %v7006_v12  ;;  %1894 = vmatmul.bf16.vlgmr.msra.gmra.mxu2 %v10115_v8  ;;  %v6827_v45 = vld [vmem:[#allocation6 + $0x690] sm:$0xf0]  ;;  %v9176_v46 = vld [vmem:[#allocation6 + $0x784] sm:$0xf]  ;;  %v6702_v49 = vor.u32 %v9112_v41, %v6699_v43  ;;  %v8967_v41 = vld [vmem:[#allocation6 + $0xf4] sm:$0xf0] }
  0x96   :  { %v6955_v47 = vld [vmem:[#allocation6 + $0x790] sm:$0xf0]  ;;  %v6830_v50 = vor.u32 %v9144_v44, %v6827_v45  ;;  %v9076_v51 = vld [vmem:[#allocation6 + $0x464] sm:$0xf]  ;;  %v8999_v44 = vld [vmem:[#allocation6 + $0x1f4] sm:$0xf0] }
  0x97   :  { %1913 = vmatpush.bf16.msrb.mxu0 %v6606_v19  ;;  %1926 = vmatpush.bf16.msrb.mxu1 %v6734_v20  ;;  %v6555_v52 = vld [vmem:[#allocation6 + $0x470] sm:$0xf0]  ;;  %v9108_v53 = vld [vmem:[#allocation6 + $0x564] sm:$0xf]  ;;  %v6958_v54 = vor.u32 %v9176_v46, %v6955_v47  ;;  %v6369_v45 = vld [vmem:[#allocation6 + $0x2e8] sm:$0xf] }
  0x98   :  { %1939 = vmatpush.bf16.msrb.mxu2 %v6862_v21  ;;  %v6683_v55 = vld [vmem:[#allocation6 + $0x570] sm:$0xf0]  ;;  %v9140_v56 = vld [vmem:[#allocation6 + $0x664] sm:$0xf]  ;;  %v6558_v60 = vor.u32 %v9076_v51, %v6555_v52  ;;  %v9031_v46 = vld [vmem:[#allocation6 + $0x2f4] sm:$0xf0]  ;;  %v6114_v52 = vor.u32 %v8967_v41, %v6113_v39 }
  0x99   :  { %1952 = vmatpush.bf16.msrb.mxu3 %v6990_v26  ;;  %v6811_v57 = vld [vmem:[#allocation6 + $0x670] sm:$0xf0]  ;;  %v9172_v58 = vld [vmem:[#allocation6 + $0x764] sm:$0xf]  ;;  %v6686_v61 = vor.u32 %v9108_v53, %v6683_v55  ;;  %v6097_v55 = vld [vmem:[#allocation6 + $0xc8] sm:$0xf] }
  0x9a   :  { %v6939_v59 = vld [vmem:[#allocation6 + $0x770] sm:$0xf0]  ;;  %v6814_v62 = vor.u32 %v9140_v56, %v6811_v57  ;;  %v9072_v63 = vld [vmem:[#allocation6 + $0x444] sm:$0xf]  ;;  %v8963_v56 = vld [vmem:[#allocation6 + $0xd4] sm:$0xf0] }
  0x9b   :  { %1914 = vmatpush.bf16.msrb.mxu0 %v6590_v32  ;;  %1927 = vmatpush.bf16.msrb.mxu1 %v6718_v33  ;;  %v6539_v0 = vld [vmem:[#allocation6 + $0x450] sm:$0xf0]  ;;  %v9104_v1 = vld [vmem:[#allocation6 + $0x544] sm:$0xf]  ;;  %v6942_v2 = vor.u32 %v9172_v58, %v6939_v59  ;;  %v6225_v57 = vld [vmem:[#allocation6 + $0x1c8] sm:$0xf] }
  0x9c   :  { %1940 = vmatpush.bf16.msrb.mxu2 %v6846_v35  ;;  %v6667_v3 = vld [vmem:[#allocation6 + $0x550] sm:$0xf0]  ;;  %v9136_v4 = vld [vmem:[#allocation6 + $0x644] sm:$0xf]  ;;  %v6542_v10 = vor.u32 %v9072_v63, %v6539_v0  ;;  %v8995_v59 = vld [vmem:[#allocation6 + $0x1d4] sm:$0xf0]  ;;  %v6098_v0 = vor.u32 %v8963_v56, %v6097_v55 }
  0x9d   :  { %1953 = vmatpush.bf16.msrb.mxu3 %v6974_v42  ;;  %v6795_v5 = vld [vmem:[#allocation6 + $0x650] sm:$0xf0]  ;;  %v9168_v6 = vld [vmem:[#allocation6 + $0x744] sm:$0xf]  ;;  %v6670_v11 = vor.u32 %v9104_v1, %v6667_v3  ;;  %v6241_v42 = vld [vmem:[#allocation6 + $0x1e8] sm:$0xf]  ;;  %v6226_v1 = vor.u32 %v8995_v59, %v6225_v57 }
  0x9e   :  { %v6923_v7 = vld [vmem:[#allocation6 + $0x750] sm:$0xf0]  ;;  %v6798_v12 = vor.u32 %v9136_v4, %v6795_v5  ;;  %v9068_v13 = vld [vmem:[#allocation6 + $0x424] sm:$0xf]  ;;  %v6242_v53 = vor.u32 %v8999_v44, %v6241_v42  ;;  %v9059_v63 = vld [vmem:[#allocation6 + $0x3d4] sm:$0xf0] }
  0x9f   :  { %1915 = vmatpush.bf16.msrb.mxu0 %v6574_v48  ;;  %1928 = vmatpush.bf16.msrb.mxu1 %v6702_v49  ;;  %v6523_v14 = vld [vmem:[#allocation6 + $0x430] sm:$0xf0]  ;;  %v9100_v16 = vld [vmem:[#allocation6 + $0x524] sm:$0xf]  ;;  %v6926_v17 = vor.u32 %v9168_v6, %v6923_v7  ;;  %v6497_v49 = vld [vmem:[#allocation6 + $0x3e8] sm:$0xf] }
  0xa0   :  { %1941 = vmatpush.bf16.msrb.mxu2 %v6830_v50  ;;  %v6651_v18 = vld [vmem:[#allocation6 + $0x530] sm:$0xf0]  ;;  %v9132_v19 = vld [vmem:[#allocation6 + $0x624] sm:$0xf]  ;;  %v6526_v23 = vor.u32 %v9068_v13, %v6523_v14  ;;  %v9063_v50 = vld [vmem:[#allocation6 + $0x3f4] sm:$0xf0] }
  0xa1   :  { %1954 = vmatpush.bf16.msrb.mxu3 %v6958_v54  ;;  %v6779_v20 = vld [vmem:[#allocation6 + $0x630] sm:$0xf0]  ;;  %v9164_v21 = vld [vmem:[#allocation6 + $0x724] sm:$0xf]  ;;  %v6654_v27 = vor.u32 %v9100_v16, %v6651_v18  ;;  %v6370_v54 = vor.u32 %v9031_v46, %v6369_v45  ;;  %v6498_v58 = vor.u32 %v9063_v50, %v6497_v49  ;;  %v6081_v3 = vld [vmem:[#allocation6 + $0xa8] sm:$0xf] }
  0xa2   :  { %v6907_v22 = vld [vmem:[#allocation6 + $0x730] sm:$0xf0]  ;;  %v9064_v24 = vld [vmem:[#allocation6 + $0x404] sm:$0xf]  ;;  %v6782_v28 = vor.u32 %v9132_v19, %v6779_v20  ;;  %v8959_v4 = vld [vmem:[#allocation6 + $0xb4] sm:$0xf0] }
  0xa3   :  { %1916 = vmatpush.bf16.msrb.mxu0 %v6558_v60  ;;  %1929 = vmatpush.bf16.msrb.mxu1 %v6686_v61  ;;  %v6507_v26 = vld [vmem:[#allocation6 + $0x410] sm:$0xf0]  ;;  %v9096_v29 = vld [vmem:[#allocation6 + $0x504] sm:$0xf]  ;;  %v6910_v32 = vor.u32 %v9164_v21, %v6907_v22  ;;  %v6353_v60 = vld [vmem:[#allocation6 + $0x2c8] sm:$0xf]  ;;  %v6082_v14 = vor.u32 %v8959_v4, %v6081_v3 }
  0xa4   :  { %1942 = vmatpush.bf16.msrb.mxu2 %v6814_v62  ;;  %v6635_v30 = vld [vmem:[#allocation6 + $0x510] sm:$0xf0]  ;;  %v9128_v31 = vld [vmem:[#allocation6 + $0x604] sm:$0xf]  ;;  %v6510_v43 = vor.u32 %v9064_v24, %v6507_v26  ;;  %v9027_v61 = vld [vmem:[#allocation6 + $0x2d4] sm:$0xf0] }
  0xa5   :  { %1955 = vmatpush.bf16.msrb.mxu3 %v6942_v2  ;;  %v6763_v33 = vld [vmem:[#allocation6 + $0x610] sm:$0xf0]  ;;  %v9160_v35 = vld [vmem:[#allocation6 + $0x704] sm:$0xf]  ;;  %v6638_v47 = vor.u32 %v9096_v29, %v6635_v30  ;;  %v6481_v62 = vld [vmem:[#allocation6 + $0x3c8] sm:$0xf]  ;;  %v6354_v2 = vor.u32 %v9027_v61, %v6353_v60 }
  0xa6   :  { %v6891_v36 = vld [vmem:[#allocation6 + $0x710] sm:$0xf0]  ;;  %v6766_v48 = vor.u32 %v9128_v31, %v6763_v33  ;;  %v6209_v5 = vld [vmem:[#allocation6 + $0x1a8] sm:$0xf]  ;;  %v6482_v6 = vor.u32 %v9059_v63, %v6481_v62  ;;  %v8991_v7 = vld [vmem:[#allocation6 + $0x1b4] sm:$0xf0] }
  0xa7   :  { %1917 = vmatpush.bf16.msrb.mxu0 %v6542_v10  ;;  %1930 = vmatpush.bf16.msrb.mxu1 %v6670_v11  ;;  %v6894_v51 = vor.u32 %v9160_v35, %v6891_v36  ;;  %v6337_v10 = vld [vmem:[#allocation6 + $0x2a8] sm:$0xf]  ;;  %v9023_v11 = vld [vmem:[#allocation6 + $0x2b4] sm:$0xf0]  ;;  %v6210_v16 = vor.u32 %v8991_v7, %v6209_v5 }
  0xa8   :  { %1943 = vmatpush.bf16.msrb.mxu2 %v6798_v12  ;;  %v6465_v12 = vld [vmem:[#allocation6 + $0x3a8] sm:$0xf]  ;;  %v9055_v13 = vld [vmem:[#allocation6 + $0x3b4] sm:$0xf0] }
  0xa9   :  { %1956 = vmatpush.bf16.msrb.mxu3 %v6926_v17  ;;  %v6338_v17 = vor.u32 %v9023_v11, %v6337_v10  ;;  %v6065_v18 = vld [vmem:[#allocation6 + $0x88] sm:$0xf]  ;;  %v8955_v19 = vld [vmem:[#allocation6 + $0x94] sm:$0xf0]  ;;  %v6466_v21 = vor.u32 %v9055_v13, %v6465_v12 }
  0xaa   :  { %v6193_v20 = vld [vmem:[#allocation6 + $0x188] sm:$0xf]  ;;  %v8987_v22 = vld [vmem:[#allocation6 + $0x194] sm:$0xf0] }
  0xab   :  { %1918 = vmatpush.bf16.msrb.mxu0 %v6526_v23  ;;  %1931 = vmatpush.bf16.msrb.mxu1 %v6654_v27  ;;  %v6321_v23 = vld [vmem:[#allocation6 + $0x288] sm:$0xf]  ;;  %v9019_v24 = vld [vmem:[#allocation6 + $0x294] sm:$0xf0]  ;;  %v6194_v29 = vor.u32 %v8987_v22, %v6193_v20 }
  0xac   :  { %1944 = vmatpush.bf16.msrb.mxu2 %v6782_v28  ;;  %v6449_v26 = vld [vmem:[#allocation6 + $0x388] sm:$0xf]  ;;  %v9051_v27 = vld [vmem:[#allocation6 + $0x394] sm:$0xf0]  ;;  %v6066_v28 = vor.u32 %v8955_v19, %v6065_v18  ;;  %v6322_v30 = vor.u32 %v9019_v24, %v6321_v23 }
  0xad   :  { %1957 = vmatpush.bf16.msrb.mxu3 %v6910_v32  ;;  %v6049_v31 = vld [vmem:[#allocation6 + $0x68] sm:$0xf]  ;;  %v8951_v32 = vld [vmem:[#allocation6 + $0x74] sm:$0xf0]  ;;  %v6450_v35 = vor.u32 %v9051_v27, %v6449_v26 }
  0xae   :  { %v6177_v33 = vld [vmem:[#allocation6 + $0x168] sm:$0xf]  ;;  %v8983_v36 = vld [vmem:[#allocation6 + $0x174] sm:$0xf0]  ;;  %v6050_v44 = vor.u32 %v8951_v32, %v6049_v31 }
  0xaf   :  { %1919 = vmatpush.bf16.msrb.mxu0 %v6510_v43  ;;  %1932 = vmatpush.bf16.msrb.mxu1 %v6638_v47  ;;  %v6305_v39 = vld [vmem:[#allocation6 + $0x268] sm:$0xf]  ;;  %v9015_v41 = vld [vmem:[#allocation6 + $0x274] sm:$0xf0]  ;;  %v6178_v45 = vor.u32 %v8983_v36, %v6177_v33 }
  0xb0   :  { %1945 = vmatpush.bf16.msrb.mxu2 %v6766_v48  ;;  %v6433_v42 = vld [vmem:[#allocation6 + $0x368] sm:$0xf]  ;;  %v9047_v43 = vld [vmem:[#allocation6 + $0x374] sm:$0xf0]  ;;  %v6306_v46 = vor.u32 %v9015_v41, %v6305_v39 }
  0xb1   :  { %1958 = vmatpush.bf16.msrb.mxu3 %v6894_v51  ;;  %v6033_v47 = vld [vmem:[#allocation6 + $0x48] sm:$0xf]  ;;  %v8947_v48 = vld [vmem:[#allocation6 + $0x54] sm:$0xf0]  ;;  %v6434_v50 = vor.u32 %v9047_v43, %v6433_v42 }
  0xb2   :  { %1920 = vmatmul.bf16.vlgmr.msrb.gmra.mxu0 %v10129_v37  ;;  %1933 = vmatmul.bf16.vlgmr.msrb.gmra.mxu1 %v10133_v40  ;;  %v6161_v49 = vld [vmem:[#allocation6 + $0x148] sm:$0xf]  ;;  %v8979_v51 = vld [vmem:[#allocation6 + $0x154] sm:$0xf0]  ;;  %v6034_v56 = vor.u32 %v8947_v48, %v6033_v47 }
  0xb3   :  { %1964 = vmatpush.bf16.msra.mxu0 %v6114_v52  ;;  %1977 = vmatpush.bf16.msra.mxu1 %v6242_v53  ;;  %v6289_v52 = vld [vmem:[#allocation6 + $0x248] sm:$0xf]  ;;  %v9011_v53 = vld [vmem:[#allocation6 + $0x254] sm:$0xf0]  ;;  %v6162_v57 = vor.u32 %v8979_v51, %v6161_v49 }
  0xb4   :  { %1990 = vmatpush.bf16.msra.mxu2 %v6370_v54  ;;  %1959 = vmatmul.bf16.vlgmr.msrb.gmra.mxu3 %v10131_v38  ;;  %v6417_v54 = vld [vmem:[#allocation6 + $0x348] sm:$0xf]  ;;  %v9043_v55 = vld [vmem:[#allocation6 + $0x354] sm:$0xf0] }
  0xb5   :  { %2003 = vmatpush.bf16.msra.mxu3 %v6498_v58  ;;  %1946 = vmatmul.bf16.vlgmr.msrb.gmra.mxu2 %v10127_v34  ;;  %v6290_v58 = vor.u32 %v9011_v53, %v6289_v52  ;;  %v6017_v59 = vld [vmem:[#allocation6 + $0x28] sm:$0xf]  ;;  %v8943_v60 = vld [vmem:[#allocation6 + $0x34] sm:$0xf0]  ;;  %v6418_v62 = vor.u32 %v9043_v55, %v6417_v54 }
  0xb6   :  { %v6145_v61 = vld [vmem:[#allocation6 + $0x128] sm:$0xf]  ;;  %v8975_v63 = vld [vmem:[#allocation6 + $0x134] sm:$0xf0]  ;;  %v6018_v4 = vor.u32 %v8943_v60, %v6017_v59 }
  0xb7   :  { %1965 = vmatpush.bf16.msra.mxu0 %v6098_v0  ;;  %1978 = vmatpush.bf16.msra.mxu1 %v6226_v1  ;;  %v6273_v0 = vld [vmem:[#allocation6 + $0x228] sm:$0xf]  ;;  %v9007_v1 = vld [vmem:[#allocation6 + $0x234] sm:$0xf0]  ;;  %v6146_v7 = vor.u32 %v8975_v63, %v6145_v61 }
  0xb8   :  { %1991 = vmatpush.bf16.msra.mxu2 %v6354_v2  ;;  %v6401_v2 = vld [vmem:[#allocation6 + $0x328] sm:$0xf]  ;;  %v9039_v3 = vld [vmem:[#allocation6 + $0x334] sm:$0xf0]  ;;  %v6274_v10 = vor.u32 %v9007_v1, %v6273_v0 }
  0xb9   :  { %2004 = vmatpush.bf16.msra.mxu3 %v6482_v6  ;;  %v6001_v5 = vld [vmem:[#allocation6 + $0x8] sm:$0xf]  ;;  %v8939_v6 = vld [vmem:[#allocation6 + $0x14] sm:$0xf0] }
  0xba   :  { %v6129_v11 = vld [vmem:[#allocation6 + $0x108] sm:$0xf]  ;;  %v8971_v12 = vld [vmem:[#allocation6 + $0x114] sm:$0xf0]  ;;  %v6002_v22 = vor.u32 %v8939_v6, %v6001_v5  ;;  %v10151_v6 = vld [vmem:[#allocation8] sm:$0xf] }
  0xbb   :  { %1966 = vmatpush.bf16.msra.mxu0 %v6082_v14  ;;  %1979 = vmatpush.bf16.msra.mxu1 %v6210_v16  ;;  %v6257_v13 = vld [vmem:[#allocation6 + $0x208] sm:$0xf]  ;;  %v6402_v14 = vor.u32 %v9039_v3, %v6401_v2  ;;  %v9003_v16 = vld [vmem:[#allocation6 + $0x214] sm:$0xf0]  ;;  %v6130_v27 = vor.u32 %v8971_v12, %v6129_v11 }
  0xbc   :  { %1992 = vmatpush.bf16.msra.mxu2 %v6338_v17  ;;  %v6385_v17 = vld [vmem:[#allocation6 + $0x308] sm:$0xf]  ;;  %v9035_v18 = vld [vmem:[#allocation6 + $0x314] sm:$0xf0] }
  0xbd   :  { %2005 = vmatpush.bf16.msra.mxu3 %v6466_v21  ;;  %v6625_v19 = vld [vmem:[#allocation6 + $0x4e8] sm:$0xf]  ;;  %v9095_v20 = vld [vmem:[#allocation6 + $0x4f4] sm:$0xf0]  ;;  %v6386_v31 = vor.u32 %v9035_v18, %v6385_v17  ;;  %v468_v18 = vperm.slane %v10151_v6, 0 }
  0xbe   :  { %v6753_v21 = vld [vmem:[#allocation6 + $0x5e8] sm:$0xf]  ;;  %v9127_v23 = vld [vmem:[#allocation6 + $0x5f4] sm:$0xf0]  ;;  %v6626_v32 = vor.u32 %v9095_v20, %v6625_v19 }
  0xbf   :  { %1967 = vmatpush.bf16.msra.mxu0 %v6066_v28  ;;  %1980 = vmatpush.bf16.msra.mxu1 %v6194_v29  ;;  %v6881_v24 = vld [vmem:[#allocation6 + $0x6e8] sm:$0xf]  ;;  %v9159_v26 = vld [vmem:[#allocation6 + $0x6f4] sm:$0xf0]  ;;  %v6258_v28 = vor.u32 %v9003_v16, %v6257_v13  ;;  %v6754_v33 = vor.u32 %v9127_v23, %v6753_v21 }
  0xc0   :  { %1993 = vmatpush.bf16.msra.mxu2 %v6322_v30  ;;  %v7009_v29 = vld [vmem:[#allocation6 + $0x7e8] sm:$0xf]  ;;  %v9191_v30 = vld [vmem:[#allocation6 + $0x7f4] sm:$0xf0] }
  0xc1   :  { %2006 = vmatpush.bf16.msra.mxu3 %v6450_v35  ;;  %v6882_v35 = vor.u32 %v9159_v26, %v6881_v24  ;;  %v6609_v36 = vld [vmem:[#allocation6 + $0x4c8] sm:$0xf]  ;;  %v9091_v39 = vld [vmem:[#allocation6 + $0x4d4] sm:$0xf0]  ;;  %v7010_v42 = vor.u32 %v9191_v30, %v7009_v29 }
  0xc2   :  { %v6737_v41 = vld [vmem:[#allocation6 + $0x5c8] sm:$0xf]  ;;  %v9123_v43 = vld [vmem:[#allocation6 + $0x5d4] sm:$0xf0]  ;;  %v6610_v48 = vor.u32 %v9091_v39, %v6609_v36 }
  0xc3   :  { %1968 = vmatpush.bf16.msra.mxu0 %v6050_v44  ;;  %1981 = vmatpush.bf16.msra.mxu1 %v6178_v45  ;;  %v6865_v44 = vld [vmem:[#allocation6 + $0x6c8] sm:$0xf]  ;;  %v9155_v45 = vld [vmem:[#allocation6 + $0x6d4] sm:$0xf0]  ;;  %v6738_v49 = vor.u32 %v9123_v43, %v6737_v41 }
  0xc4   :  { %1994 = vmatpush.bf16.msra.mxu2 %v6306_v46  ;;  %v6993_v46 = vld [vmem:[#allocation6 + $0x7c8] sm:$0xf]  ;;  %v9187_v47 = vld [vmem:[#allocation6 + $0x7d4] sm:$0xf0] }
  0xc5   :  { %2007 = vmatpush.bf16.msra.mxu3 %v6434_v50  ;;  %v6866_v50 = vor.u32 %v9155_v45, %v6865_v44  ;;  %v6593_v51 = vld [vmem:[#allocation6 + $0x4a8] sm:$0xf]  ;;  %v9087_v52 = vld [vmem:[#allocation6 + $0x4b4] sm:$0xf0]  ;;  %v6994_v54 = vor.u32 %v9187_v47, %v6993_v46 }
  0xc6   :  { %v6721_v53 = vld [vmem:[#allocation6 + $0x5a8] sm:$0xf]  ;;  %v9119_v55 = vld [vmem:[#allocation6 + $0x5b4] sm:$0xf0]  ;;  %v6594_v60 = vor.u32 %v9087_v52, %v6593_v51 }
  0xc7   :  { %1969 = vmatpush.bf16.msra.mxu0 %v6034_v56  ;;  %1982 = vmatpush.bf16.msra.mxu1 %v6162_v57  ;;  %v6849_v56 = vld [vmem:[#allocation6 + $0x6a8] sm:$0xf]  ;;  %v9151_v57 = vld [vmem:[#allocation6 + $0x6b4] sm:$0xf0] }
  0xc8   :  { %1995 = vmatpush.bf16.msra.mxu2 %v6290_v58  ;;  %v6977_v58 = vld [vmem:[#allocation6 + $0x7a8] sm:$0xf]  ;;  %v9183_v59 = vld [vmem:[#allocation6 + $0x7b4] sm:$0xf0]  ;;  %v6850_v63 = vor.u32 %v9151_v57, %v6849_v56 }
  0xc9   :  { %2008 = vmatpush.bf16.msra.mxu3 %v6418_v62  ;;  %v6577_v61 = vld [vmem:[#allocation6 + $0x488] sm:$0xf]  ;;  %v6722_v62 = vor.u32 %v9119_v55, %v6721_v53  ;;  %v9083_v0 = vld [vmem:[#allocation6 + $0x494] sm:$0xf0]  ;;  %v6978_v3 = vor.u32 %v9183_v59, %v6977_v58 }
  0xca   :  { %v6705_v1 = vld [vmem:[#allocation6 + $0x588] sm:$0xf]  ;;  %v9115_v2 = vld [vmem:[#allocation6 + $0x594] sm:$0xf0]  ;;  %v6578_v11 = vor.u32 %v9083_v0, %v6577_v61 }
  0xcb   :  { %1970 = vmatpush.bf16.msra.mxu0 %v6018_v4  ;;  %1983 = vmatpush.bf16.msra.mxu1 %v6146_v7  ;;  %v6833_v4 = vld [vmem:[#allocation6 + $0x688] sm:$0xf]  ;;  %v9147_v5 = vld [vmem:[#allocation6 + $0x694] sm:$0xf0]  ;;  %v6706_v13 = vor.u32 %v9115_v2, %v6705_v1 }
  0xcc   :  { %1996 = vmatpush.bf16.msra.mxu2 %v6274_v10  ;;  %v6961_v7 = vld [vmem:[#allocation6 + $0x788] sm:$0xf]  ;;  %v9179_v10 = vld [vmem:[#allocation6 + $0x794] sm:$0xf0] }
  0xcd   :  { %2009 = vmatpush.bf16.msra.mxu3 %v6402_v14  ;;  %v6561_v12 = vld [vmem:[#allocation6 + $0x468] sm:$0xf]  ;;  %v6834_v14 = vor.u32 %v9147_v5, %v6833_v4  ;;  %v9079_v16 = vld [vmem:[#allocation6 + $0x474] sm:$0xf0]  ;;  %v6962_v19 = vor.u32 %v9179_v10, %v6961_v7 }
  0xce   :  { %v6689_v17 = vld [vmem:[#allocation6 + $0x568] sm:$0xf]  ;;  %v9111_v20 = vld [vmem:[#allocation6 + $0x574] sm:$0xf0]  ;;  %v6562_v26 = vor.u32 %v9079_v16, %v6561_v12  ;;  %v1778_v45 = vpop.f32.mrf.mxu1  ;;  %v6115_v16 = vld [vmem:[#allocation6 + $0xf8] sm:$0xf0] }
  0xcf   :  { %1971 = vmatpush.bf16.msra.mxu0 %v6002_v22  ;;  %1984 = vmatpush.bf16.msra.mxu1 %v6130_v27  ;;  %v6817_v21 = vld [vmem:[#allocation6 + $0x668] sm:$0xf]  ;;  %v9143_v22 = vld [vmem:[#allocation6 + $0x674] sm:$0xf0] }
  0xd0   :  { %1997 = vmatpush.bf16.msra.mxu2 %v6258_v28  ;;  %v6945_v23 = vld [vmem:[#allocation6 + $0x768] sm:$0xf]  ;;  %v9175_v24 = vld [vmem:[#allocation6 + $0x774] sm:$0xf0]  ;;  %v6690_v28 = vor.u32 %v9111_v20, %v6689_v17  ;;  %v6818_v29 = vor.u32 %v9143_v22, %v6817_v21  ;;  %v8997_v17 = vld [vmem:[#allocation6 + $0x1ec] sm:$0xf] }
  0xd1   :  { %2010 = vmatpush.bf16.msra.mxu3 %v6386_v31  ;;  %v6545_v30 = vld [vmem:[#allocation6 + $0x448] sm:$0xf]  ;;  %v9075_v31 = vld [vmem:[#allocation6 + $0x454] sm:$0xf0]  ;;  %v9029_v20 = vld [vmem:[#allocation6 + $0x2ec] sm:$0xf] }
  0xd2   :  { %1972 = vmatmul.bf16.vlgmr.msra.gmra.mxu0 %v10117_v9  ;;  %1985 = vmatmul.bf16.vlgmr.msra.gmra.mxu1 %v10124_v25  ;;  %v9107_v36 = vld [vmem:[#allocation6 + $0x554] sm:$0xf0]  ;;  %v6801_v39 = vld [vmem:[#allocation6 + $0x648] sm:$0xf]  ;;  %v6546_v44 = vor.u32 %v9075_v31, %v6545_v30  ;;  %v6371_v21 = vld [vmem:[#allocation6 + $0x2f8] sm:$0xf0] }
  0xd3   :  { %2016 = vmatpush.bf16.msrb.mxu0 %v6626_v32  ;;  %2029 = vmatpush.bf16.msrb.mxu1 %v6754_v33  ;;  %v6673_v32 = vld [vmem:[#allocation6 + $0x548] sm:$0xf]  ;;  %v9139_v41 = vld [vmem:[#allocation6 + $0x654] sm:$0xf0] }
  0xd4   :  { %2042 = vmatpush.bf16.msrb.mxu2 %v6882_v35  ;;  %2011 = vmatmul.bf16.vlgmr.msra.gmra.mxu3 %v10119_v15  ;;  %v6946_v35 = vor.u32 %v9175_v24, %v6945_v23  ;;  %v9171_v43 = vld [vmem:[#allocation6 + $0x754] sm:$0xf0]  ;;  %v6674_v46 = vor.u32 %v9107_v36, %v6673_v32  ;;  %v6802_v47 = vor.u32 %v9139_v41, %v6801_v39  ;;  %v6913_v57 = vld [vmem:[#allocation6 + $0x728] sm:$0xf]  ;;  %v8993_v36 = vld [vmem:[#allocation6 + $0x1cc] sm:$0xf] }
  0xd5   :  { %2055 = vmatpush.bf16.msrb.mxu3 %v7010_v42  ;;  %1998 = vmatmul.bf16.vlgmr.msra.gmra.mxu2 %v10115_v8  ;;  %v6929_v42 = vld [vmem:[#allocation6 + $0x748] sm:$0xf]  ;;  %v9103_v53 = vld [vmem:[#allocation6 + $0x534] sm:$0xf0]  ;;  %v6374_v32 = vor.u32 %v9029_v20, %v6371_v21 }
  0xd6   :  { %v6930_v52 = vor.u32 %v9171_v43, %v6929_v42  ;;  %v9135_v55 = vld [vmem:[#allocation6 + $0x634] sm:$0xf0]  ;;  %v6769_v5 = vld [vmem:[#allocation6 + $0x608] sm:$0xf]  ;;  %v1780_v22 = vpop.f32.mrf.mxu1  ;;  %v6227_v42 = vld [vmem:[#allocation6 + $0x1d8] sm:$0xf0] }
  0xd7   :  { %2017 = vmatpush.bf16.msrb.mxu0 %v6610_v48  ;;  %2030 = vmatpush.bf16.msrb.mxu1 %v6738_v49  ;;  %v6529_v48 = vld [vmem:[#allocation6 + $0x428] sm:$0xf]  ;;  %v9071_v49 = vld [vmem:[#allocation6 + $0x434] sm:$0xf0]  ;;  %v9025_v43 = vld [vmem:[#allocation6 + $0x2cc] sm:$0xf] }
  0xd8   :  { %2043 = vmatpush.bf16.msrb.mxu2 %v6866_v50  ;;  %v6657_v50 = vld [vmem:[#allocation6 + $0x528] sm:$0xf]  ;;  %v9167_v58 = vld [vmem:[#allocation6 + $0x734] sm:$0xf0]  ;;  %v6530_v61 = vor.u32 %v9071_v49, %v6529_v48  ;;  %v6230_v48 = vor.u32 %v8993_v36, %v6227_v42  ;;  %v6179_v22 = vld [vmem:[#allocation6 + $0x178] sm:$0xf0] }
  0xd9   :  { %2056 = vmatpush.bf16.msrb.mxu3 %v6994_v54  ;;  %v6785_v54 = vld [vmem:[#allocation6 + $0x628] sm:$0xf]  ;;  %v6658_v1 = vor.u32 %v9103_v53, %v6657_v50  ;;  %v9099_v4 = vld [vmem:[#allocation6 + $0x514] sm:$0xf0]  ;;  %v6914_v10 = vor.u32 %v9167_v58, %v6913_v57  ;;  %v8957_v50 = vld [vmem:[#allocation6 + $0xac] sm:$0xf] }
  0xda   :  { %v6786_v2 = vor.u32 %v9135_v55, %v6785_v54  ;;  %v6897_v12 = vld [vmem:[#allocation6 + $0x708] sm:$0xf]  ;;  %v6211_v54 = vld [vmem:[#allocation6 + $0x1b8] sm:$0xf0]  ;;  %v9021_v55 = vld [vmem:[#allocation6 + $0x2ac] sm:$0xf] }
  0xdb   :  { %2018 = vmatpush.bf16.msrb.mxu0 %v6594_v60  ;;  %2031 = vmatpush.bf16.msrb.mxu1 %v6722_v62  ;;  %v1765_v27 = vpop.f32.mrf.mxu0  ;;  %v1804_v60 = vpop.f32.mrf.mxu3  ;;  %v6513_v62 = vld [vmem:[#allocation6 + $0x408] sm:$0xf]  ;;  %v9053_v57 = vld [vmem:[#allocation6 + $0x3ac] sm:$0xf]  ;;  %v6467_v58 = vld [vmem:[#allocation6 + $0x3b8] sm:$0xf0] }
  0xdc   :  { %2044 = vmatpush.bf16.msrb.mxu2 %v6850_v63  ;;  %v1766_v33 = vadd.f32 %v1765_v27, %v468_v18  ;;  %v9067_v63 = vld [vmem:[#allocation6 + $0x414] sm:$0xf0]  ;;  %v6499_v27 = vld [vmem:[#allocation6 + $0x3f8] sm:$0xf0] }
  0xdd   :  { %2057 = vmatpush.bf16.msrb.mxu3 %v6978_v3  ;;  %v6641_v3 = vld [vmem:[#allocation6 + $0x508] sm:$0xf]  ;;  %v6514_v18 = vor.u32 %v9067_v63, %v6513_v62  ;;  %v8953_v62 = vld [vmem:[#allocation6 + $0x8c] sm:$0xf]  ;;  %v6067_v63 = vld [vmem:[#allocation6 + $0x98] sm:$0xf0] }
  0xde   :  { %v1779_v51 = vadd.f32 %v1778_v45, %v1766_v33  ;;  %v6642_v23 = vor.u32 %v9099_v4, %v6641_v3  ;;  %v8961_v33 = vld [vmem:[#allocation6 + $0xcc] sm:$0xf]  ;;  %v6323_v4 = vld [vmem:[#allocation6 + $0x298] sm:$0xf0] }
  0xdf   :  { %2019 = vmatpush.bf16.msrb.mxu0 %v6578_v11  ;;  %2032 = vmatpush.bf16.msrb.mxu1 %v6706_v13  ;;  %v9131_v11 = vld [vmem:[#allocation6 + $0x614] sm:$0xf0]  ;;  %v9057_v45 = vld [vmem:[#allocation6 + $0x3cc] sm:$0xf]  ;;  %v6291_v42 = vld [vmem:[#allocation6 + $0x258] sm:$0xf0] }
  0xe0   :  { %2045 = vmatpush.bf16.msrb.mxu2 %v6834_v14  ;;  %v1791_v56 = vpop.f32.mrf.mxu2  ;;  %v9163_v13 = vld [vmem:[#allocation6 + $0x714] sm:$0xf0]  ;;  %v8965_v14 = vld [vmem:[#allocation6 + $0xec] sm:$0xf]  ;;  %v6770_v24 = vor.u32 %v9131_v11, %v6769_v5  ;;  %v6070_v11 = vor.u32 %v8953_v62, %v6067_v63 }
  0xe1   :  { %2058 = vmatpush.bf16.msrb.mxu3 %v6962_v19  ;;  %v1792_v59 = vadd.f32 %v1791_v56, %v1779_v51  ;;  %v6243_v19 = vld [vmem:[#allocation6 + $0x1f8] sm:$0xf0]  ;;  %v9017_v3 = vld [vmem:[#allocation6 + $0x28c] sm:$0xf] }
  0xe2   :  { %v6246_v31 = vor.u32 %v8997_v17, %v6243_v19  ;;  %v6083_v51 = vld [vmem:[#allocation6 + $0xb8] sm:$0xf0]  ;;  %v9049_v5 = vld [vmem:[#allocation6 + $0x38c] sm:$0xf] }
  0xe3   :  { %2020 = vmatpush.bf16.msrb.mxu0 %v6562_v26  ;;  %2033 = vmatpush.bf16.msrb.mxu1 %v6690_v28  ;;  %v1767_v0 = vpop.f32.mrf.mxu0  ;;  %v10154_v7 = vadd.f32 %v1804_v60, %v1792_v59  ;;  %v9061_v26 = vld [vmem:[#allocation6 + $0x3ec] sm:$0xf]  ;;  %v6898_v28 = vor.u32 %v9163_v13, %v6897_v12  ;;  %v1806_v39 = vpop.f32.mrf.mxu3  ;;  %v6339_v56 = vld [vmem:[#allocation6 + $0x2b8] sm:$0xf0]  ;;  %v6086_v59 = vor.u32 %v8957_v50, %v6083_v51 }
  0xe4   :  { %2046 = vmatpush.bf16.msrb.mxu2 %v6818_v29  ;;  %v6118_v29 = vor.u32 %v8965_v14, %v6115_v16  ;;  %v6502_v41 = vor.u32 %v9061_v26, %v6499_v27  ;;  %v8985_v0 = vld [vmem:[#allocation6 + $0x18c] sm:$0xf]  ;;  %v6326_v14 = vor.u32 %v9017_v3, %v6323_v4  ;;  %v6051_v17 = vld [vmem:[#allocation6 + $0x78] sm:$0xf0] }
  0xe5   :  { %2059 = vmatpush.bf16.msrb.mxu3 %v6946_v35  ;;  %v6099_v35 = vld [vmem:[#allocation6 + $0xd8] sm:$0xf0]  ;;  %v8949_v16 = vld [vmem:[#allocation6 + $0x6c] sm:$0xf] }
  0xe6   :  { %v9045_v26 = vld [vmem:[#allocation6 + $0x36c] sm:$0xf]  ;;  %v6435_v27 = vld [vmem:[#allocation6 + $0x378] sm:$0xf0] }
  0xe7   :  { %2021 = vmatpush.bf16.msrb.mxu0 %v6546_v44  ;;  %2034 = vmatpush.bf16.msrb.mxu1 %v6674_v46  ;;  %v6355_v44 = vld [vmem:[#allocation6 + $0x2d8] sm:$0xf0]  ;;  %v8937_v63 = vld [vmem:[#allocation6 + $0xc] sm:$0xf] }
  0xe8   :  { %2047 = vmatpush.bf16.msrb.mxu2 %v6802_v47  ;;  %v1793_v30 = vpop.f32.mrf.mxu2  ;;  %v6483_v46 = vld [vmem:[#allocation6 + $0x3d8] sm:$0xf0]  ;;  %v6102_v47 = vor.u32 %v8961_v33, %v6099_v35  ;;  %v6358_v49 = vor.u32 %v9025_v43, %v6355_v44  ;;  %v8977_v35 = vld [vmem:[#allocation6 + $0x14c] sm:$0xf] }
  0xe9   :  { %2060 = vmatpush.bf16.msrb.mxu3 %v6930_v52  ;;  %v8989_v52 = vld [vmem:[#allocation6 + $0x1ac] sm:$0xf]  ;;  %v6486_v53 = vor.u32 %v9057_v45, %v6483_v46  ;;  %v6035_v33 = vld [vmem:[#allocation6 + $0x58] sm:$0xf0] }
  0xea   :  { %v6214_v60 = vor.u32 %v8989_v52, %v6211_v54  ;;  %v6163_v39 = vld [vmem:[#allocation6 + $0x158] sm:$0xf0]  ;;  %v9041_v45 = vld [vmem:[#allocation6 + $0x34c] sm:$0xf] }
  0xeb   :  { %2022 = vmatpush.bf16.msrb.mxu0 %v6530_v61  ;;  %2035 = vmatpush.bf16.msrb.mxu1 %v6658_v1  ;;  %v6342_v61 = vor.u32 %v9021_v55, %v6339_v56  ;;  %v6470_v1 = vor.u32 %v9053_v57, %v6467_v58  ;;  %v6419_v46 = vld [vmem:[#allocation6 + $0x358] sm:$0xf0]  ;;  %v6166_v50 = vor.u32 %v8977_v35, %v6163_v39  ;;  %v8941_v52 = vld [vmem:[#allocation6 + $0x2c] sm:$0xf] }
  0xec   :  { %2048 = vmatpush.bf16.msrb.mxu2 %v6786_v2  ;;  %v6195_v2 = vld [vmem:[#allocation6 + $0x198] sm:$0xf0]  ;;  %v8973_v54 = vld [vmem:[#allocation6 + $0x12c] sm:$0xf]  ;;  %v6422_v56 = vor.u32 %v9041_v45, %v6419_v46 }
  0xed   :  { %2061 = vmatpush.bf16.msrb.mxu3 %v6914_v10  ;;  %v6451_v10 = vld [vmem:[#allocation6 + $0x398] sm:$0xf0]  ;;  %v6198_v13 = vor.u32 %v8985_v0, %v6195_v2  ;;  %v9005_v58 = vld [vmem:[#allocation6 + $0x22c] sm:$0xf] }
  0xee   :  { %v6454_v21 = vor.u32 %v9049_v5, %v6451_v10  ;;  %v6147_v57 = vld [vmem:[#allocation6 + $0x138] sm:$0xf0]  ;;  %v8969_v3 = vld [vmem:[#allocation6 + $0x10c] sm:$0xf] }
  0xef   :  { %2023 = vmatpush.bf16.msrb.mxu0 %v6514_v18  ;;  %2036 = vmatpush.bf16.msrb.mxu1 %v6642_v23  ;;  %v1817_v12 = vpop.f32.mrf.mxu0  ;;  %v8981_v18 = vld [vmem:[#allocation6 + $0x16c] sm:$0xf]  ;;  %v1830_v20 = vpop.f32.mrf.mxu1  ;;  %v6003_v0 = vld [vmem:[#allocation6 + $0x18] sm:$0xf0] }
  0xf0   :  { %2049 = vmatpush.bf16.msrb.mxu2 %v6770_v24  ;;  %v1818_v19 = vadd.f32 %v1817_v12, %v10154_v7  ;;  %v9013_v23 = vld [vmem:[#allocation6 + $0x26c] sm:$0xf]  ;;  %v6307_v24 = vld [vmem:[#allocation6 + $0x278] sm:$0xf0]  ;;  %v6182_v30 = vor.u32 %v8981_v18, %v6179_v22  ;;  %v6438_v7 = vor.u32 %v9045_v26, %v6435_v27 }
  0xf1   :  { %2062 = vmatpush.bf16.msrb.mxu3 %v6898_v28  ;;  %v6131_v4 = vld [vmem:[#allocation6 + $0x118] sm:$0xf0]  ;;  %v9001_v5 = vld [vmem:[#allocation6 + $0x20c] sm:$0xf] }
  0xf2   :  { %2024 = vmatmul.bf16.vlgmr.msrb.gmra.mxu0 %v10129_v37  ;;  %2037 = vmatmul.bf16.vlgmr.msrb.gmra.mxu1 %v10133_v40  ;;  %v1831_v28 = vadd.f32 %v1830_v20, %v1818_v19  ;;  %v6259_v12 = vld [vmem:[#allocation6 + $0x218] sm:$0xf0]  ;;  %v9125_v19 = vld [vmem:[#allocation6 + $0x5ec] sm:$0xf]  ;;  %v6006_v20 = vor.u32 %v8937_v63, %v6003_v0 }
  0xf3   :  { %2068 = vmatpush.bf16.msra.mxu0 %v6118_v29  ;;  %2081 = vmatpush.bf16.msra.mxu1 %v6246_v31  ;;  %v6054_v29 = vor.u32 %v8949_v16, %v6051_v17  ;;  %v6310_v31 = vor.u32 %v9013_v23, %v6307_v24  ;;  %v9093_v17 = vld [vmem:[#allocation6 + $0x4ec] sm:$0xf]  ;;  %v6627_v18 = vld [vmem:[#allocation6 + $0x4f8] sm:$0xf0]  ;;  %v6134_v24 = vor.u32 %v8969_v3, %v6131_v4 }
  0xf4   :  { %2094 = vmatpush.bf16.msra.mxu2 %v6374_v32  ;;  %2063 = vmatmul.bf16.vlgmr.msrb.gmra.mxu3 %v10131_v38  ;;  %v8945_v32 = vld [vmem:[#allocation6 + $0x4c] sm:$0xf]  ;;  %v6883_v23 = vld [vmem:[#allocation6 + $0x6f8] sm:$0xf0]  ;;  %v6262_v26 = vor.u32 %v9001_v5, %v6259_v12 }
  0xf5   :  { %2107 = vmatpush.bf16.msra.mxu3 %v6502_v41  ;;  %2050 = vmatmul.bf16.vlgmr.msrb.gmra.mxu2 %v10127_v34  ;;  %v9009_v41 = vld [vmem:[#allocation6 + $0x24c] sm:$0xf]  ;;  %v6611_v35 = vld [vmem:[#allocation6 + $0x4d8] sm:$0xf0] }
  0xf6   :  { %v6294_v51 = vor.u32 %v9009_v41, %v6291_v42  ;;  %v9157_v22 = vld [vmem:[#allocation6 + $0x6ec] sm:$0xf]  ;;  %v6739_v39 = vld [vmem:[#allocation6 + $0x5d8] sm:$0xf0] }
  0xf7   :  { %2069 = vmatpush.bf16.msra.mxu0 %v6102_v47  ;;  %2082 = vmatpush.bf16.msra.mxu1 %v6230_v48  ;;  %v1856_v44 = vpop.f32.mrf.mxu3  ;;  %v6038_v47 = vor.u32 %v8945_v32, %v6035_v33  ;;  %v1832_v55 = vpop.f32.mrf.mxu1  ;;  %v9189_v27 = vld [vmem:[#allocation6 + $0x7ec] sm:$0xf]  ;;  %v6886_v32 = vor.u32 %v9157_v22, %v6883_v23  ;;  %v6867_v42 = vld [vmem:[#allocation6 + $0x6d8] sm:$0xf0] }
  0xf8   :  { %2095 = vmatpush.bf16.msra.mxu2 %v6358_v49  ;;  %v1843_v36 = vpop.f32.mrf.mxu2  ;;  %v1819_v49 = vpop.f32.mrf.mxu0  ;;  %v9089_v33 = vld [vmem:[#allocation6 + $0x4cc] sm:$0xf]  ;;  %v6851_v55 = vld [vmem:[#allocation6 + $0x6b8] sm:$0xf0] }
  0xf9   :  { %2108 = vmatpush.bf16.msra.mxu3 %v6486_v53  ;;  %v1844_v43 = vadd.f32 %v1843_v36, %v1831_v28  ;;  %v6019_v53 = vld [vmem:[#allocation6 + $0x38] sm:$0xf0]  ;;  %v9121_v36 = vld [vmem:[#allocation6 + $0x5cc] sm:$0xf]  ;;  %v6614_v45 = vor.u32 %v9089_v33, %v6611_v35 }
  0xfa   :  { %v6022_v62 = vor.u32 %v8941_v52, %v6019_v53  ;;  %v7011_v28 = vld [vmem:[#allocation6 + $0x7f8] sm:$0xf0]  ;;  %v9153_v41 = vld [vmem:[#allocation6 + $0x6cc] sm:$0xf]  ;;  %v6742_v46 = vor.u32 %v9121_v36, %v6739_v39 }
  0xfb   :  { %2070 = vmatpush.bf16.msra.mxu0 %v6086_v59  ;;  %2083 = vmatpush.bf16.msra.mxu1 %v6214_v60  ;;  %v10161_v48 = vadd.f32 %v1856_v44, %v1844_v43  ;;  %v6275_v59 = vld [vmem:[#allocation6 + $0x238] sm:$0xf0]  ;;  %v9037_v60 = vld [vmem:[#allocation6 + $0x32c] sm:$0xf] }
  0xfc   :  { %2096 = vmatpush.bf16.msra.mxu2 %v6342_v61  ;;  %v6403_v61 = vld [vmem:[#allocation6 + $0x338] sm:$0xf0]  ;;  %v6278_v2 = vor.u32 %v9005_v58, %v6275_v59  ;;  %v9185_v43 = vld [vmem:[#allocation6 + $0x7cc] sm:$0xf] }
  0xfd   :  { %2109 = vmatpush.bf16.msra.mxu3 %v6470_v1  ;;  %v6150_v1 = vor.u32 %v8973_v54, %v6147_v57  ;;  %v6995_v44 = vld [vmem:[#allocation6 + $0x7d8] sm:$0xf0]  ;;  %v9085_v49 = vld [vmem:[#allocation6 + $0x4ac] sm:$0xf] }
  0xfe   :  { %v6998_v52 = vor.u32 %v9185_v43, %v6995_v44  ;;  %v6723_v53 = vld [vmem:[#allocation6 + $0x5b8] sm:$0xf0]  ;;  %v9149_v54 = vld [vmem:[#allocation6 + $0x6ac] sm:$0xf] }
  0xff   :  { %2071 = vmatpush.bf16.msra.mxu0 %v6070_v11  ;;  %2084 = vmatpush.bf16.msra.mxu1 %v6198_v13  ;;  %v6406_v11 = vor.u32 %v9037_v60, %v6403_v61  ;;  %v9033_v13 = vld [vmem:[#allocation6 + $0x30c] sm:$0xf]  ;;  %v1858_v16 = vpop.f32.mrf.mxu3  ;;  %v6979_v57 = vld [vmem:[#allocation6 + $0x7b8] sm:$0xf0]  ;;  %v6854_v60 = vor.u32 %v9149_v54, %v6851_v55  ;;  %v469_v54 = vperm.slane %v10151_v6, 1 }
 0x100   :  { %2097 = vmatpush.bf16.msra.mxu2 %v6326_v14  ;;  %v1845_v10 = vpop.f32.mrf.mxu2  ;;  %v6387_v14 = vld [vmem:[#allocation6 + $0x318] sm:$0xf0]  ;;  %v9081_v61 = vld [vmem:[#allocation6 + $0x48c] sm:$0xf] }
 0x101   :  { %2110 = vmatpush.bf16.msra.mxu3 %v6454_v21  ;;  %v6755_v21 = vld [vmem:[#allocation6 + $0x5f8] sm:$0xf0]  ;;  %v9177_v3 = vld [vmem:[#allocation6 + $0x78c] sm:$0xf] }
 0x102   :  { %v6707_v0 = vld [vmem:[#allocation6 + $0x598] sm:$0xf0]  ;;  %v9077_v10 = vld [vmem:[#allocation6 + $0x46c] sm:$0xf] }
 0x103   :  { %2072 = vmatpush.bf16.msra.mxu0 %v6054_v29  ;;  %2085 = vmatpush.bf16.msra.mxu1 %v6182_v30  ;;  %v6390_v29 = vor.u32 %v9033_v13, %v6387_v14  ;;  %v6630_v30 = vor.u32 %v9093_v17, %v6627_v18  ;;  %v9109_v12 = vld [vmem:[#allocation6 + $0x56c] sm:$0xf]  ;;  %v6691_v16 = vld [vmem:[#allocation6 + $0x578] sm:$0xf0] }
 0x104   :  { %2098 = vmatpush.bf16.msra.mxu2 %v6310_v31  ;;  %v6758_v31 = vor.u32 %v9125_v19, %v6755_v21  ;;  %v9141_v17 = vld [vmem:[#allocation6 + $0x66c] sm:$0xf]  ;;  %v6819_v18 = vld [vmem:[#allocation6 + $0x678] sm:$0xf0]  ;;  %v6694_v22 = vor.u32 %v9109_v12, %v6691_v16 }
 0x105   :  { %2111 = vmatpush.bf16.msra.mxu3 %v6438_v7  ;;  %v7014_v7 = vor.u32 %v9189_v27, %v7011_v28  ;;  %v9173_v19 = vld [vmem:[#allocation6 + $0x76c] sm:$0xf]  ;;  %v6822_v23 = vor.u32 %v9141_v17, %v6819_v18  ;;  %v6931_v36 = vld [vmem:[#allocation6 + $0x758] sm:$0xf0] }
 0x106   :  { %v9105_v27 = vld [vmem:[#allocation6 + $0x54c] sm:$0xf]  ;;  %v6531_v44 = vld [vmem:[#allocation6 + $0x438] sm:$0xf0] }
 0x107   :  { %2073 = vmatpush.bf16.msra.mxu0 %v6038_v47  ;;  %2086 = vmatpush.bf16.msra.mxu1 %v6166_v50  ;;  %v6870_v47 = vor.u32 %v9153_v41, %v6867_v42  ;;  %v6595_v50 = vld [vmem:[#allocation6 + $0x4b8] sm:$0xf0]  ;;  %v9169_v35 = vld [vmem:[#allocation6 + $0x74c] sm:$0xf] }
 0x108   :  { %2099 = vmatpush.bf16.msra.mxu2 %v6294_v51  ;;  %v9117_v51 = vld [vmem:[#allocation6 + $0x5ac] sm:$0xf]  ;;  %v6598_v58 = vor.u32 %v9085_v49, %v6595_v50  ;;  %v6659_v49 = vld [vmem:[#allocation6 + $0x538] sm:$0xf0] }
 0x109   :  { %2112 = vmatpush.bf16.msra.mxu3 %v6422_v56  ;;  %v9181_v56 = vld [vmem:[#allocation6 + $0x7ac] sm:$0xf]  ;;  %v6726_v59 = vor.u32 %v9117_v51, %v6723_v53  ;;  %v6787_v51 = vld [vmem:[#allocation6 + $0x638] sm:$0xf0] }
 0x10a   :  { %v6982_v63 = vor.u32 %v9181_v56, %v6979_v57  ;;  %v9069_v43 = vld [vmem:[#allocation6 + $0x42c] sm:$0xf]  ;;  %v6915_v53 = vld [vmem:[#allocation6 + $0x738] sm:$0xf0] }
 0x10b   :  { %2074 = vmatpush.bf16.msra.mxu0 %v6022_v62  ;;  %2087 = vmatpush.bf16.msra.mxu1 %v6150_v1  ;;  %v6579_v62 = vld [vmem:[#allocation6 + $0x498] sm:$0xf0]  ;;  %v9145_v1 = vld [vmem:[#allocation6 + $0x68c] sm:$0xf]  ;;  %v6534_v55 = vor.u32 %v9069_v43, %v6531_v44  ;;  %v7041_v43 = vld [vmem:[#allocation9 + $0x30] sm:$0xf] }
 0x10c   :  { %2100 = vmatpush.bf16.msra.mxu2 %v6278_v2  ;;  %v6835_v2 = vld [vmem:[#allocation6 + $0x698] sm:$0xf0]  ;;  %v9133_v50 = vld [vmem:[#allocation6 + $0x62c] sm:$0xf]  ;;  %v7105_v44 = vld [vmem:[#allocation9 + $0xb0] sm:$0xf] }
 0x10d   :  { %2113 = vmatpush.bf16.msra.mxu3 %v6406_v11  ;;  %v6838_v5 = vor.u32 %v9145_v1, %v6835_v2  ;;  %v6563_v11 = vld [vmem:[#allocation6 + $0x478] sm:$0xf0]  ;;  %v9065_v56 = vld [vmem:[#allocation6 + $0x40c] sm:$0xf] }
 0x10e   :  { %v6566_v21 = vor.u32 %v9077_v10, %v6563_v11  ;;  %v9161_v1 = vld [vmem:[#allocation6 + $0x70c] sm:$0xf]  ;;  %v9207_v6 = vld [vmem:[#allocation9 + $0x74] sm:$0xf0] }
 0x10f   :  { %2075 = vmatpush.bf16.msra.mxu0 %v6006_v20  ;;  %2088 = vmatpush.bf16.msra.mxu1 %v6134_v24  ;;  %v10167_v4 = vpop.f32.mrf.mxu0  ;;  %v10169_v13 = vpop.f32.mrf.mxu1  ;;  %v6947_v20 = vld [vmem:[#allocation6 + $0x778] sm:$0xf0]  ;;  %v9073_v24 = vld [vmem:[#allocation6 + $0x44c] sm:$0xf] }
 0x110   :  { %2101 = vmatpush.bf16.msra.mxu2 %v6262_v26  ;;  %v6547_v26 = vld [vmem:[#allocation6 + $0x458] sm:$0xf0] }
 0x111   :  { %2114 = vmatpush.bf16.msra.mxu3 %v6390_v29  ;;  %v6950_v29 = vor.u32 %v9173_v19, %v6947_v20  ;;  %v9223_v10 = vld [vmem:[#allocation9 + $0xf4] sm:$0xf0]  ;;  %v7065_v19 = vld [vmem:[#allocation9 + $0x60] sm:$0xf]  ;;  %v9205_v20 = vld [vmem:[#allocation9 + $0x64] sm:$0xf0] }
 0x112   :  { %2076 = vmatmul.bf16.vlgmr.msra.gmra.mxu0 %v10117_v9  ;;  %2089 = vmatmul.bf16.vlgmr.msra.gmra.mxu1 %v10124_v25  ;;  %v6963_v9 = vld [vmem:[#allocation6 + $0x798] sm:$0xf0] }
 0x113   :  { %2120 = vmatpush.bf16.msrb.mxu0 %v6630_v30  ;;  %2133 = vmatpush.bf16.msrb.mxu1 %v6758_v31  ;;  %v6966_v14 = vor.u32 %v9177_v3, %v6963_v9  ;;  %v6675_v30 = vld [vmem:[#allocation6 + $0x558] sm:$0xf0]  ;;  %v9137_v31 = vld [vmem:[#allocation6 + $0x64c] sm:$0xf]  ;;  %v7073_v9 = vld [vmem:[#allocation9 + $0x70] sm:$0xf] }
 0x114   :  { %2146 = vmatpush.bf16.msrb.mxu2 %v6886_v32  ;;  %2115 = vmatmul.bf16.vlgmr.msra.gmra.mxu3 %v10119_v15  ;;  %v6582_v15 = vor.u32 %v9081_v61, %v6579_v62  ;;  %v6803_v32 = vld [vmem:[#allocation6 + $0x658] sm:$0xf0]  ;;  %v6678_v41 = vor.u32 %v9105_v27, %v6675_v30  ;;  %v7074_v16 = vor.u32 %v9207_v6, %v7073_v9  ;;  %v7089_v9 = vld [vmem:[#allocation9 + $0x90] sm:$0xf] }
 0x115   :  { %2159 = vmatpush.bf16.msrb.mxu3 %v7014_v7  ;;  %2102 = vmatmul.bf16.vlgmr.msra.gmra.mxu2 %v10115_v8  ;;  %v9113_v8 = vld [vmem:[#allocation6 + $0x58c] sm:$0xf]  ;;  %v6550_v7 = vor.u32 %v9073_v24, %v6547_v26  ;;  %v6806_v42 = vor.u32 %v9137_v31, %v6803_v32  ;;  %v6643_v61 = vld [vmem:[#allocation6 + $0x518] sm:$0xf0]  ;;  %v7057_v26 = vld [vmem:[#allocation9 + $0x50] sm:$0xf] }
 0x116   :  { %v6710_v25 = vor.u32 %v9113_v8, %v6707_v0  ;;  %v6771_v0 = vld [vmem:[#allocation6 + $0x618] sm:$0xf0] }
 0x117   :  { %2121 = vmatpush.bf16.msrb.mxu0 %v6614_v45  ;;  %2134 = vmatpush.bf16.msrb.mxu1 %v6742_v46  ;;  %v10173_v33 = vpop.f32.mrf.mxu3  ;;  %v1871_v39 = vpop.f32.mrf.mxu0  ;;  %v9101_v45 = vld [vmem:[#allocation6 + $0x52c] sm:$0xf]  ;;  %v6899_v3 = vld [vmem:[#allocation6 + $0x718] sm:$0xf0] }
 0x118   :  { %2147 = vmatpush.bf16.msrb.mxu2 %v6870_v47  ;;  %v10171_v28 = vpop.f32.mrf.mxu2  ;;  %v1884_v46 = vpop.f32.mrf.mxu1  ;;  %v6934_v47 = vor.u32 %v9169_v35, %v6931_v36  ;;  %v6662_v57 = vor.u32 %v9101_v45, %v6659_v49  ;;  %v9203_v27 = vld [vmem:[#allocation9 + $0x54] sm:$0xf0]  ;;  %v9201_v35 = vld [vmem:[#allocation9 + $0x44] sm:$0xf0]  ;;  %v7113_v36 = vld [vmem:[#allocation9 + $0xc0] sm:$0xf] }
 0x119   :  { %2160 = vmatpush.bf16.msrb.mxu3 %v6998_v52  ;;  %v9165_v52 = vld [vmem:[#allocation6 + $0x72c] sm:$0xf]  ;;  %v7058_v30 = vor.u32 %v9203_v27, %v7057_v26  ;;  %v9239_v39 = vld [vmem:[#allocation9 + $0x174] sm:$0xf0]  ;;  %v9222_v26 = vld [vmem:[#allocation9 + $0xf4] sm:$0xf] }
 0x11a   :  { %v6918_v8 = vor.u32 %v9165_v52, %v6915_v53  ;;  %v9237_v49 = vld [vmem:[#allocation9 + $0x164] sm:$0xf0]  ;;  %v7139_v27 = vld [vmem:[#allocation9 + $0xf8] sm:$0xf0] }
 0x11b   :  { %2122 = vmatpush.bf16.msrb.mxu0 %v6598_v58  ;;  %2135 = vmatpush.bf16.msrb.mxu1 %v6726_v59  ;;  %v6790_v58 = vor.u32 %v9133_v50, %v6787_v51  ;;  %v6515_v59 = vld [vmem:[#allocation6 + $0x418] sm:$0xf0] }
 0x11c   :  { %2148 = vmatpush.bf16.msrb.mxu2 %v6854_v60  ;;  %v9097_v60 = vld [vmem:[#allocation6 + $0x50c] sm:$0xf] }
 0x11d   :  { %2161 = vmatpush.bf16.msrb.mxu3 %v6982_v63  ;;  %v9129_v63 = vld [vmem:[#allocation6 + $0x60c] sm:$0xf]  ;;  %v6646_v11 = vor.u32 %v9097_v60, %v6643_v61  ;;  %v7185_v60 = vld [vmem:[#allocation9 + $0x150] sm:$0xf]  ;;  %v9235_v61 = vld [vmem:[#allocation9 + $0x154] sm:$0xf0] }
 0x11e   :  { %v6774_v12 = vor.u32 %v9129_v63, %v6771_v0 }
 0x11f   :  { %2123 = vmatpush.bf16.msrb.mxu0 %v6582_v15  ;;  %2136 = vmatpush.bf16.msrb.mxu1 %v6710_v25  ;;  %v1910_v2 = vpop.f32.mrf.mxu3  ;;  %v1870_v15 = vadd.f32 %v10167_v4, %v469_v54  ;;  %v6518_v25 = vor.u32 %v9065_v56, %v6515_v59  ;;  %v7066_v4 = vor.u32 %v9205_v20, %v7065_v19  ;;  %v7033_v54 = vld [vmem:[#allocation9 + $0x20] sm:$0xf]  ;;  %v9209_v19 = vld [vmem:[#allocation9 + $0x84] sm:$0xf0]  ;;  %v9206_v20 = vld [vmem:[#allocation9 + $0x74] sm:$0xf] }
 0x120   :  { %2149 = vmatpush.bf16.msrb.mxu2 %v6838_v5  ;;  %v1897_v62 = vpop.f32.mrf.mxu2  ;;  %v7137_v5 = vld [vmem:[#allocation9 + $0xf0] sm:$0xf]  ;;  %v7097_v56 = vld [vmem:[#allocation9 + $0xa0] sm:$0xf] }
 0x121   :  { %2162 = vmatpush.bf16.msrb.mxu3 %v6966_v14  ;;  %v6902_v14 = vor.u32 %v9161_v1, %v6899_v3  ;;  %v7138_v17 = vor.u32 %v9223_v10, %v7137_v5  ;;  %v1883_v18 = vadd.f32 %v10169_v13, %v1870_v15  ;;  %v7121_v13 = vld [vmem:[#allocation9 + $0xd0] sm:$0xf]  ;;  %v7186_v62 = vor.u32 %v9235_v61, %v7185_v60  ;;  %v9195_v3 = vld [vmem:[#allocation9 + $0x14] sm:$0xf0]  ;;  %v9233_v5 = vld [vmem:[#allocation9 + $0x144] sm:$0xf0] }
 0x122   :  { %v7025_v2 = vld [vmem:[#allocation9 + $0x10] sm:$0xf]  ;;  %v9211_v15 = vld [vmem:[#allocation9 + $0x94] sm:$0xf0]  ;;  %v9216_v60 = vld [vmem:[#allocation9 + $0xc4] sm:$0xf] }
 0x123   :  { %2124 = vmatpush.bf16.msrb.mxu0 %v6566_v21  ;;  %2137 = vmatpush.bf16.msrb.mxu1 %v6694_v22  ;;  %v7129_v21 = vld [vmem:[#allocation9 + $0xe0] sm:$0xf]  ;;  %v9221_v22 = vld [vmem:[#allocation9 + $0xe4] sm:$0xf0]  ;;  %v1896_v24 = vadd.f32 %v10171_v28, %v1883_v18  ;;  %v7115_v61 = vld [vmem:[#allocation9 + $0xc8] sm:$0xf0] }
 0x124   :  { %2150 = vmatpush.bf16.msrb.mxu2 %v6822_v23  ;;  %v7130_v23 = vor.u32 %v9221_v22, %v7129_v21  ;;  %v9217_v28 = vld [vmem:[#allocation9 + $0xc4] sm:$0xf0]  ;;  %v7081_v18 = vld [vmem:[#allocation9 + $0x80] sm:$0xf]  ;;  %v7075_v22 = vld [vmem:[#allocation9 + $0x78] sm:$0xf0] }
 0x125   :  { %2163 = vmatpush.bf16.msrb.mxu3 %v6950_v29  ;;  %v9219_v29 = vld [vmem:[#allocation9 + $0xd4] sm:$0xf0]  ;;  %v1909_v31 = vadd.f32 %v10173_v33, %v1896_v24 }
 0x126   :  { %v7122_v32 = vor.u32 %v9219_v29, %v7121_v13  ;;  %v9215_v33 = vld [vmem:[#allocation9 + $0xb4] sm:$0xf0] }
 0x127   :  { %2125 = vmatpush.bf16.msrb.mxu0 %v6550_v7  ;;  %2138 = vmatpush.bf16.msrb.mxu1 %v6678_v41  ;;  %v7201_v7 = vld [vmem:[#allocation9 + $0x170] sm:$0xf]  ;;  %v7106_v53 = vor.u32 %v9215_v33, %v7105_v44  ;;  %v9231_v24 = vld [vmem:[#allocation9 + $0x134] sm:$0xf0]  ;;  %v7059_v33 = vld [vmem:[#allocation9 + $0x58] sm:$0xf0] }
 0x128   :  { %2151 = vmatpush.bf16.msrb.mxu2 %v6806_v42  ;;  %v7202_v41 = vor.u32 %v9239_v39, %v7201_v7  ;;  %v7114_v42 = vor.u32 %v9217_v28, %v7113_v36  ;;  %v7142_v36 = vor.u32 %v9222_v26, %v7139_v27  ;;  %v7067_v28 = vld [vmem:[#allocation9 + $0x68] sm:$0xf0]  ;;  %v7161_v7 = vld [vmem:[#allocation9 + $0x120] sm:$0xf]  ;;  %v9229_v39 = vld [vmem:[#allocation9 + $0x124] sm:$0xf0] }
 0x129   :  { %2164 = vmatpush.bf16.msrb.mxu3 %v6934_v47  ;;  %v7193_v47 = vld [vmem:[#allocation9 + $0x160] sm:$0xf]  ;;  %v9227_v44 = vld [vmem:[#allocation9 + $0x114] sm:$0xf0]  ;;  %v7027_v26 = vld [vmem:[#allocation9 + $0x18] sm:$0xf0] }
 0x12a   :  { %v7194_v50 = vor.u32 %v9237_v49, %v7193_v47  ;;  %v9218_v47 = vld [vmem:[#allocation9 + $0xd4] sm:$0xf] }
 0x12b   :  { %2126 = vmatpush.bf16.msrb.mxu0 %v6534_v55  ;;  %2139 = vmatpush.bf16.msrb.mxu1 %v6662_v57  ;;  %v9197_v55 = vld [vmem:[#allocation9 + $0x24] sm:$0xf0]  ;;  %v9210_v27 = vld [vmem:[#allocation9 + $0x94] sm:$0xf] }
 0x12c   :  { %2152 = vmatpush.bf16.msrb.mxu2 %v6790_v58  ;;  %v9213_v58 = vld [vmem:[#allocation9 + $0xa4] sm:$0xf0] }
 0x12d   :  { %2165 = vmatpush.bf16.msrb.mxu3 %v6918_v8  ;;  %v7034_v8 = vor.u32 %v9197_v55, %v7033_v54  ;;  %v7098_v1 = vor.u32 %v9213_v58, %v7097_v56  ;;  %v7203_v54 = vld [vmem:[#allocation9 + $0x178] sm:$0xf0]  ;;  %v7051_v58 = vld [vmem:[#allocation9 + $0x48] sm:$0xf0] }
 0x12f   :  { %2127 = vmatpush.bf16.msrb.mxu0 %v6518_v25  ;;  %2140 = vmatpush.bf16.msrb.mxu1 %v6646_v11  ;;  %v1934_v46 = vpop.f32.mrf.mxu1  ;;  %v7177_v25 = vld [vmem:[#allocation9 + $0x140] sm:$0xf] }
 0x130   :  { %2153 = vmatpush.bf16.msrb.mxu2 %v6774_v12  ;;  %v7178_v10 = vor.u32 %v9233_v5, %v7177_v25  ;;  %v7026_v12 = vor.u32 %v9195_v3, %v7025_v2  ;;  %v9214_v2 = vld [vmem:[#allocation9 + $0xb4] sm:$0xf]  ;;  %v7195_v25 = vld [vmem:[#allocation9 + $0x168] sm:$0xf0] }
 0x131   :  { %2166 = vmatpush.bf16.msrb.mxu3 %v6902_v14  ;;  %v7017_v14 = vld [vmem:[#allocation9] sm:$0xf] }
 0x132   :  { %2128 = vmatmul.bf16.vlgmr.msrb.gmra.mxu0 %v10129_v37  ;;  %2141 = vmatmul.bf16.vlgmr.msrb.gmra.mxu1 %v10133_v40  ;;  %v7049_v37 = vld [vmem:[#allocation9 + $0x40] sm:$0xf] }
 0x133   :  { %2570 = vmatpush.bf16.msra.mxu0 %v7074_v16  ;;  %2583 = vmatpush.bf16.msra.mxu1 %v7138_v17  ;;  %v7050_v40 = vor.u32 %v9201_v35, %v7049_v37  ;;  %v9193_v16 = vld [vmem:[#allocation9 + $0x4] sm:$0xf0]  ;;  %v7090_v17 = vor.u32 %v9211_v15, %v7089_v9  ;;  %v7078_v37 = vor.u32 %v9206_v20, %v7075_v22  ;;  %v9204_v35 = vld [vmem:[#allocation9 + $0x64] sm:$0xf]  ;;  %v7107_v9 = vld [vmem:[#allocation9 + $0xb8] sm:$0xf0] }
 0x134   :  { %2154 = vmatmul.bf16.vlgmr.msrb.gmra.mxu2 %v10127_v34  ;;  %2167 = vmatmul.bf16.vlgmr.msrb.gmra.mxu3 %v10131_v38  ;;  %v1921_v34 = vpop.f32.mrf.mxu0  ;;  %v9199_v38 = vld [vmem:[#allocation9 + $0x34] sm:$0xf0]  ;;  %v9236_v15 = vld [vmem:[#allocation9 + $0x164] sm:$0xf]  ;;  %v7187_v20 = vld [vmem:[#allocation9 + $0x158] sm:$0xf0] }
 0x135   :  { %v1922_v45 = vadd.f32 %v1921_v34, %v1909_v31  ;;  %2596 = vmatpush.bf16.msra.mxu2 %v7202_v41  ;;  %v7042_v51 = vor.u32 %v9199_v38, %v7041_v43  ;;  %v2172_v31 = vmax.f32 %v10161_v48, 0.0  ;;  %v9220_v41 = vld [vmem:[#allocation9 + $0xe4] sm:$0xf]  ;;  %v7162_v34 = vor.u32 %v9229_v39, %v7161_v7  ;;  %v7153_v38 = vld [vmem:[#allocation9 + $0x110] sm:$0xf] }
 0x136   :  { %v7070_v48 = vor.u32 %v9204_v35, %v7067_v28  ;;  %v7154_v49 = vor.u32 %v9227_v44, %v7153_v38  ;;  %v7198_v5 = vor.u32 %v9236_v15, %v7195_v25  ;;  %v9192_v7 = vld [vmem:[#allocation9 + $0x4] sm:$0xf]  ;;  %v7083_v38 = vld [vmem:[#allocation9 + $0x88] sm:$0xf0] }
 0x137   :  { %2571 = vmatpush.bf16.msra.mxu0 %v7066_v4  ;;  %2584 = vmatpush.bf16.msra.mxu1 %v7130_v23  ;;  %v1935_v52 = vadd.f32 %v1934_v46, %v1922_v45  ;;  %v1960_v59 = vpop.f32.mrf.mxu3  ;;  %v1936_v6 = vpop.f32.mrf.mxu1  ;;  %v7169_v23 = vld [vmem:[#allocation9 + $0x130] sm:$0xf]  ;;  %v10187_v43 = vpack.c.bf16 %v2172_v31, %v2172_v31  ;;  %v9202_v46 = vld [vmem:[#allocation9 + $0x54] sm:$0xf]  ;;  %v9232_v31 = vld [vmem:[#allocation9 + $0x144] sm:$0xf] }
 0x138   :  { %v1947_v57 = vpop.f32.mrf.mxu2  ;;  %v7170_v13 = vor.u32 %v9231_v24, %v7169_v23  ;;  %v7062_v55 = vor.u32 %v9202_v46, %v7059_v33  ;;  %v9194_v24 = vld [vmem:[#allocation9 + $0x14] sm:$0xf]  ;;  %v9228_v33 = vld [vmem:[#allocation9 + $0x124] sm:$0xf] }
 0x139   :  { %2597 = vmatpush.bf16.msra.mxu2 %v7194_v50  ;;  %v1948_v63 = vadd.f32 %v1947_v57, %v1935_v52  ;;  %v7123_v50 = vld [vmem:[#allocation9 + $0xd8] sm:$0xf0]  ;;  %v9225_v52 = vld [vmem:[#allocation9 + $0x104] sm:$0xf0]  ;;  %v9200_v57 = vld [vmem:[#allocation9 + $0x44] sm:$0xf]  ;;  %v7030_v35 = vor.u32 %v9194_v24, %v7027_v26 }
 0x13a   :  { %v7126_v56 = vor.u32 %v9218_v47, %v7123_v50  ;;  %v7163_v47 = vld [vmem:[#allocation9 + $0x128] sm:$0xf0]  ;;  %v9245_v24 = vld [vmem:[#allocation9 + $0x1a4] sm:$0xf0] }
 0x13b   :  { %2572 = vmatpush.bf16.msra.mxu0 %v7058_v30  ;;  %2585 = vmatpush.bf16.msra.mxu1 %v7122_v32  ;;  %v1961_v11 = vadd.f32 %v1960_v59, %v1948_v63  ;;  %v7018_v30 = vor.u32 %v9193_v16, %v7017_v14  ;;  %v7082_v32 = vor.u32 %v9209_v19, %v7081_v18  ;;  %v7035_v14 = vld [vmem:[#allocation9 + $0x28] sm:$0xf0]  ;;  %v9212_v16 = vld [vmem:[#allocation9 + $0xa4] sm:$0xf]  ;;  %v9234_v19 = vld [vmem:[#allocation9 + $0x154] sm:$0xf] }
 0x13c   :  { %v1923_v0 = vpop.f32.mrf.mxu0  ;;  %v7118_v63 = vor.u32 %v9216_v60, %v7115_v61  ;;  %v7190_v22 = vor.u32 %v9234_v19, %v7187_v20  ;;  %v9224_v60 = vld [vmem:[#allocation9 + $0x104] sm:$0xf]  ;;  %v7147_v61 = vld [vmem:[#allocation9 + $0x108] sm:$0xf0] }
 0x13d   :  { %2598 = vmatpush.bf16.msra.mxu2 %v7186_v62  ;;  %v2173_v29 = vmax.f32 %v1961_v11, 0.0  ;;  %v9198_v0 = vld [vmem:[#allocation9 + $0x34] sm:$0xf]  ;;  %v7110_v11 = vor.u32 %v9214_v2, %v7107_v9  ;;  %v9251_v9 = vld [vmem:[#allocation9 + $0x1d4] sm:$0xf0] }
 0x13f   :  { %2573 = vmatpush.bf16.msra.mxu0 %v7050_v40  ;;  %2586 = vmatpush.bf16.msra.mxu1 %v7114_v42  ;;  %v1962_v4 = vpop.f32.mrf.mxu3  ;;  %v7131_v40 = vld [vmem:[#allocation9 + $0xe8] sm:$0xf0]  ;;  %v10185_v42 = vpack.c.bf16 %v2173_v29, %v2173_v29  ;;  %v7091_v29 = vld [vmem:[#allocation9 + $0x98] sm:$0xf0] }
 0x140   :  { %v1949_v21 = vpop.f32.mrf.mxu2  ;;  %v7134_v45 = vor.u32 %v9220_v41, %v7131_v40  ;;  %v7094_v39 = vor.u32 %v9210_v27, %v7091_v29  ;;  %v7019_v41 = vld [vmem:[#allocation9 + $0x8] sm:$0xf0]  ;;  %v9230_v40 = vld [vmem:[#allocation9 + $0x134] sm:$0xf] }
 0x141   :  { %2599 = vmatpush.bf16.msra.mxu2 %v7178_v10 }
 0x143   :  { %2574 = vmatpush.bf16.msra.mxu0 %v7042_v51  ;;  %2587 = vmatpush.bf16.msra.mxu1 %v7106_v53  ;;  %v7145_v51 = vld [vmem:[#allocation9 + $0x100] sm:$0xf]  ;;  %v9238_v53 = vld [vmem:[#allocation9 + $0x174] sm:$0xf] }
 0x144   :  { %v7146_v59 = vor.u32 %v9225_v52, %v7145_v51  ;;  %v7206_v62 = vor.u32 %v9238_v53, %v7203_v54  ;;  %v7022_v51 = vor.u32 %v9192_v7, %v7019_v41  ;;  %v9255_v52 = vld [vmem:[#allocation9 + $0x1f4] sm:$0xf0]  ;;  %v9254_v7 = vld [vmem:[#allocation9 + $0x1f4] sm:$0xf] }
 0x145   :  { %2600 = vmatpush.bf16.msra.mxu2 %v7170_v13 }
 0x147   :  { %2575 = vmatpush.bf16.msra.mxu0 %v7034_v8  ;;  %2588 = vmatpush.bf16.msra.mxu1 %v7098_v1  ;;  %v7054_v8 = vor.u32 %v9200_v57, %v7051_v58  ;;  %v7043_v1 = vld [vmem:[#allocation9 + $0x38] sm:$0xf0] }
 0x148   :  { %v7046_v10 = vor.u32 %v9198_v0, %v7043_v1  ;;  %v7155_v57 = vld [vmem:[#allocation9 + $0x118] sm:$0xf0]  ;;  %v7257_v0 = vld [vmem:[#allocation9 + $0x1e0] sm:$0xf]  ;;  %v9253_v1 = vld [vmem:[#allocation9 + $0x1e4] sm:$0xf0] }
 0x149   :  { %2601 = vmatpush.bf16.msra.mxu2 %v7162_v34  ;;  %v7171_v34 = vld [vmem:[#allocation9 + $0x138] sm:$0xf0]  ;;  %v7258_v2 = vor.u32 %v9253_v1, %v7257_v0 }
 0x14a   :  { %v7219_v0 = vld [vmem:[#allocation9 + $0x198] sm:$0xf0] }
 0x14b   :  { %2576 = vmatpush.bf16.msra.mxu0 %v7026_v12  ;;  %2589 = vmatpush.bf16.msra.mxu1 %v7090_v17  ;;  %v9196_v12 = vld [vmem:[#allocation9 + $0x24] sm:$0xf]  ;;  %v7099_v17 = vld [vmem:[#allocation9 + $0xa8] sm:$0xf0] }
 0x14c   :  { %v7038_v4 = vor.u32 %v9196_v12, %v7035_v14  ;;  %v7102_v23 = vor.u32 %v9212_v16, %v7099_v17  ;;  %v7233_v17 = vld [vmem:[#allocation9 + $0x1b0] sm:$0xf] }
 0x14d   :  { %2602 = vmatpush.bf16.msra.mxu2 %v7154_v49  ;;  %v7265_v49 = vld [vmem:[#allocation9 + $0x1f0] sm:$0xf] }
 0x14e   :  { %v7266_v54 = vor.u32 %v9255_v52, %v7265_v49 }
 0x14f   :  { %2577 = vmatpush.bf16.msra.mxu0 %v7018_v30  ;;  %2590 = vmatpush.bf16.msra.mxu1 %v7082_v32  ;;  %v1973_v3 = vpop.f32.mrf.mxu0  ;;  %v10191_v6 = vpop.f32.mrf.mxu1  ;;  %v7179_v32 = vld [vmem:[#allocation9 + $0x148] sm:$0xf0] }
 0x150   :  { %2609 = vmatpush.bf16.msra.mxu3 %v7266_v54 }
 0x151   :  { %2603 = vmatpush.bf16.msra.mxu2 %v7146_v59 }
 0x152   :  { %2578 = vmatmul.bf16.vlgmr.msra.gmra.mxu0 %v10187_v43  ;;  %2591 = vmatmul.bf16.vlgmr.msra.gmra.mxu1 %v10185_v42 }
 0x153   :  { %2622 = vmatpush.bf16.msrb.mxu0 %v7078_v37  ;;  %2635 = vmatpush.bf16.msrb.mxu1 %v7142_v36  ;;  %v7182_v37 = vor.u32 %v9232_v31, %v7179_v32  ;;  %v10193_v36 = vld [vmem:[#allocation8] sm:$0xf]  ;;  %v9243_v31 = vld [vmem:[#allocation9 + $0x194] sm:$0xf0] }
 0x154   :  { %v470_v28 = vperm.slane %v10193_v36, 2  ;;  %2610 = vmatpush.bf16.msra.mxu3 %v7258_v2 }
 0x155   :  { %2648 = vmatpush.bf16.msrb.mxu2 %v7206_v62 }
 0x156   :  { %v1974_v50 = vadd.f32 %v1973_v3, %v470_v28  ;;  %v7249_v3 = vld [vmem:[#allocation9 + $0x1d0] sm:$0xf] }
 0x157   :  { %2623 = vmatpush.bf16.msrb.mxu0 %v7070_v48  ;;  %2636 = vmatpush.bf16.msrb.mxu1 %v7134_v45  ;;  %v2012_v21 = vpop.f32.mrf.mxu3  ;;  %v1975_v13 = vpop.f32.mrf.mxu0  ;;  %v9208_v48 = vld [vmem:[#allocation9 + $0x84] sm:$0xf]  ;;  %v7174_v45 = vor.u32 %v9230_v40, %v7171_v34  ;;  %v7259_v34 = vld [vmem:[#allocation9 + $0x1e8] sm:$0xf0] }
 0x158   :  { %v1999_v18 = vpop.f32.mrf.mxu2  ;;  %v1988_v30 = vpop.f32.mrf.mxu1  ;;  %v7086_v53 = vor.u32 %v9208_v48, %v7083_v38  ;;  %v1987_v58 = vadd.f32 %v10191_v6, %v1974_v50  ;;  %v9252_v40 = vld [vmem:[#allocation9 + $0x1e4] sm:$0xf] }
 0x159   :  { %2649 = vmatpush.bf16.msrb.mxu2 %v7198_v5  ;;  %v7250_v5 = vor.u32 %v9251_v9, %v7249_v3  ;;  %v7217_v30 = vld [vmem:[#allocation9 + $0x190] sm:$0xf]  ;;  %v7262_v38 = vor.u32 %v9252_v40, %v7259_v34  ;;  %v9248_v50 = vld [vmem:[#allocation9 + $0x1c4] sm:$0xf]  ;;  %v7211_v9 = vld [vmem:[#allocation9 + $0x188] sm:$0xf0] }
 0x15a   :  { %v2000_v62 = vadd.f32 %v1999_v18, %v1987_v58  ;;  %v9247_v18 = vld [vmem:[#allocation9 + $0x1b4] sm:$0xf0]  ;;  %v7218_v32 = vor.u32 %v9243_v31, %v7217_v30  ;;  %v9240_v3 = vld [vmem:[#allocation9 + $0x184] sm:$0xf] }
 0x15b   :  { %2624 = vmatpush.bf16.msrb.mxu0 %v7062_v55  ;;  %2637 = vmatpush.bf16.msrb.mxu1 %v7126_v56  ;;  %v7166_v55 = vor.u32 %v9228_v33, %v7163_v47  ;;  %v9226_v56 = vld [vmem:[#allocation9 + $0x114] sm:$0xf] }
 0x15c   :  { %v7158_v59 = vor.u32 %v9226_v56, %v7155_v57  ;;  %2611 = vmatpush.bf16.msra.mxu3 %v7250_v5  ;;  %v7235_v56 = vld [vmem:[#allocation9 + $0x1b8] sm:$0xf0]  ;;  %v471_v57 = vperm.slane %v10193_v36, 3 }
 0x15d   :  { %2650 = vmatpush.bf16.msrb.mxu2 %v7190_v22  ;;  %v7234_v22 = vor.u32 %v9247_v18, %v7233_v17 }
 0x15f   :  { %2625 = vmatpush.bf16.msrb.mxu0 %v7054_v8  ;;  %2638 = vmatpush.bf16.msrb.mxu1 %v7118_v63  ;;  %v2014_v46 = vpop.f32.mrf.mxu3  ;;  %v7150_v8 = vor.u32 %v9224_v60, %v7147_v61  ;;  %v2013_v63 = vadd.f32 %v2012_v21, %v2000_v62  ;;  %v7227_v60 = vld [vmem:[#allocation9 + $0x1a8] sm:$0xf0] }
 0x160   :  { %v2001_v44 = vpop.f32.mrf.mxu2  ;;  %v7251_v46 = vld [vmem:[#allocation9 + $0x1d8] sm:$0xf0] }
 0x161   :  { %2651 = vmatpush.bf16.msrb.mxu2 %v7182_v37  ;;  %v7209_v37 = vld [vmem:[#allocation9 + $0x180] sm:$0xf] }
 0x163   :  { %2626 = vmatpush.bf16.msrb.mxu0 %v7046_v10  ;;  %2639 = vmatpush.bf16.msrb.mxu1 %v7110_v11  ;;  %v7241_v10 = vld [vmem:[#allocation9 + $0x1c0] sm:$0xf]  ;;  %v9249_v11 = vld [vmem:[#allocation9 + $0x1c4] sm:$0xf0] }
 0x165   :  { %2652 = vmatpush.bf16.msrb.mxu2 %v7174_v45  ;;  %v9250_v45 = vld [vmem:[#allocation9 + $0x1d4] sm:$0xf] }
 0x166   :  { %v7254_v33 = vor.u32 %v9250_v45, %v7251_v46  ;;  %v10007_v45 = vmov 0  }
 0x167   :  { %2627 = vmatpush.bf16.msrb.mxu0 %v7038_v4  ;;  %2640 = vmatpush.bf16.msrb.mxu1 %v7102_v23  ;;  %v7225_v23 = vld [vmem:[#allocation9 + $0x1a0] sm:$0xf] }
 0x168   :  { %v7226_v13 = vor.u32 %v9245_v24, %v7225_v23  ;;  %9693 = vset.pattern.permute.xlu0 %v10007_v45  ;;  %v9273_v45 = vld [vmem:[#allocation12 + $0x8c] sm:$0xf] }
 0x169   :  { %2653 = vmatpush.bf16.msrb.mxu2 %v7166_v55  ;;  %v9246_v55 = vld [vmem:[#allocation9 + $0x1b4] sm:$0xf] }
 0x16a   :  { %v7238_v58 = vor.u32 %v9246_v55, %v7235_v56  ;;  %v7388_v56 = vld [vmem:[#allocation12 + $0xf0] sm:$0xf0] }
 0x16b   :  { %2628 = vmatpush.bf16.msrb.mxu0 %v7030_v35  ;;  %2641 = vmatpush.bf16.msrb.mxu1 %v7094_v39  ;;  %v9241_v35 = vld [vmem:[#allocation9 + $0x184] sm:$0xf0]  ;;  %v7267_v39 = vld [vmem:[#allocation9 + $0x1f8] sm:$0xf0] }
 0x16c   :  { %v7210_v28 = vor.u32 %v9241_v35, %v7209_v37  ;;  %v7270_v41 = vor.u32 %v9254_v7, %v7267_v39 }
 0x16d   :  { %2654 = vmatpush.bf16.msrb.mxu2 %v7158_v59  ;;  %v9244_v59 = vld [vmem:[#allocation9 + $0x1a4] sm:$0xf] }
 0x16f   :  { %2629 = vmatpush.bf16.msrb.mxu0 %v7022_v51  ;;  %2642 = vmatpush.bf16.msrb.mxu1 %v7086_v53  ;;  %v2025_v6 = vpop.f32.mrf.mxu0  ;;  %v2038_v25 = vpop.f32.mrf.mxu1  ;;  %v7243_v51 = vld [vmem:[#allocation9 + $0x1c8] sm:$0xf0] }
 0x170   :  { %v2026_v15 = vadd.f32 %v2025_v6, %v2013_v63  ;;  %v7246_v53 = vor.u32 %v9248_v50, %v7243_v51  ;;  %v9242_v63 = vld [vmem:[#allocation9 + $0x194] sm:$0xf]  ;;  %v7386_v51 = vld [vmem:[#allocation12 + $0xe0] sm:$0xf] }
 0x171   :  { %2655 = vmatpush.bf16.msrb.mxu2 %v7150_v8  ;;  %v7230_v8 = vor.u32 %v9244_v59, %v7227_v60  ;;  %v7222_v2 = vor.u32 %v9242_v63, %v7219_v0  ;;  %v7396_v63 = vld [vmem:[#allocation12 + $0xf8] sm:$0xf0]  ;;  %v7370_v0 = vld [vmem:[#allocation12 + $0xc0] sm:$0xf] }
 0x172   :  { %2630 = vmatmul.bf16.vlgmr.msrb.gmra.mxu0 %v10187_v43  ;;  %2643 = vmatmul.bf16.vlgmr.msrb.gmra.mxu1 %v10185_v42  ;;  %v2039_v43 = vadd.f32 %v2038_v25, %v2026_v15  ;;  %v7242_v42 = vor.u32 %v9249_v11, %v7241_v10  ;;  %v7214_v15 = vor.u32 %v9240_v3, %v7211_v9  ;;  %v9280_v3 = vld [vmem:[#allocation12 + $0xc4] sm:$0xf]  ;;  %v7372_v9 = vld [vmem:[#allocation12 + $0xd0] sm:$0xf0] }
 0x174   :  { %2612 = vmatpush.bf16.msra.mxu3 %v7242_v42 }
 0x177   :  { %v2064_v16 = vpop.f32.mrf.mxu3  ;;  %v2027_v20 = vpop.f32.mrf.mxu0 }
 0x178   :  { %v2051_v12 = vpop.f32.mrf.mxu2  ;;  %v2040_v21 = vpop.f32.mrf.mxu1  ;;  %2613 = vmatpush.bf16.msra.mxu3 %v7234_v22 }
 0x179   :  { %v2052_v14 = vadd.f32 %v2051_v12, %v2039_v43 }
 0x17b   :  { %v2065_v19 = vadd.f32 %v2064_v16, %v2052_v14 }
 0x17c   :  { %2614 = vmatpush.bf16.msra.mxu3 %v7226_v13 }
 0x17d   :  { %v2174_v4 = vmax.f32 %v2065_v19, 0.0 }
 0x17f   :  { %v2178_v26 = vpack.c.bf16 %v2174_v4, %v2174_v4  ;;  %v2066_v29 = vpop.f32.mrf.mxu3  ;;  %v2244_v4 = vld [vmem:[#allocation11] sm:$0x3] }
 0x180   :  { %v2053_v27 = vpop.f32.mrf.mxu2  ;;  %2615 = vmatpush.bf16.msra.mxu3 %v7218_v32  ;;  %v2246_v23 = vperm.slane %v2244_v4, 0  ;;  %v2247_v31 = vperm.slane %v2244_v4, 1  ;;  %v7354_v4 = vld [vmem:[#allocation12 + $0xa0] sm:$0xf] }
 0x181   :  { %2604 = vmatmul.bf16.vlgmr.msra.gmra.mxu2 %v2178_v26 }
 0x184   :  { %2616 = vmatpush.bf16.msra.mxu3 %v7210_v28 }
 0x188   :  { %2661 = vmatpush.bf16.msrb.mxu3 %v7270_v41 }
 0x18c   :  { %2662 = vmatpush.bf16.msrb.mxu3 %v7262_v38 }
 0x18f   :  { %v2077_v48 = vpop.f32.mrf.mxu0  ;;  %v2090_v44 = vpop.f32.mrf.mxu1 }
 0x190   :  { %2663 = vmatpush.bf16.msrb.mxu3 %v7254_v33  ;;  %v2078_v1 = vadd.f32 %v2077_v48, %v471_v57  ;;  %v7394_v57 = vld [vmem:[#allocation12 + $0xe8] sm:$0xf] }
 0x191   :  { %2656 = vmatmul.bf16.vlgmr.msrb.gmra.mxu2 %v2178_v26 }
 0x192   :  { %v2091_v6 = vadd.f32 %v2090_v44, %v2078_v1 }
 0x194   :  { %2664 = vmatpush.bf16.msrb.mxu3 %v7246_v53  ;;  %v9284_v53 = vld [vmem:[#allocation12 + $0xe4] sm:$0xf] }
 0x197   :  { %v2116_v49 = vpop.f32.mrf.mxu3  ;;  %v2079_v52 = vpop.f32.mrf.mxu0 }
 0x198   :  { %v2103_v47 = vpop.f32.mrf.mxu2  ;;  %v2092_v54 = vpop.f32.mrf.mxu1  ;;  %2665 = vmatpush.bf16.msrb.mxu3 %v7238_v58  ;;  %v9286_v52 = vld [vmem:[#allocation12 + $0xec] sm:$0xf0]  ;;  %v9287_v58 = vld [vmem:[#allocation12 + $0xf4] sm:$0xf0] }
 0x199   :  { %v2104_v25 = vadd.f32 %v2103_v47, %v2091_v6  ;;  %v2676_v54 = vld [vmem:[%s10360_s1] sm:$0xff]  ;;  %v7387_v55 = vor.u32 %v9286_v52, %v7386_v51  ;;  %v7324_v52 = vld [vmem:[#allocation12 + $0x70] sm:$0xf0] }
 0x19b   :  { %v2117_v36 = vadd.f32 %v2116_v49, %v2104_v25  ;;  %2922 = vmatpush.bf16.msra.mxu0 %v7387_v55  ;;  %v7378_v25 = vld [vmem:[#allocation12 + $0xc8] sm:$0xf] }
 0x19c   :  { %2666 = vmatpush.bf16.msrb.mxu3 %v7230_v8  ;;  %v9285_v8 = vld [vmem:[#allocation12 + $0xec] sm:$0xf] }
 0x19d   :  { %v7399_v1 = vor.u32 %v9285_v8, %v7396_v63  ;;  %v7308_v63 = vld [vmem:[#allocation12 + $0x50] sm:$0xf0] }
 0x19f   :  { %v2118_v62 = vpop.f32.mrf.mxu3 }
 0x1a0   :  { %v2105_v61 = vpop.f32.mrf.mxu2  ;;  %2667 = vmatpush.bf16.msrb.mxu3 %v7222_v2  ;;  %v7395_v62 = vor.u32 %v9287_v58, %v7394_v57  ;;  %v9282_v2 = vld [vmem:[#allocation12 + $0xcc] sm:$0xf0]  ;;  %v9269_v57 = vld [vmem:[#allocation12 + $0x6c] sm:$0xf]  ;;  %v7332_v58 = vld [vmem:[#allocation12 + $0x78] sm:$0xf0] }
 0x1a1   :  { %v7391_v61 = vor.u32 %v9284_v53, %v7388_v56  ;;  %v7371_v6 = vor.u32 %v9282_v2, %v7370_v0  ;;  %v7330_v53 = vld [vmem:[#allocation12 + $0x68] sm:$0xf] }
 0x1a2   :  { %2948 = vmatpush.bf16.msra.mxu2 %v7395_v62  ;;  %v9264_v62 = vld [vmem:[#allocation12 + $0x44] sm:$0xf]  ;;  %v7314_v0 = vld [vmem:[#allocation12 + $0x48] sm:$0xf] }
 0x1a3   :  { %2935 = vmatpush.bf16.msra.mxu1 %v7391_v61  ;;  %2923 = vmatpush.bf16.msra.mxu0 %v7371_v6  ;;  %v9266_v61 = vld [vmem:[#allocation12 + $0x4c] sm:$0xf0]  ;;  %v7311_v2 = vor.u32 %v9264_v62, %v7308_v63  ;;  %v7316_v6 = vld [vmem:[#allocation12 + $0x58] sm:$0xf0]  ;;  %v7882_v62 = vld [vmem:[#allocation15 + $0x3c0] sm:$0xf] }
 0x1a4   :  { %2668 = vmatpush.bf16.msrb.mxu3 %v7214_v15  ;;  %v7375_v15 = vor.u32 %v9280_v3, %v7372_v9  ;;  %v9265_v9 = vld [vmem:[#allocation12 + $0x4c] sm:$0xf] }
 0x1a7   :  { %2936 = vmatpush.bf16.msra.mxu1 %v7375_v15  ;;  %v7319_v15 = vor.u32 %v9265_v9, %v7316_v6  ;;  %v7594_v6 = vld [vmem:[#allocation15 + $0x180] sm:$0xf] }
 0x1af   :  { %v2129_v5 = vpop.f32.mrf.mxu0  ;;  %v2142_v43 = vpop.f32.mrf.mxu1 }
 0x1b0   :  { %v2130_v10 = vadd.f32 %v2129_v5, %v2117_v36  ;;  %v9283_v36 = vld [vmem:[#allocation12 + $0xd4] sm:$0xf0]  ;;  %v9281_v5 = vld [vmem:[#allocation12 + $0xcc] sm:$0xf] }
 0x1b2   :  { %v2143_v11 = vadd.f32 %v2142_v43, %v2130_v10  ;;  %v7379_v10 = vor.u32 %v9283_v36, %v7378_v25  ;;  %v7290_v25 = vld [vmem:[#allocation12 + $0x20] sm:$0xf]  ;;  %v9262_v36 = vld [vmem:[#allocation12 + $0x2c] sm:$0xf0] }
 0x1b4   :  { %2949 = vmatpush.bf16.msra.mxu2 %v7379_v10  ;;  %v7292_v10 = vld [vmem:[#allocation12 + $0x30] sm:$0xf0] }
 0x1b7   :  { %v2155_v12 = vpop.f32.mrf.mxu2  ;;  %v2168_v14 = vpop.f32.mrf.mxu3 }
 0x1b8   :  { %v2156_v42 = vadd.f32 %v2155_v12, %v2143_v11  ;;  %v2131_v16 = vpop.f32.mrf.mxu0  ;;  %v2144_v17 = vpop.f32.mrf.mxu1  ;;  %v7380_v11 = vld [vmem:[#allocation12 + $0xd8] sm:$0xf0] }
 0x1ba   :  { %v2169_v18 = vadd.f32 %v2168_v14, %v2156_v42  ;;  %v7383_v14 = vor.u32 %v9281_v5, %v7380_v11  ;;  %v9260_v5 = vld [vmem:[#allocation12 + $0x24] sm:$0xf]  ;;  %v7298_v11 = vld [vmem:[#allocation12 + $0x28] sm:$0xf] }
 0x1bc   :  { %v2175_v19 = vmax.f32 %v2169_v18, 0.0 }
 0x1be   :  { %v2179_v20 = vpack.c.bf16 %v2175_v19, %v2175_v19 }
 0x1bf   :  { %v2157_v21 = vpop.f32.mrf.mxu2  ;;  %v2170_v22 = vpop.f32.mrf.mxu3 }
 0x1c0   :  { %2617 = vmatmul.bf16.vlgmr.msra.gmra.mxu3 %v2179_v20  ;;  %v2685_v22 = vld [vmem:[%s10361_s2] sm:$0xff] }
 0x1c1   :  { %2961 = vmatpush.bf16.msra.mxu3 %v7399_v1  ;;  %v9267_v1 = vld [vmem:[#allocation12 + $0x54] sm:$0xf0] }
 0x1c2   :  { %v7315_v3 = vor.u32 %v9267_v1, %v7314_v0 }
 0x1c5   :  { %2962 = vmatpush.bf16.msra.mxu3 %v7383_v14 }
 0x1cf   :  { %v2579_v24 = vpop.f32.mrf.mxu0  ;;  %v2592_v27 = vpop.f32.mrf.mxu1 }
 0x1d0   :  { %v2580_v26 = vadd.f32 %v2579_v24, %v2246_v23  ;;  %2669 = vmatmul.bf16.vlgmr.msrb.gmra.mxu3 %v2179_v20  ;;  %v9278_v23 = vld [vmem:[#allocation12 + $0xac] sm:$0xf0]  ;;  %v9276_v24 = vld [vmem:[#allocation12 + $0xa4] sm:$0xf] }
 0x1d2   :  { %v2593_v13 = vadd.f32 %v2592_v27, %v2580_v26  ;;  %v7355_v26 = vor.u32 %v9278_v23, %v7354_v4  ;;  %v7356_v27 = vld [vmem:[#allocation12 + $0xb0] sm:$0xf0]  ;;  %v7274_v4 = vld [vmem:[#allocation12] sm:$0xf]  ;;  %v9258_v23 = vld [vmem:[#allocation12 + $0xc] sm:$0xf0] }
 0x1d4   :  { %2924 = vmatpush.bf16.msra.mxu0 %v7355_v26  ;;  %v7275_v26 = vor.u32 %v9258_v23, %v7274_v4  ;;  %v9302_v4 = vld [vmem:[#allocation15 + $0x6c] sm:$0xf0] }
 0x1d5   :  { %v9402_v23 = vld [vmem:[#allocation15 + $0x38c] sm:$0xf0] }
 0x1d7   :  { %v2581_v29 = vpop.f32.mrf.mxu0  ;;  %v2594_v30 = vpop.f32.mrf.mxu1 }
 0x1d8   :  { %v9279_v29 = vld [vmem:[#allocation12 + $0xb4] sm:$0xf0]  ;;  %v7359_v30 = vor.u32 %v9276_v24, %v7356_v27  ;;  %v9256_v24 = vld [vmem:[#allocation12 + $0x4] sm:$0xf]  ;;  %v7276_v27 = vld [vmem:[#allocation12 + $0x10] sm:$0xf0] }
 0x1da   :  { %2937 = vmatpush.bf16.msra.mxu1 %v7359_v30  ;;  %v7279_v30 = vor.u32 %v9256_v24, %v7276_v27  ;;  %v7578_v24 = vld [vmem:[#allocation15 + $0x160] sm:$0xf] }
 0x1ef   :  { %v2631_v32 = vpop.f32.mrf.mxu0  ;;  %v2644_v35 = vpop.f32.mrf.mxu1 }
 0x1f0   :  { %v2632_v37 = vadd.f32 %v2631_v32, %v2247_v31  ;;  %v9277_v32 = vld [vmem:[#allocation12 + $0xac] sm:$0xf] }
 0x1f2   :  { %v2645_v28 = vadd.f32 %v2644_v35, %v2632_v37  ;;  %v7364_v37 = vld [vmem:[#allocation12 + $0xb8] sm:$0xf0] }
 0x1f3   :  { %v7367_v35 = vor.u32 %v9277_v32, %v7364_v37  ;;  %v9257_v32 = vld [vmem:[#allocation12 + $0xc] sm:$0xf]  ;;  %v7284_v37 = vld [vmem:[#allocation12 + $0x18] sm:$0xf0] }
 0x1f5   :  { %2963 = vmatpush.bf16.msra.mxu3 %v7367_v35  ;;  %v7287_v35 = vor.u32 %v9257_v32, %v7284_v37  ;;  %v9366_v32 = vld [vmem:[#allocation15 + $0x26c] sm:$0xf0]  ;;  %v7834_v37 = vld [vmem:[#allocation15 + $0x360] sm:$0xf] }
 0x1f7   :  { %v2633_v7 = vpop.f32.mrf.mxu0  ;;  %v2646_v39 = vpop.f32.mrf.mxu1 }
 0x1f8   :  { %v9274_v7 = vld [vmem:[#allocation12 + $0x8c] sm:$0xf0]  ;;  %v9272_v39 = vld [vmem:[#allocation12 + $0x84] sm:$0xf] }
 0x204   :  { %v2605_v41 = vpop.f32.mrf.mxu2 }
 0x205   :  { %v2606_v40 = vadd.f32 %v2605_v41, %v2593_v13  ;;  %v7362_v13 = vld [vmem:[#allocation12 + $0xa8] sm:$0xf] }
 0x206   :  { %v7363_v31 = vor.u32 %v9279_v29, %v7362_v13  ;;  %v7282_v13 = vld [vmem:[#allocation12 + $0x8] sm:$0xf]  ;;  %v9259_v29 = vld [vmem:[#allocation12 + $0x14] sm:$0xf0] }
 0x208   :  { %2950 = vmatpush.bf16.msra.mxu2 %v7363_v31  ;;  %v7283_v31 = vor.u32 %v9259_v29, %v7282_v13  ;;  %v7706_v29 = vld [vmem:[#allocation15 + $0x260] sm:$0xf] }
 0x20c   :  { %v2607_v34 = vpop.f32.mrf.mxu2 }
 0x20d   :  { %v7346_v34 = vld [vmem:[#allocation12 + $0x88] sm:$0xf] }
 0x214   :  { %v2657_v48 = vpop.f32.mrf.mxu2 }
 0x215   :  { %v2658_v33 = vadd.f32 %v2657_v48, %v2645_v28  ;;  %v7338_v28 = vld [vmem:[#allocation12 + $0x80] sm:$0xf]  ;;  %v9275_v48 = vld [vmem:[#allocation12 + $0x94] sm:$0xf0] }
 0x216   :  { %v7339_v41 = vor.u32 %v9274_v7, %v7338_v28  ;;  %v7514_v28 = vld [vmem:[#allocation15 + $0xe0] sm:$0xf]  ;;  %v9318_v7 = vld [vmem:[#allocation15 + $0xec] sm:$0xf0] }
 0x218   :  { %2925 = vmatpush.bf16.msra.mxu0 %v7339_v41  ;;  %v7515_v41 = vor.u32 %v9318_v7, %v7514_v28 }
 0x21c   :  { %v2659_v38 = vpop.f32.mrf.mxu2 }
 0x243   :  { %v2618_v44 = vpop.f32.mrf.mxu3 }
 0x244   :  { %v2619_v59 = vadd.f32 %v2618_v44, %v2606_v40  ;;  %v7340_v40 = vld [vmem:[#allocation12 + $0x90] sm:$0xf0]  ;;  %v7347_v44 = vor.u32 %v9275_v48, %v7346_v34  ;;  %v7498_v34 = vld [vmem:[#allocation15 + $0xc0] sm:$0xf] }
 0x245   :  { %v7343_v38 = vor.u32 %v9272_v39, %v7340_v40  ;;  %v7642_v39 = vld [vmem:[#allocation15 + $0x1e0] sm:$0xf]  ;;  %v9350_v40 = vld [vmem:[#allocation15 + $0x1ec] sm:$0xf0] }
 0x246   :  { %v2680_v12 = vmul.f32 %v2619_v59, %v2619_v59  ;;  %2951 = vmatpush.bf16.msra.mxu2 %v7347_v44  ;;  %v9314_v48 = vld [vmem:[#allocation15 + $0xcc] sm:$0xf0]  ;;  %v7626_v44 = vld [vmem:[#allocation15 + $0x1c0] sm:$0xf] }
 0x247   :  { %2938 = vmatpush.bf16.msra.mxu1 %v7343_v38  ;;  %v7643_v38 = vor.u32 %v9350_v40, %v7642_v39  ;;  %v7434_v39 = vld [vmem:[#allocation15 + $0x40] sm:$0xf] }
 0x248   :  { %v7562_v40 = vld [vmem:[#allocation15 + $0x140] sm:$0xf] }
 0x24b   :  { %v2620_v46 = vpop.f32.mrf.mxu3 }
 0x24c   :  { %v7348_v46 = vld [vmem:[#allocation12 + $0x98] sm:$0xf0] }
 0x253   :  { %v2670_v47 = vpop.f32.mrf.mxu3 }
 0x254   :  { %v2671_v49 = vadd.f32 %v2670_v47, %v2658_v33  ;;  %v7351_v33 = vor.u32 %v9273_v45, %v7348_v46  ;;  %v7322_v47 = vld [vmem:[#allocation12 + $0x60] sm:$0xf]  ;;  %v9346_v45 = vld [vmem:[#allocation15 + $0x1cc] sm:$0xf0]  ;;  %v7770_v46 = vld [vmem:[#allocation15 + $0x2e0] sm:$0xf] }
 0x256   :  { %v2674_v50 = vmul.f32 1.442695, %v2671_v49  ;;  %v10203_v17 = vmul.f32 2.0, %v2671_v49  ;;  %v9270_v49 = vld [vmem:[#allocation12 + $0x6c] sm:$0xf0]  ;;  %2964 = vmatpush.bf16.msra.mxu3 %v7351_v33  ;;  %v7499_v33 = vor.u32 %v9314_v48, %v7498_v34 }
 0x257   :  { %v7323_v51 = vor.u32 %v9270_v49, %v7322_v47  ;;  %v9382_v47 = vld [vmem:[#allocation15 + $0x2ec] sm:$0xf0]  ;;  %v7898_v49 = vld [vmem:[#allocation15 + $0x3e0] sm:$0xf] }
 0x258   :  { %9694 = vpow2.f32 %v2674_v50  ;;  %v9268_v50 = vld [vmem:[#allocation12 + $0x64] sm:$0xf]  ;;  %v9330_v34 = vld [vmem:[#allocation15 + $0x14c] sm:$0xf0] }
 0x259   :  { %v7327_v55 = vor.u32 %v9268_v50, %v7324_v52  ;;  %2926 = vmatpush.bf16.msra.mxu0 %v7323_v51  ;;  %v9414_v50 = vld [vmem:[#allocation15 + $0x3ec] sm:$0xf0]  ;;  %v7627_v51 = vor.u32 %v9346_v45, %v7626_v44  ;;  %v7771_v52 = vor.u32 %v9382_v47, %v7770_v46  ;;  %v7690_v45 = vld [vmem:[#allocation15 + $0x240] sm:$0xf] }
 0x25a   :  { %v7818_v47 = vld [vmem:[#allocation15 + $0x340] sm:$0xf] }
 0x25b   :  { %v2672_v60 = vpop.f32.mrf.mxu3  ;;  %2939 = vmatpush.bf16.msra.mxu1 %v7327_v55  ;;  %v9310_v55 = vld [vmem:[#allocation15 + $0xac] sm:$0xf0] }
 0x25c   :  { %v7306_v60 = vld [vmem:[#allocation12 + $0x40] sm:$0xf] }
 0x25d   :  { %v7307_v8 = vor.u32 %v9266_v61, %v7306_v60 }
 0x25e   :  { %v9695_v43 = vpop.eup %9694 }
 0x25f   :  { %v2677_v42 = vmul.f32 %v9695_v43, %v2676_v54  ;;  %v2679_v16 = vmul.f32 %v9695_v43, %v9695_v43  ;;  %v9271_v54 = vld [vmem:[#allocation12 + $0x74] sm:$0xf0]  ;;  %2927 = vmatpush.bf16.msra.mxu0 %v7307_v8  ;;  %2940 = vmatpush.bf16.msra.mxu1 %v7311_v2  ;;  %v7291_v43 = vor.u32 %v9262_v36, %v7290_v25  ;;  %v9410_v8 = vld [vmem:[#allocation15 + $0x3cc] sm:$0xf0]  ;;  %v7466_v2 = vld [vmem:[#allocation15 + $0x80] sm:$0xf] }
 0x260   :  { %v7331_v56 = vor.u32 %v9271_v54, %v7330_v53  ;;  %v7899_v53 = vor.u32 %v9414_v50, %v7898_v49  ;;  %v7482_v54 = vld [vmem:[#allocation15 + $0xa0] sm:$0xf]  ;;  %v7883_v1 = vor.u32 %v9410_v8, %v7882_v62  ;;  %v9374_v25 = vld [vmem:[#allocation15 + $0x2ac] sm:$0xf0] }
 0x261   :  { %v10205_v18 = vadd.f32 %v2677_v42, %v2619_v59  ;;  %v10207_v19 = vadd.f32 %v2680_v12, %v2679_v16  ;;  %v7335_v59 = vor.u32 %v9269_v57, %v7332_v58  ;;  %v9263_v12 = vld [vmem:[#allocation12 + $0x34] sm:$0xf0]  ;;  %v7295_v42 = vor.u32 %v9260_v5, %v7292_v10  ;;  %v9261_v16 = vld [vmem:[#allocation12 + $0x2c] sm:$0xf]  ;;  %v9342_v57 = vld [vmem:[#allocation15 + $0x1ac] sm:$0xf0] }
 0x262   :  { %2952 = vmatpush.bf16.msra.mxu2 %v7331_v56  ;;  %v7299_v14 = vor.u32 %v9263_v12, %v7298_v11  ;;  %v7610_v56 = vld [vmem:[#allocation15 + $0x1a0] sm:$0xf]  ;;  %v7483_v0 = vor.u32 %v9310_v55, %v7482_v54  ;;  %v9338_v36 = vld [vmem:[#allocation15 + $0x18c] sm:$0xf0] }
 0x263   :  { %v2704_v20 = vmul.f32 %v10205_v18, %v10205_v18  ;;  %v2683_v21 = vsub.f32 %v10207_v19, %v10203_v17  ;;  %2965 = vmatpush.bf16.msra.mxu3 %v7335_v59  ;;  %2928 = vmatpush.bf16.msra.mxu0 %v7291_v43  ;;  %v7754_v58 = vld [vmem:[#allocation15 + $0x2c0] sm:$0xf]  ;;  %v9378_v59 = vld [vmem:[#allocation15 + $0x2cc] sm:$0xf0]  ;;  %v7611_v9 = vor.u32 %v9342_v57, %v7610_v56 }
 0x264   :  { %2941 = vmatpush.bf16.msra.mxu1 %v7295_v42  ;;  %v7755_v61 = vor.u32 %v9378_v59, %v7754_v58  ;;  %v7866_v5 = vld [vmem:[#allocation15 + $0x3a0] sm:$0xf]  ;;  %v9406_v43 = vld [vmem:[#allocation15 + $0x3ac] sm:$0xf0] }
 0x265   :  { %2705 = vadd.xlane.f32.xlu0 %v2704_v20  ;;  %v7300_v20 = vld [vmem:[#allocation12 + $0x38] sm:$0xf0]  ;;  %v7867_v11 = vor.u32 %v9406_v43, %v7866_v5  ;;  %v7722_v42 = vld [vmem:[#allocation15 + $0x280] sm:$0xf]  ;;  %v9394_v49 = vld [vmem:[#allocation15 + $0x34c] sm:$0xf0] }
 0x266   :  { %2953 = vmatpush.bf16.msra.mxu2 %v7315_v3  ;;  %v9306_v3 = vld [vmem:[#allocation15 + $0x8c] sm:$0xf0]  ;;  %v7546_v54 = vld [vmem:[#allocation15 + $0x120] sm:$0xf]  ;;  %v7819_v58 = vor.u32 %v9394_v49, %v7818_v47  ;;  %v7756_v47 = vld [vmem:[#allocation15 + $0x2d0] sm:$0xf0] }
 0x267   :  { %2966 = vmatpush.bf16.msra.mxu3 %v7319_v15  ;;  %2929 = vmatpush.bf16.msra.mxu0 %v7275_v26  ;;  %v7738_v15 = vld [vmem:[#allocation15 + $0x2a0] sm:$0xf]  ;;  %v7467_v12 = vor.u32 %v9306_v3, %v7466_v2  ;;  %v9334_v26 = vld [vmem:[#allocation15 + $0x16c] sm:$0xf0]  ;;  %v7271_v2 = vadd.f32 -1.0, %v2683_v21 }
 0x268   :  { %2942 = vmatpush.bf16.msra.mxu1 %v7279_v30  ;;  %v7739_v10 = vor.u32 %v9374_v25, %v7738_v15  ;;  %v7579_v7 = vor.u32 %v9334_v26, %v7578_v24  ;;  %v9326_v55 = vld [vmem:[#allocation15 + $0x12c] sm:$0xf0]  ;;  %v7674_v59 = vld [vmem:[#allocation15 + $0x220] sm:$0xf]  ;;  %v7644_v21 = vld [vmem:[#allocation15 + $0x1f0] sm:$0xf0] }
 0x269   :  { %v7802_v62 = vld [vmem:[#allocation15 + $0x320] sm:$0xf]  ;;  %v9390_v8 = vld [vmem:[#allocation15 + $0x32c] sm:$0xf0]  ;;  %v7547_v3 = vor.u32 %v9326_v55, %v7546_v54  ;;  %v7772_v26 = vld [vmem:[#allocation15 + $0x2f0] sm:$0xf0] }
 0x26a   :  { %2954 = vmatpush.bf16.msra.mxu2 %v7299_v14  ;;  %v9370_v14 = vld [vmem:[#allocation15 + $0x28c] sm:$0xf0]  ;;  %v7530_v15 = vld [vmem:[#allocation15 + $0x100] sm:$0xf]  ;;  %v7803_v17 = vor.u32 %v9390_v8, %v7802_v62  ;;  %v9408_v49 = vld [vmem:[#allocation15 + $0x3c4] sm:$0xf] }
 0x26b   :  { %3760 = vmatpush.bf16.msrb.mxu0 %v7515_v41  ;;  %v7723_v27 = vor.u32 %v9370_v14, %v7722_v42  ;;  %v9298_v41 = vld [vmem:[#allocation15 + $0x4c] sm:$0xf0]  ;;  %v7658_v42 = vld [vmem:[#allocation15 + $0x200] sm:$0xf]  ;;  %v7468_v54 = vld [vmem:[#allocation15 + $0x90] sm:$0xf0] }
 0x26c   :  { %3773 = vmatpush.bf16.msrb.mxu1 %v7643_v38  ;;  %v7707_v38 = vor.u32 %v9366_v32, %v7706_v29  ;;  %v7435_v46 = vor.u32 %v9298_v41, %v7434_v39  ;;  %v9322_v25 = vld [vmem:[#allocation15 + $0x10c] sm:$0xf0]  ;;  %v9344_v32 = vld [vmem:[#allocation15 + $0x1c4] sm:$0xf]  ;;  %v7868_v8 = vld [vmem:[#allocation15 + $0x3b0] sm:$0xf0] }
 0x26d   :  { %v9354_v14 = vld [vmem:[#allocation15 + $0x20c] sm:$0xf0]  ;;  %v7531_v24 = vor.u32 %v9322_v25, %v7530_v15  ;;  %v9336_v55 = vld [vmem:[#allocation15 + $0x184] sm:$0xf]  ;;  %v7724_v15 = vld [vmem:[#allocation15 + $0x290] sm:$0xf0] }
 0x26e   :  { %2955 = vmatpush.bf16.msra.mxu2 %v7283_v31 }
 0x26f   :  { %3761 = vmatpush.bf16.msrb.mxu0 %v7499_v33  ;;  %v9362_v33 = vld [vmem:[#allocation15 + $0x24c] sm:$0xf0] }
 0x270   :  { %3774 = vmatpush.bf16.msrb.mxu1 %v7627_v51  ;;  %v7563_v51 = vor.u32 %v9330_v34, %v7562_v40  ;;  %v7691_v57 = vor.u32 %v9362_v33, %v7690_v45  ;;  %v9308_v34 = vld [vmem:[#allocation15 + $0xa4] sm:$0xf] }
 0x271   :  { %v9376_v33 = vld [vmem:[#allocation15 + $0x2c4] sm:$0xf] }
 0x272   :  { %3786 = vmatpush.bf16.msrb.mxu2 %v7771_v52  ;;  %v7418_v52 = vld [vmem:[#allocation15 + $0x20] sm:$0xf] }
 0x273   :  { %3762 = vmatpush.bf16.msrb.mxu0 %v7483_v0 }
 0x274   :  { %3775 = vmatpush.bf16.msrb.mxu1 %v7611_v9  ;;  %v7402_v9 = vld [vmem:[#allocation15] sm:$0xf] }
 0x276   :  { %3787 = vmatpush.bf16.msrb.mxu2 %v7755_v61 }
 0x277   :  { %3763 = vmatpush.bf16.msrb.mxu0 %v7467_v12  ;;  %v9348_v12 = vld [vmem:[#allocation15 + $0x1e4] sm:$0xf] }
 0x279   :  { %2688 = vperm.xlu0 %9693, %v2685_v22   ;;  %v7303_v22 = vor.u32 %v9261_v16, %v7300_v20  ;;  %v7850_v16 = vld [vmem:[#allocation15 + $0x380] sm:$0xf]  ;;  %v7595_v20 = vor.u32 %v9338_v36, %v7594_v6  ;;  %v9290_v6 = vld [vmem:[#allocation15 + $0xc] sm:$0xf0] }
 0x27a   :  { %3788 = vmatpush.bf16.msrb.mxu2 %v7739_v10  ;;  %v7851_v13 = vor.u32 %v9402_v23, %v7850_v16  ;;  %v9316_v10 = vld [vmem:[#allocation15 + $0xe4] sm:$0xf]  ;;  %v7786_v16 = vld [vmem:[#allocation15 + $0x300] sm:$0xf]  ;;  %v7403_v23 = vor.u32 %v9290_v6, %v7402_v9 }
 0x27b   :  { %2967 = vmatpush.bf16.msra.mxu3 %v7303_v22  ;;  %v7450_v22 = vld [vmem:[#allocation15 + $0x60] sm:$0xf]  ;;  %3776 = vmatpush.bf16.msrb.mxu1 %v7595_v20  ;;  %v9386_v20 = vld [vmem:[#allocation15 + $0x30c] sm:$0xf0]  ;;  %v9368_v6 = vld [vmem:[#allocation15 + $0x284] sm:$0xf] }
 0x27c   :  { %v7451_v31 = vor.u32 %v9302_v4, %v7450_v22  ;;  %v9380_v22 = vld [vmem:[#allocation15 + $0x2e4] sm:$0xf] }
 0x27e   :  { %3789 = vmatpush.bf16.msrb.mxu2 %v7723_v27  ;;  %3764 = vmatpush.bf16.msrb.mxu0 %v7451_v31  ;;  %v9412_v27 = vld [vmem:[#allocation15 + $0x3e4] sm:$0xf]  ;;  %v7500_v31 = vld [vmem:[#allocation15 + $0xd0] sm:$0xf0] }
 0x27f   :  { %2968 = vmatpush.bf16.msra.mxu3 %v7287_v35  ;;  %v9398_v35 = vld [vmem:[#allocation15 + $0x36c] sm:$0xf0]  ;;  %3777 = vmatpush.bf16.msrb.mxu1 %v7579_v7  ;;  %v7775_v7 = vor.u32 %v9380_v22, %v7772_v26  ;;  %v7420_v26 = vld [vmem:[#allocation15 + $0x30] sm:$0xf0] }
 0x280   :  { %v7835_v44 = vor.u32 %v9398_v35, %v7834_v37  ;;  %v7628_v37 = vld [vmem:[#allocation15 + $0x1d0] sm:$0xf0]  ;;  %v7659_v35 = vor.u32 %v9354_v14, %v7658_v42  ;;  %v9364_v14 = vld [vmem:[#allocation15 + $0x264] sm:$0xf] }
 0x281   :  { %v7631_v40 = vor.u32 %v9344_v32, %v7628_v37  ;;  %v9392_v32 = vld [vmem:[#allocation15 + $0x344] sm:$0xf] }
 0x282   :  { %3790 = vmatpush.bf16.msrb.mxu2 %v7707_v38  ;;  %3765 = vmatpush.bf16.msrb.mxu0 %v7435_v46  ;;  %v9340_v38 = vld [vmem:[#allocation15 + $0x1a4] sm:$0xf] }
 0x283   :  { %3799 = vmatpush.bf16.msrb.mxu3 %v7899_v53  ;;  %v9294_v53 = vld [vmem:[#allocation15 + $0x2c] sm:$0xf0]  ;;  %3778 = vmatpush.bf16.msrb.mxu1 %v7563_v51  ;;  %v7884_v51 = vld [vmem:[#allocation15 + $0x3d0] sm:$0xf0] }
 0x284   :  { %v7419_v61 = vor.u32 %v9294_v53, %v7418_v52  ;;  %v7887_v52 = vor.u32 %v9408_v49, %v7884_v51  ;;  %v9304_v53 = vld [vmem:[#allocation15 + $0x84] sm:$0xf] }
 0x285   :  { %v9352_v49 = vld [vmem:[#allocation15 + $0x204] sm:$0xf] }
 0x286   :  { %3791 = vmatpush.bf16.msrb.mxu2 %v7691_v57  ;;  %3766 = vmatpush.bf16.msrb.mxu0 %v7419_v61  ;;  %v7596_v57 = vld [vmem:[#allocation15 + $0x190] sm:$0xf0]  ;;  %v9404_v61 = vld [vmem:[#allocation15 + $0x3a4] sm:$0xf] }
 0x287   :  { %3800 = vmatpush.bf16.msrb.mxu3 %v7883_v1  ;;  %3779 = vmatpush.bf16.msrb.mxu1 %v7547_v3  ;;  %v9300_v1 = vld [vmem:[#allocation15 + $0x64] sm:$0xf] }
 0x288   :  { %v9332_v3 = vld [vmem:[#allocation15 + $0x164] sm:$0xf] }
 0x28a   :  { %3767 = vmatpush.bf16.msrb.mxu0 %v7403_v23 }
 0x28b   :  { %3801 = vmatpush.bf16.msrb.mxu3 %v7867_v11  ;;  %v7516_v11 = vld [vmem:[#allocation15 + $0xf0] sm:$0xf0]  ;;  %3780 = vmatpush.bf16.msrb.mxu1 %v7531_v24  ;;  %v9292_v24 = vld [vmem:[#allocation15 + $0x24] sm:$0xf] }
 0x28c   :  { %v7519_v29 = vor.u32 %v9316_v10, %v7516_v11  ;;  %v9296_v10 = vld [vmem:[#allocation15 + $0x44] sm:$0xf] }
 0x28f   :  { %3802 = vmatpush.bf16.msrb.mxu3 %v7851_v13  ;;  %v7900_v13 = vld [vmem:[#allocation15 + $0x3f0] sm:$0xf0] }
 0x290   :  { %v7903_v39 = vor.u32 %v9412_v27, %v7900_v13  ;;  %v7423_v27 = vor.u32 %v9292_v24, %v7420_v26  ;;  %v9324_v13 = vld [vmem:[#allocation15 + $0x124] sm:$0xf]  ;;  %v9383_v24 = vld [vmem:[#allocation15 + $0x2f4] sm:$0xf0]  ;;  %v7906_v26 = vld [vmem:[#allocation15 + $0x3e8] sm:$0xf] }
 0x293   :  { %3803 = vmatpush.bf16.msrb.mxu3 %v7835_v44  ;;  %v7612_v44 = vld [vmem:[#allocation15 + $0x1b0] sm:$0xf0] }
 0x294   :  { %v7615_v46 = vor.u32 %v9340_v38, %v7612_v44  ;;  %v9356_v38 = vld [vmem:[#allocation15 + $0x224] sm:$0xf]  ;;  %v7676_v44 = vld [vmem:[#allocation15 + $0x230] sm:$0xf0] }
 0x297   :  { %3804 = vmatpush.bf16.msrb.mxu3 %v7819_v58  ;;  %v7599_v58 = vor.u32 %v9336_v55, %v7596_v57 }
 0x29b   :  { %3805 = vmatpush.bf16.msrb.mxu3 %v7803_v17  ;;  %v9328_v17 = vld [vmem:[#allocation15 + $0x144] sm:$0xf] }
 0x2d8   :  { %v2706_v60 = vpop.xlane.xlu0 %2705 }
 0x2d9   :  { %v10216_v63 = vmax.f32 %v2706_v60, 1e-24  ;;  %v9358_v60 = vld [vmem:[#allocation15 + $0x22c] sm:$0xf0] }
 0x2da   :  { %v7675_v36 = vor.u32 %v9358_v60, %v7674_v59  ;;  %v9372_v59 = vld [vmem:[#allocation15 + $0x2a4] sm:$0xf]  ;;  %v7740_v60 = vld [vmem:[#allocation15 + $0x2b0] sm:$0xf0] }
 0x2db   :  { %9696 = vrsqrt.f32 %v10216_v63  ;;  %vm2714_vm1 = vweird.f32 %v10216_v63  ;;  %v7743_v62 = vor.u32 %v9372_v59, %v7740_v60  ;;  %v2752_v60 = vld [vmem:[#allocation14] sm:$0xf] }
 0x2dc   :  { %3792 = vmatpush.bf16.msrb.mxu2 %v7675_v36  ;;  %v7727_v36 = vor.u32 %v9368_v6, %v7724_v15  ;;  %v9319_v6 = vld [vmem:[#allocation15 + $0xf4] sm:$0xf0]  ;;  %v7650_v15 = vld [vmem:[#allocation15 + $0x1e8] sm:$0xf] }
 0x2e0   :  { %3793 = vmatpush.bf16.msrb.mxu2 %v7659_v35  ;;  %v7820_v35 = vld [vmem:[#allocation15 + $0x350] sm:$0xf0] }
 0x2e1   :  { %v10219_v30 = vpop.eup %9696 }
 0x2e2   :  { %v2709_v28 = vmul.f32 %v10219_v30, %v10216_v63  ;;  %vm2715_vm0 = vweird.f32 %v10219_v30 }
 0x2e3   :  { %vm10229_vm2 = vmor %vm2714_vm1, %vm2715_vm0 }
 0x2e4   :  { %v2710_v48 = vmul.f32 %v10219_v30, %v2709_v28  ;;  %v7787_v28 = vor.u32 %v9386_v20, %v7786_v16  ;;  %v7708_v16 = vld [vmem:[#allocation15 + $0x270] sm:$0xf0]  ;;  %v9396_v20 = vld [vmem:[#allocation15 + $0x364] sm:$0xf] }
 0x2e5   :  { %v7711_v22 = vor.u32 %v9364_v14, %v7708_v16  ;;  %v7634_v14 = vld [vmem:[#allocation15 + $0x1c8] sm:$0xf]  ;;  %v9347_v16 = vld [vmem:[#allocation15 + $0x1d4] sm:$0xf0] }
 0x2e6   :  { %v2711_v50 = vmul.f32 0.5, %v2710_v48  ;;  %3806 = vmatpush.bf16.msrb.mxu3 %v7787_v28  ;;  %v7484_v48 = vld [vmem:[#allocation15 + $0xb0] sm:$0xf0]  ;;  %v7823_v28 = vor.u32 %v9392_v32, %v7820_v35  ;;  %v7490_v32 = vld [vmem:[#allocation15 + $0xa8] sm:$0xf] }
 0x2e7   :  { %v7487_v45 = vor.u32 %v9308_v34, %v7484_v48  ;;  %v7532_v34 = vld [vmem:[#allocation15 + $0x110] sm:$0xf0]  ;;  %v7618_v35 = vld [vmem:[#allocation15 + $0x1a8] sm:$0xf] }
 0x2e8   :  { %v2712_v56 = vsub.f32 1.5, %v2711_v50  ;;  %v7759_v50 = vor.u32 %v9376_v33, %v7756_v47  ;;  %v7804_v33 = vld [vmem:[#allocation15 + $0x330] sm:$0xf0] }
 0x2ea   :  { %v2713_v0 = vmul.f32 %v10219_v30, %v2712_v56  ;;  %v7471_v56 = vor.u32 %v9304_v53, %v7468_v54  ;;  %v7788_v53 = vld [vmem:[#allocation15 + $0x310] sm:$0xf0] }
 0x2eb   :  { %v2689_v63 = vpop.permute.xlu0 %2688 }
 0x2ec   :  { %v2717_v5 = vsel %vm10229_vm2, %v10219_v30, %v2713_v0  ;;  %v2691_v43 = vmul.f32 %v7271_v2, %v2689_v63  ;;  %v7647_v30 = vor.u32 %v9348_v12, %v7644_v21  ;;  %v7871_v0 = vor.u32 %v9404_v61, %v7868_v8  ;;  %v7452_v2 = vld [vmem:[#allocation15 + $0x70] sm:$0xf0] }
 0x2ed   :  { %v2718_v19 = vmul.f32 %v2717_v5, %v10205_v18  ;;  %v9312_v18 = vld [vmem:[#allocation15 + $0xc4] sm:$0xf]  ;;  %v7455_v9 = vor.u32 %v9300_v1, %v7452_v2  ;;  %v7580_v63 = vld [vmem:[#allocation15 + $0x170] sm:$0xf0]  ;;  %v2755_v8 = vperm.slane %v2752_v60, 1 }
 0x2ee   :  { %2692 = vadd.xlane.f32.xlu1 %v2691_v43  ;;  %v7503_v41 = vor.u32 %v9312_v18, %v7500_v31  ;;  %v7583_v25 = vor.u32 %v9332_v3, %v7580_v63  ;;  %v9400_v5 = vld [vmem:[#allocation15 + $0x384] sm:$0xf]  ;;  %v7852_v43 = vld [vmem:[#allocation15 + $0x390] sm:$0xf0]  ;;  %v7522_v3 = vld [vmem:[#allocation15 + $0xe8] sm:$0xf] }
 0x2ef   :  { %v2719_v4 = vpack.c.bf16 %v2718_v19, %v2718_v19  ;;  %v7855_v11 = vor.u32 %v9400_v5, %v7852_v43  ;;  %v7436_v12 = vld [vmem:[#allocation15 + $0x50] sm:$0xf0]  ;;  %v9360_v18 = vld [vmem:[#allocation15 + $0x244] sm:$0xf]  ;;  %v2756_v43 = vperm.slane %v2752_v60, 2 }
 0x2f0   :  { %v7564_v19 = vld [vmem:[#allocation15 + $0x150] sm:$0xf0]  ;;  %v7439_v21 = vor.u32 %v9296_v10, %v7436_v12  ;;  %v2757_v10 = vperm.slane %v2752_v60, 3 }
 0x2f1   :  { %2930 = vmatmul.bf16.vlgmr.msra.gmra.mxu0 %v2719_v4  ;;  %2943 = vmatmul.bf16.vlgmr.msra.gmra.mxu1 %v2719_v4  ;;  %v7567_v42 = vor.u32 %v9328_v17, %v7564_v19  ;;  %v7692_v31 = vld [vmem:[#allocation15 + $0x250] sm:$0xf0]  ;;  %v7506_v17 = vld [vmem:[#allocation15 + $0xc8] sm:$0xf]  ;;  %v9315_v19 = vld [vmem:[#allocation15 + $0xd4] sm:$0xf0] }
 0x2f2   :  { %2956 = vmatmul.bf16.vlgmr.msra.gmra.mxu2 %v2719_v4  ;;  %2969 = vmatmul.bf16.vlgmr.msra.gmra.mxu3 %v2719_v4  ;;  %v7836_v4 = vld [vmem:[#allocation15 + $0x370] sm:$0xf0]  ;;  %v7695_v37 = vor.u32 %v9360_v18, %v7692_v31  ;;  %v7635_v18 = vor.u32 %v9347_v16, %v7634_v14  ;;  %v9415_v31 = vld [vmem:[#allocation15 + $0x3f4] sm:$0xf0]  ;;  %v7714_v14 = vld [vmem:[#allocation15 + $0x268] sm:$0xf] }
 0x2f3   :  { %3812 = vmatpush.bf16.msra.mxu0 %v7519_v29  ;;  %3825 = vmatpush.bf16.msra.mxu1 %v7647_v30  ;;  %v7839_v23 = vor.u32 %v9396_v20, %v7836_v4  ;;  %v7548_v29 = vld [vmem:[#allocation15 + $0x130] sm:$0xf0]  ;;  %v7507_v4 = vor.u32 %v9315_v19, %v7506_v17  ;;  %v9367_v16 = vld [vmem:[#allocation15 + $0x274] sm:$0xf0] }
 0x2f4   :  { %3838 = vmatpush.bf16.msra.mxu2 %v7775_v7  ;;  %3851 = vmatpush.bf16.msra.mxu3 %v7903_v39  ;;  %v7551_v30 = vor.u32 %v9324_v13, %v7548_v29  ;;  %v9288_v7 = vld [vmem:[#allocation15 + $0x4] sm:$0xf]  ;;  %v7404_v39 = vld [vmem:[#allocation15 + $0x10] sm:$0xf0] }
 0x2f7   :  { %3813 = vmatpush.bf16.msra.mxu0 %v7503_v41  ;;  %3826 = vmatpush.bf16.msra.mxu1 %v7631_v40  ;;  %v9320_v41 = vld [vmem:[#allocation15 + $0x104] sm:$0xf]  ;;  %v7407_v40 = vor.u32 %v9288_v7, %v7404_v39 }
 0x2f8   :  { %3839 = vmatpush.bf16.msra.mxu2 %v7759_v50  ;;  %3852 = vmatpush.bf16.msra.mxu3 %v7887_v52  ;;  %v7535_v48 = vor.u32 %v9320_v41, %v7532_v34  ;;  %v7660_v50 = vld [vmem:[#allocation15 + $0x210] sm:$0xf0]  ;;  %v9384_v52 = vld [vmem:[#allocation15 + $0x304] sm:$0xf] }
 0x2f9   :  { %v7663_v51 = vor.u32 %v9352_v49, %v7660_v50  ;;  %v7791_v54 = vor.u32 %v9384_v52, %v7788_v53  ;;  %v7474_v49 = vld [vmem:[#allocation15 + $0x88] sm:$0xf]  ;;  %v9307_v50 = vld [vmem:[#allocation15 + $0x94] sm:$0xf0] }
 0x2fa   :  { %v9339_v52 = vld [vmem:[#allocation15 + $0x194] sm:$0xf0] }
 0x2fb   :  { %3814 = vmatpush.bf16.msra.mxu0 %v7487_v45  ;;  %3827 = vmatpush.bf16.msra.mxu1 %v7615_v46  ;;  %v7679_v45 = vor.u32 %v9356_v38, %v7676_v44  ;;  %v9388_v46 = vld [vmem:[#allocation15 + $0x324] sm:$0xf]  ;;  %v9379_v38 = vld [vmem:[#allocation15 + $0x2d4] sm:$0xf0] }
 0x2fc   :  { %3840 = vmatpush.bf16.msra.mxu2 %v7743_v62  ;;  %3853 = vmatpush.bf16.msra.mxu3 %v7871_v0  ;;  %v7807_v47 = vor.u32 %v9388_v46, %v7804_v33  ;;  %v2754_v62 = vperm.slane %v2752_v60, 0  ;;  %v7890_v33 = vld [vmem:[#allocation15 + $0x3c8] sm:$0xf]  ;;  %v9375_v60 = vld [vmem:[#allocation15 + $0x2b4] sm:$0xf0] }
 0x2ff   :  { %3815 = vmatpush.bf16.msra.mxu0 %v7471_v56  ;;  %3828 = vmatpush.bf16.msra.mxu1 %v7599_v58 }
 0x300   :  { %3841 = vmatpush.bf16.msra.mxu2 %v7727_v36  ;;  %3854 = vmatpush.bf16.msra.mxu3 %v7855_v11  ;;  %v7523_v11 = vor.u32 %v9319_v6, %v7522_v3  ;;  %v9371_v6 = vld [vmem:[#allocation15 + $0x294] sm:$0xf0] }
 0x303   :  { %3816 = vmatpush.bf16.msra.mxu0 %v7455_v9  ;;  %3829 = vmatpush.bf16.msra.mxu1 %v7583_v25  ;;  %v9351_v25 = vld [vmem:[#allocation15 + $0x1f4] sm:$0xf0] }
 0x304   :  { %3842 = vmatpush.bf16.msra.mxu2 %v7711_v22  ;;  %3855 = vmatpush.bf16.msra.mxu3 %v7839_v23  ;;  %v7651_v12 = vor.u32 %v9351_v25, %v7650_v15  ;;  %v7778_v23 = vld [vmem:[#allocation15 + $0x2e8] sm:$0xf]  ;;  %v9403_v25 = vld [vmem:[#allocation15 + $0x394] sm:$0xf0] }
 0x305   :  { %v7779_v41 = vor.u32 %v9383_v24, %v7778_v23  ;;  %v7858_v15 = vld [vmem:[#allocation15 + $0x388] sm:$0xf] }
 0x306   :  { %v7859_v19 = vor.u32 %v9403_v25, %v7858_v15  ;;  %v7426_v24 = vld [vmem:[#allocation15 + $0x28] sm:$0xf] }
 0x307   :  { %3817 = vmatpush.bf16.msra.mxu0 %v7439_v21  ;;  %3830 = vmatpush.bf16.msra.mxu1 %v7567_v42 }
 0x308   :  { %3843 = vmatpush.bf16.msra.mxu2 %v7695_v37  ;;  %3856 = vmatpush.bf16.msra.mxu3 %v7823_v28  ;;  %v9311_v37 = vld [vmem:[#allocation15 + $0xb4] sm:$0xf0] }
 0x309   :  { %v9343_v28 = vld [vmem:[#allocation15 + $0x1b4] sm:$0xf0]  ;;  %v7491_v34 = vor.u32 %v9311_v37, %v7490_v32  ;;  %v7826_v32 = vld [vmem:[#allocation15 + $0x348] sm:$0xf] }
 0x30a   :  { %v7619_v46 = vor.u32 %v9343_v28, %v7618_v35  ;;  %v9395_v37 = vld [vmem:[#allocation15 + $0x354] sm:$0xf0] }
 0x30b   :  { %3818 = vmatpush.bf16.msra.mxu0 %v7423_v27  ;;  %3831 = vmatpush.bf16.msra.mxu1 %v7551_v30 }
 0x30c   :  { %3844 = vmatpush.bf16.msra.mxu2 %v7679_v45  ;;  %3857 = vmatpush.bf16.msra.mxu3 %v7807_v47  ;;  %v9411_v47 = vld [vmem:[#allocation15 + $0x3d4] sm:$0xf0] }
 0x30f   :  { %3819 = vmatpush.bf16.msra.mxu0 %v7407_v40  ;;  %3832 = vmatpush.bf16.msra.mxu1 %v7535_v48  ;;  %v7907_v40 = vor.u32 %v9415_v31, %v7906_v26  ;;  %v7762_v48 = vld [vmem:[#allocation15 + $0x2c8] sm:$0xf]  ;;  %v9295_v26 = vld [vmem:[#allocation15 + $0x34] sm:$0xf0] }
 0x310   :  { %3845 = vmatpush.bf16.msra.mxu2 %v7663_v51  ;;  %3858 = vmatpush.bf16.msra.mxu3 %v7791_v54  ;;  %v7602_v51 = vld [vmem:[#allocation15 + $0x188] sm:$0xf]  ;;  %v9363_v31 = vld [vmem:[#allocation15 + $0x254] sm:$0xf0]  ;;  %v7427_v35 = vor.u32 %v9295_v26, %v7426_v24  ;;  %v9305_v24 = vld [vmem:[#allocation15 + $0x8c] sm:$0xf] }
 0x311   :  { %v7476_v26 = vld [vmem:[#allocation15 + $0x98] sm:$0xf0] }
 0x361   :  { %v2693_v55 = vpop.xlane.xlu1 %2692 }
 0x362   :  { %v2694_v56 = vrot.slane %v2693_v55, 4 }
 0x364   :  { %v2695_v57 = vadd.f32 %v2694_v56, %v2693_v55  ;;  %v7763_v55 = vor.u32 %v9379_v38, %v7762_v48  ;;  %v7891_v56 = vor.u32 %v9411_v47, %v7890_v33  ;;  %v7524_v48 = vld [vmem:[#allocation15 + $0xf8] sm:$0xf0]  ;;  %v9349_v33 = vld [vmem:[#allocation15 + $0x1ec] sm:$0xf] }
 0x365   :  { %v7652_v47 = vld [vmem:[#allocation15 + $0x1f8] sm:$0xf0] }
 0x366   :  { %v2696_v58 = vrot.slane %v2695_v57, 2 }
 0x368   :  { %v2697_v59 = vadd.f32 %v2696_v58, %v2695_v57  ;;  %v7746_v57 = vld [vmem:[#allocation15 + $0x2a8] sm:$0xf]  ;;  %v7475_v58 = vor.u32 %v9307_v50, %v7474_v49  ;;  %v9359_v50 = vld [vmem:[#allocation15 + $0x234] sm:$0xf0] }
 0x369   :  { %v7747_v3 = vor.u32 %v9375_v60, %v7746_v57  ;;  %v7682_v49 = vld [vmem:[#allocation15 + $0x228] sm:$0xf]  ;;  %v9313_v57 = vld [vmem:[#allocation15 + $0xcc] sm:$0xf] }
 0x36a   :  { %v2698_v61 = vrot.slane %v2697_v59, 1  ;;  %v7683_v60 = vor.u32 %v9359_v50, %v7682_v49 }
 0x36c   :  { %v2699_v0 = vadd.f32 %v2698_v61, %v2697_v59  ;;  %v7603_v59 = vor.u32 %v9339_v52, %v7602_v51  ;;  %v7874_v61 = vld [vmem:[#allocation15 + $0x3a8] sm:$0xf]  ;;  %v9391_v52 = vld [vmem:[#allocation15 + $0x334] sm:$0xf0] }
 0x36d   :  { %v7810_v51 = vld [vmem:[#allocation15 + $0x328] sm:$0xf] }
 0x36e   :  { %9672 = vpush %v2699_v0  ;;  %v2931_v1 = vpop.f32.mrf.mxu0  ;;  %v2944_v2 = vpop.f32.mrf.mxu1  ;;  %v9303_v0 = vld [vmem:[#allocation15 + $0x74] sm:$0xf0] }
 0x36f   :  { %v2932_v9 = vadd.f32 %v2931_v1, %v2754_v62  ;;  %v2945_v63 = vadd.f32 %v2944_v2, %v2755_v8  ;;  %v9407_v62 = vld [vmem:[#allocation15 + $0x3b4] sm:$0xf0]  ;;  %v7458_v8 = vld [vmem:[#allocation15 + $0x68] sm:$0xf] }
 0x370   :  { %v7586_v1 = vld [vmem:[#allocation15 + $0x168] sm:$0xf]  ;;  %v9335_v2 = vld [vmem:[#allocation15 + $0x174] sm:$0xf0] }
 0x371   :  { %v2974_v36 = vmax.f32 %v2932_v9, 0.0  ;;  %v2975_v5 = vmax.f32 %v2945_v63, 0.0  ;;  %v7875_v9 = vor.u32 %v9407_v62, %v7874_v61  ;;  %v7730_v63 = vld [vmem:[#allocation15 + $0x288] sm:$0xf]  ;;  %v7811_v61 = vor.u32 %v9391_v52, %v7810_v51  ;;  %v7636_v62 = vld [vmem:[#allocation15 + $0x1d8] sm:$0xf0] }
 0x372   :  { %v7731_v17 = vor.u32 %v9371_v6, %v7730_v63  ;;  %v9413_v63 = vld [vmem:[#allocation15 + $0x3ec] sm:$0xf]  ;;  %v7908_v6 = vld [vmem:[#allocation15 + $0x3f8] sm:$0xf0] }
 0x373   :  { %v10240_v21 = vpack.c.bf16 %v2974_v36, %v2974_v36  ;;  %v10242_v42 = vpack.c.bf16 %v2975_v5, %v2975_v5  ;;  %v7459_v36 = vor.u32 %v9303_v0, %v7458_v8  ;;  %v7587_v5 = vor.u32 %v9335_v2, %v7586_v1  ;;  %v7666_v8 = vld [vmem:[#allocation15 + $0x208] sm:$0xf]  ;;  %v9355_v0 = vld [vmem:[#allocation15 + $0x214] sm:$0xf0]  ;;  %v9297_v51 = vld [vmem:[#allocation15 + $0x4c] sm:$0xf] }
 0x374   :  { %v7794_v1 = vld [vmem:[#allocation15 + $0x308] sm:$0xf]  ;;  %v9387_v2 = vld [vmem:[#allocation15 + $0x314] sm:$0xf0]  ;;  %v7444_v52 = vld [vmem:[#allocation15 + $0x58] sm:$0xf0] }
 0x375   :  { %v2957_v20 = vpop.f32.mrf.mxu2  ;;  %v2970_v22 = vpop.f32.mrf.mxu3  ;;  %3768 = vmatmul.bf16.vlgmr.msrb.gmra.mxu0 %v10240_v21  ;;  %3781 = vmatmul.bf16.vlgmr.msrb.gmra.mxu1 %v10242_v42 }
 0x376   :  { %v2958_v27 = vadd.f32 %v2957_v20, %v2756_v43  ;;  %v2971_v13 = vadd.f32 %v2970_v22, %v2757_v10  ;;  %3864 = vmatpush.bf16.msrb.mxu0 %v7523_v11  ;;  %3877 = vmatpush.bf16.msrb.mxu1 %v7651_v12  ;;  %v2933_v29 = vpop.f32.mrf.mxu0  ;;  %v2946_v30 = vpop.f32.mrf.mxu1  ;;  %v7442_v43 = vld [vmem:[#allocation15 + $0x48] sm:$0xf]  ;;  %v9299_v10 = vld [vmem:[#allocation15 + $0x54] sm:$0xf0] }
 0x377   :  { %v7570_v11 = vld [vmem:[#allocation15 + $0x148] sm:$0xf]  ;;  %v9331_v12 = vld [vmem:[#allocation15 + $0x154] sm:$0xf0]  ;;  %v7715_v29 = vor.u32 %v9367_v16, %v7714_v14  ;;  %v9377_v14 = vld [vmem:[#allocation15 + $0x2cc] sm:$0xf] }
 0x378   :  { %v2976_v7 = vmax.f32 %v2958_v27, 0.0  ;;  %v2977_v39 = vmax.f32 %v2971_v13, 0.0  ;;  %v7842_v20 = vld [vmem:[#allocation15 + $0x368] sm:$0xf]  ;;  %v9399_v22 = vld [vmem:[#allocation15 + $0x374] sm:$0xf0]  ;;  %v7571_v23 = vor.u32 %v9331_v12, %v7570_v11 }
 0x379   :  { %v7554_v27 = vld [vmem:[#allocation15 + $0x128] sm:$0xf]  ;;  %v9327_v13 = vld [vmem:[#allocation15 + $0x134] sm:$0xf0]  ;;  %v7843_v30 = vor.u32 %v9399_v22, %v7842_v20  ;;  %v9341_v11 = vld [vmem:[#allocation15 + $0x1ac] sm:$0xf] }
 0x37a   :  { %v10246_v44 = vpack.c.bf16 %v2976_v7, %v2976_v7  ;;  %v10248_v45 = vpack.c.bf16 %v2977_v39, %v2977_v39  ;;  %3865 = vmatpush.bf16.msrb.mxu0 %v7507_v4  ;;  %3878 = vmatpush.bf16.msrb.mxu1 %v7635_v18  ;;  %v7443_v4 = vor.u32 %v9299_v10, %v7442_v43  ;;  %v7698_v18 = vld [vmem:[#allocation15 + $0x248] sm:$0xf]  ;;  %v9291_v39 = vld [vmem:[#allocation15 + $0x14] sm:$0xf0]  ;;  %v7492_v10 = vld [vmem:[#allocation15 + $0xb8] sm:$0xf0] }
 0x37b   :  { %v7555_v28 = vor.u32 %v9327_v13, %v7554_v27  ;;  %v7410_v7 = vld [vmem:[#allocation15 + $0x8] sm:$0xf]  ;;  %v7699_v38 = vor.u32 %v9363_v31, %v7698_v18  ;;  %v7795_v43 = vor.u32 %v9387_v2, %v7794_v1  ;;  %v7620_v12 = vld [vmem:[#allocation15 + $0x1b8] sm:$0xf0]  ;;  %v9409_v20 = vld [vmem:[#allocation15 + $0x3cc] sm:$0xf] }
 0x37c   :  { %3794 = vmatmul.bf16.vlgmr.msrb.gmra.mxu2 %v10246_v44  ;;  %3807 = vmatmul.bf16.vlgmr.msrb.gmra.mxu3 %v10248_v45  ;;  %v7764_v16 = vld [vmem:[#allocation15 + $0x2d8] sm:$0xf0]  ;;  %v9337_v27 = vld [vmem:[#allocation15 + $0x18c] sm:$0xf] }
 0x37d   :  { %3890 = vmatpush.bf16.msrb.mxu2 %v7779_v41  ;;  %3903 = vmatpush.bf16.msrb.mxu3 %v7907_v40  ;;  %v2959_v53 = vpop.f32.mrf.mxu2  ;;  %v2972_v54 = vpop.f32.mrf.mxu3  ;;  %v7538_v41 = vld [vmem:[#allocation15 + $0x108] sm:$0xf]  ;;  %v9323_v40 = vld [vmem:[#allocation15 + $0x114] sm:$0xf0]  ;;  %v7892_v22 = vld [vmem:[#allocation15 + $0x3d8] sm:$0xf0] }
 0x37e   :  { %3866 = vmatpush.bf16.msrb.mxu0 %v7491_v34  ;;  %3879 = vmatpush.bf16.msrb.mxu1 %v7619_v46  ;;  %v9317_v34 = vld [vmem:[#allocation15 + $0xec] sm:$0xf]  ;;  %v7827_v46 = vor.u32 %v9395_v37, %v7826_v32  ;;  %v7411_v53 = vor.u32 %v9291_v39, %v7410_v7  ;;  %v7539_v54 = vor.u32 %v9323_v40, %v7538_v41  ;;  %v7604_v13 = vld [vmem:[#allocation15 + $0x198] sm:$0xf0] }
 0x37f   :  { %v9373_v18 = vld [vmem:[#allocation15 + $0x2ac] sm:$0xf]  ;;  %v7748_v31 = vld [vmem:[#allocation15 + $0x2b8] sm:$0xf0] }
 0x380   :  { %v9405_v32 = vld [vmem:[#allocation15 + $0x3ac] sm:$0xf]  ;;  %v7876_v37 = vld [vmem:[#allocation15 + $0x3b8] sm:$0xf0] }
 0x381   :  { %3891 = vmatpush.bf16.msrb.mxu2 %v7763_v55  ;;  %3904 = vmatpush.bf16.msrb.mxu3 %v7891_v56  ;;  %v7527_v55 = vor.u32 %v9317_v34, %v7524_v48  ;;  %v7655_v56 = vor.u32 %v9349_v33, %v7652_v47  ;;  %v9301_v7 = vld [vmem:[#allocation15 + $0x6c] sm:$0xf]  ;;  %v7460_v39 = vld [vmem:[#allocation15 + $0x78] sm:$0xf0]  ;;  %v7751_v34 = vor.u32 %v9373_v18, %v7748_v31  ;;  %v8106_v18 = vld [vmem:[#allocation18 + $0x180] sm:$0xf] }
 0x382   :  { %3867 = vmatpush.bf16.msrb.mxu0 %v7475_v58  ;;  %3880 = vmatpush.bf16.msrb.mxu1 %v7603_v59  ;;  %v7508_v58 = vld [vmem:[#allocation15 + $0xd8] sm:$0xf0]  ;;  %v9345_v59 = vld [vmem:[#allocation15 + $0x1cc] sm:$0xf]  ;;  %v7879_v48 = vor.u32 %v9405_v32, %v7876_v37  ;;  %v7463_v49 = vor.u32 %v9301_v7, %v7460_v39  ;;  %v9532_v7 = vld [vmem:[#allocation18 + $0x39c] sm:$0xf0] }
 0x383   :  { %v7511_v15 = vor.u32 %v9313_v57, %v7508_v58  ;;  %v7639_v25 = vor.u32 %v9345_v59, %v7636_v62  ;;  %v9333_v41 = vld [vmem:[#allocation15 + $0x16c] sm:$0xf]  ;;  %v7588_v40 = vld [vmem:[#allocation15 + $0x178] sm:$0xf0] }
 0x384   :  { %v9401_v33 = vld [vmem:[#allocation15 + $0x38c] sm:$0xf]  ;;  %v7860_v47 = vld [vmem:[#allocation15 + $0x398] sm:$0xf0]  ;;  %v7591_v50 = vor.u32 %v9333_v41, %v7588_v40 }
 0x385   :  { %3892 = vmatpush.bf16.msrb.mxu2 %v7747_v3  ;;  %3905 = vmatpush.bf16.msrb.mxu3 %v7875_v9  ;;  %v9381_v3 = vld [vmem:[#allocation15 + $0x2ec] sm:$0xf]  ;;  %v7780_v9 = vld [vmem:[#allocation15 + $0x2f8] sm:$0xf0] }
 0x386   :  { %3820 = vmatmul.bf16.vlgmr.msra.gmra.mxu0 %v10240_v21  ;;  %3833 = vmatmul.bf16.vlgmr.msra.gmra.mxu1 %v10242_v42  ;;  %v9365_v57 = vld [vmem:[#allocation15 + $0x26c] sm:$0xf]  ;;  %v7716_v58 = vld [vmem:[#allocation15 + $0x278] sm:$0xf0] }
 0x387   :  { %3868 = vmatpush.bf16.msrb.mxu0 %v7459_v36  ;;  %3881 = vmatpush.bf16.msrb.mxu1 %v7587_v5  ;;  %v9309_v36 = vld [vmem:[#allocation15 + $0xac] sm:$0xf]  ;;  %v7667_v5 = vor.u32 %v9355_v0, %v7666_v8  ;;  %v7428_v0 = vld [vmem:[#allocation15 + $0x38] sm:$0xf0] }
 0x388   :  { %v9397_v59 = vld [vmem:[#allocation15 + $0x36c] sm:$0xf]  ;;  %v7556_v2 = vld [vmem:[#allocation15 + $0x138] sm:$0xf0] }
 0x389   :  { %3893 = vmatpush.bf16.msrb.mxu2 %v7731_v17  ;;  %3906 = vmatpush.bf16.msrb.mxu3 %v7859_v19  ;;  %v7783_v17 = vor.u32 %v9381_v3, %v7780_v9  ;;  %v7911_v19 = vor.u32 %v9413_v63, %v7908_v6  ;;  %v9293_v8 = vld [vmem:[#allocation15 + $0x2c] sm:$0xf]  ;;  %v7719_v3 = vor.u32 %v9365_v57, %v7716_v58  ;;  %v7700_v6 = vld [vmem:[#allocation15 + $0x258] sm:$0xf0]  ;;  %v8042_v57 = vld [vmem:[#allocation18 + $0x100] sm:$0xf] }
 0x38a   :  { %v9325_v1 = vld [vmem:[#allocation15 + $0x12c] sm:$0xf]  ;;  %v7668_v39 = vld [vmem:[#allocation15 + $0x218] sm:$0xf0] }
 0x38b   :  { %3869 = vmatpush.bf16.msrb.mxu0 %v7443_v4  ;;  %3882 = vmatpush.bf16.msrb.mxu1 %v7571_v23  ;;  %v7495_v4 = vor.u32 %v9309_v36, %v7492_v10  ;;  %v7623_v23 = vor.u32 %v9341_v11, %v7620_v12  ;;  %v9361_v63 = vld [vmem:[#allocation15 + $0x24c] sm:$0xf]  ;;  %v7431_v36 = vor.u32 %v9293_v8, %v7428_v0  ;;  %v7412_v10 = vld [vmem:[#allocation15 + $0x18] sm:$0xf0]  ;;  %v9444_v0 = vld [vmem:[#allocation18 + $0xdc] sm:$0xf0] }
 0x38c   :  { %3846 = vmatmul.bf16.vlgmr.msra.gmra.mxu2 %v10246_v44  ;;  %3859 = vmatmul.bf16.vlgmr.msra.gmra.mxu3 %v10248_v45  ;;  %v9321_v11 = vld [vmem:[#allocation15 + $0x10c] sm:$0xf]  ;;  %v7540_v12 = vld [vmem:[#allocation15 + $0x118] sm:$0xf0] }
 0x38d   :  { %3894 = vmatpush.bf16.msrb.mxu2 %v7715_v29  ;;  %3907 = vmatpush.bf16.msrb.mxu3 %v7843_v30  ;;  %v7767_v29 = vor.u32 %v9377_v14, %v7764_v16  ;;  %v7895_v30 = vor.u32 %v9409_v20, %v7892_v22  ;;  %v7703_v14 = vor.u32 %v9361_v63, %v7700_v6  ;;  %v9476_v20 = vld [vmem:[#allocation18 + $0x1dc] sm:$0xf0]  ;;  %v9385_v41 = vld [vmem:[#allocation15 + $0x30c] sm:$0xf]  ;;  %v7796_v40 = vld [vmem:[#allocation15 + $0x318] sm:$0xf0] }
 0x38e   :  { %v8394_v22 = vld [vmem:[#allocation18 + $0x3c0] sm:$0xf] }
 0x38f   :  { %3870 = vmatpush.bf16.msrb.mxu0 %v7427_v35  ;;  %3883 = vmatpush.bf16.msrb.mxu1 %v7555_v28  ;;  %v7479_v35 = vor.u32 %v9305_v24, %v7476_v26  ;;  %v7607_v28 = vor.u32 %v9337_v27, %v7604_v13  ;;  %v9389_v24 = vld [vmem:[#allocation15 + $0x32c] sm:$0xf]  ;;  %v7812_v26 = vld [vmem:[#allocation15 + $0x338] sm:$0xf0]  ;;  %v7543_v13 = vor.u32 %v9321_v11, %v7540_v12  ;;  %v9436_v6 = vld [vmem:[#allocation18 + $0x9c] sm:$0xf0] }
 0x390   :  { %v7815_v37 = vor.u32 %v9389_v24, %v7812_v26  ;;  %v9420_v11 = vld [vmem:[#allocation18 + $0x1c] sm:$0xf0]  ;;  %v9472_v12 = vld [vmem:[#allocation18 + $0x1c4] sm:$0xf] }
 0x391   :  { %3895 = vmatpush.bf16.msrb.mxu2 %v7699_v38  ;;  %3908 = vmatpush.bf16.msrb.mxu3 %v7827_v46  ;;  %v9369_v38 = vld [vmem:[#allocation15 + $0x28c] sm:$0xf]  ;;  %v7732_v46 = vld [vmem:[#allocation15 + $0x298] sm:$0xf0]  ;;  %v8202_v26 = vld [vmem:[#allocation18 + $0x240] sm:$0xf] }
 0x393   :  { %3871 = vmatpush.bf16.msrb.mxu0 %v7411_v53  ;;  %3884 = vmatpush.bf16.msrb.mxu1 %v7539_v54  ;;  %v9329_v53 = vld [vmem:[#allocation15 + $0x14c] sm:$0xf]  ;;  %v7572_v54 = vld [vmem:[#allocation15 + $0x158] sm:$0xf0] }
 0x394   :  { %v7575_v62 = vor.u32 %v9329_v53, %v7572_v54  ;;  %v8618_v54 = vld [vmem:[#allocation18 + $0x580] sm:$0xf] }
 0x395   :  { %3896 = vmatpush.bf16.msrb.mxu2 %v7683_v60  ;;  %3909 = vmatpush.bf16.msrb.mxu3 %v7811_v61  ;;  %v7844_v60 = vld [vmem:[#allocation15 + $0x378] sm:$0xf0]  ;;  %v7447_v61 = vor.u32 %v9297_v51, %v7444_v52  ;;  %v8330_v51 = vld [vmem:[#allocation18 + $0x340] sm:$0xf] }
 0x396   :  { %3872 = vmatmul.bf16.vlgmr.msrb.gmra.mxu0 %v10240_v21  ;;  %3885 = vmatmul.bf16.vlgmr.msrb.gmra.mxu1 %v10242_v42  ;;  %v7847_v9 = vor.u32 %v9397_v59, %v7844_v60  ;;  %v9524_v52 = vld [vmem:[#allocation18 + $0x35c] sm:$0xf0] }
 0x397   :  { %3916 = vmatpush.bf16.msra.mxu0 %v7527_v55  ;;  %3929 = vmatpush.bf16.msra.mxu1 %v7655_v56  ;;  %v7735_v55 = vor.u32 %v9369_v38, %v7732_v46  ;;  %v7863_v56 = vor.u32 %v9401_v33, %v7860_v47  ;;  %v7799_v47 = vor.u32 %v9385_v41, %v7796_v40  ;;  %v9452_v59 = vld [vmem:[#allocation18 + $0x11c] sm:$0xf0] }
 0x398   :  { %v8331_v58 = vor.u32 %v9524_v52, %v8330_v51  ;;  %v8298_v60 = vld [vmem:[#allocation18 + $0x300] sm:$0xf]  ;;  %v9432_v52 = vld [vmem:[#allocation18 + $0x84] sm:$0xf] }
 0x399   :  { %3897 = vmatpush.bf16.msrb.mxu2 %v7667_v5  ;;  %3910 = vmatpush.bf16.msrb.mxu3 %v7795_v43  ;;  %v7559_v5 = vor.u32 %v9325_v1, %v7556_v2  ;;  %v9289_v43 = vld [vmem:[#allocation15 + $0xc] sm:$0xf]  ;;  %v8266_v1 = vld [vmem:[#allocation18 + $0x2c0] sm:$0xf] }
 0x39a   :  { %v7415_v27 = vor.u32 %v9289_v43, %v7412_v10  ;;  %v9508_v2 = vld [vmem:[#allocation18 + $0x2dc] sm:$0xf0] }
 0x39b   :  { %3917 = vmatpush.bf16.msra.mxu0 %v7511_v15  ;;  %3930 = vmatpush.bf16.msra.mxu1 %v7639_v25  ;;  %v9393_v15 = vld [vmem:[#allocation15 + $0x34c] sm:$0xf]  ;;  %v7828_v25 = vld [vmem:[#allocation15 + $0x358] sm:$0xf0]  ;;  %v8267_v63 = vor.u32 %v9508_v2, %v8266_v1  ;;  %v7914_v10 = vld [vmem:[#allocation18] sm:$0xf] }
 0x39c   :  { %3898 = vmatmul.bf16.vlgmr.msrb.gmra.mxu2 %v10246_v44  ;;  %3911 = vmatmul.bf16.vlgmr.msrb.gmra.mxu3 %v10248_v45  ;;  %v7831_v16 = vor.u32 %v9393_v15, %v7828_v25  ;;  %v8234_v15 = vld [vmem:[#allocation18 + $0x280] sm:$0xf] }
 0x39d   :  { %3942 = vmatpush.bf16.msra.mxu2 %v7783_v17  ;;  %3955 = vmatpush.bf16.msra.mxu3 %v7911_v19  ;;  %v9357_v17 = vld [vmem:[#allocation15 + $0x22c] sm:$0xf]  ;;  %v8138_v19 = vld [vmem:[#allocation18 + $0x1c0] sm:$0xf] }
 0x39e   :  { %v9500_v25 = vld [vmem:[#allocation18 + $0x29c] sm:$0xf0] }
 0x39f   :  { %3918 = vmatpush.bf16.msra.mxu0 %v7495_v4  ;;  %3931 = vmatpush.bf16.msra.mxu1 %v7623_v23  ;;  %s9673_s2 = spop %9672  ;;  %v9540_v4 = vld [vmem:[#allocation18 + $0x3dc] sm:$0xf0]  ;;  %v7684_v23 = vld [vmem:[#allocation15 + $0x238] sm:$0xf0] }
 0x3a0   :  { %s2701_s27 = smul.f32 0.5, %s9673_s2  ;;  %v8395_v31 = vor.u32 %v9540_v4, %v8394_v22  ;;  %v7687_v32 = vor.u32 %v9357_v17, %v7684_v23  ;;  %v8140_v17 = vld [vmem:[#allocation18 + $0x1e0] sm:$0xf0]  ;;  %v9580_v41 = vld [vmem:[#allocation18 + $0x51c] sm:$0xf0] }
 0x3a1   :  { %3943 = vmatpush.bf16.msra.mxu2 %v7767_v29  ;;  %3956 = vmatpush.bf16.msra.mxu3 %v7895_v30  ;;  %v9353_v29 = vld [vmem:[#allocation15 + $0x20c] sm:$0xf]  ;;  %v8139_v30 = vor.u32 %v9476_v20, %v8138_v19  ;;  %v7915_v19 = vor.u32 %v9420_v11, %v7914_v10  ;;  %v8108_v20 = vld [vmem:[#allocation18 + $0x1a0] sm:$0xf0]  ;;  %v8458_v1 = vld [vmem:[#allocation18 + $0x440] sm:$0xf] }
 0x3a2   :  { %2703 = sst [smem:[#allocation21]] %s2701_s27  ;;  %v7671_v33 = vor.u32 %v9353_v29, %v7668_v39  ;;  %v9456_v4 = vld [vmem:[#allocation18 + $0x144] sm:$0xf]  ;;  %v9556_v2 = vld [vmem:[#allocation18 + $0x45c] sm:$0xf0] }
 0x3a3   :  { %3919 = vmatpush.bf16.msra.mxu0 %v7479_v35  ;;  %3932 = vmatpush.bf16.msra.mxu1 %v7607_v28  ;;  %v9468_v35 = vld [vmem:[#allocation18 + $0x19c] sm:$0xf0]  ;;  %v8076_v23 = vld [vmem:[#allocation18 + $0x160] sm:$0xf0]  ;;  %5973 = dma.smem_to_hbm %s10008_s21, 16, %s5971_s0, [#allocation5]  }
 0x3a4   :  { %v8362_v28 = vld [vmem:[#allocation18 + $0x380] sm:$0xf]  ;;  %v8107_v38 = vor.u32 %v9468_v35, %v8106_v18  ;;  %v8079_v24 = vor.u32 %v9456_v4, %v8076_v23  ;;  %v9448_v18 = vld [vmem:[#allocation18 + $0x104] sm:$0xf] }
 0x3a5   :  { %3944 = vmatpush.bf16.msra.mxu2 %v7751_v34  ;;  %3957 = vmatpush.bf16.msra.mxu3 %v7879_v48  ;;  %v8650_v34 = vld [vmem:[#allocation18 + $0x5c0] sm:$0xf]  ;;  %v8363_v46 = vor.u32 %v9532_v7, %v8362_v28  ;;  %v9504_v11 = vld [vmem:[#allocation18 + $0x2c4] sm:$0xf] }
 0x3a6   :  { %v9604_v48 = vld [vmem:[#allocation18 + $0x5dc] sm:$0xf0] }
 0x3a7   :  { %3920 = vmatpush.bf16.msra.mxu0 %v7463_v49  ;;  %3933 = vmatpush.bf16.msra.mxu1 %v7591_v50  ;;  %v8074_v49 = vld [vmem:[#allocation18 + $0x140] sm:$0xf]  ;;  %v8651_v53 = vor.u32 %v9604_v48, %v8650_v34  ;;  %v9440_v34 = vld [vmem:[#allocation18 + $0xc4] sm:$0xf] }
 0x3a8   :  { %v9460_v50 = vld [vmem:[#allocation18 + $0x15c] sm:$0xf0]  ;;  %v8012_v48 = vld [vmem:[#allocation18 + $0xe0] sm:$0xf0] }
 0x3a9   :  { %3945 = vmatpush.bf16.msra.mxu2 %v7735_v55  ;;  %3958 = vmatpush.bf16.msra.mxu3 %v7863_v56  ;;  %v9596_v55 = vld [vmem:[#allocation18 + $0x59c] sm:$0xf0]  ;;  %v8075_v56 = vor.u32 %v9460_v50, %v8074_v49  ;;  %v8015_v49 = vor.u32 %v9440_v34, %v8012_v48  ;;  %v10264_v34 = vld [vmem:[#allocation17] sm:$0xf] }
 0x3aa   :  { %v9484_v35 = vld [vmem:[#allocation18 + $0x21c] sm:$0xf0] }
 0x3ab   :  { %3921 = vmatpush.bf16.msra.mxu0 %v7447_v61  ;;  %3934 = vmatpush.bf16.msra.mxu1 %v7575_v62  ;;  %v9516_v61 = vld [vmem:[#allocation18 + $0x31c] sm:$0xf0] }
 0x3ac   :  { %v8010_v62 = vld [vmem:[#allocation18 + $0xc0] sm:$0xf]  ;;  %v8299_v8 = vor.u32 %v9516_v61, %v8298_v60  ;;  %v9424_v61 = vld [vmem:[#allocation18 + $0x44] sm:$0xf] }
 0x3ad   :  { %3946 = vmatpush.bf16.msra.mxu2 %v7719_v3  ;;  %3959 = vmatpush.bf16.msra.mxu3 %v7847_v9  ;;  %v8011_v3 = vor.u32 %v9444_v0, %v8010_v62  ;;  %v7978_v9 = vld [vmem:[#allocation18 + $0x80] sm:$0xf]  ;;  %v8332_v62 = vld [vmem:[#allocation18 + $0x360] sm:$0xf0] }
 0x3ae   :  { %v8554_v28 = vld [vmem:[#allocation18 + $0x500] sm:$0xf] }
 0x3af   :  { %3922 = vmatpush.bf16.msra.mxu0 %v7431_v36  ;;  %3935 = vmatpush.bf16.msra.mxu1 %v7559_v5  ;;  %v7946_v36 = vld [vmem:[#allocation18 + $0x40] sm:$0xf]  ;;  %v8555_v40 = vor.u32 %v9580_v41, %v8554_v28  ;;  %v9584_v28 = vld [vmem:[#allocation18 + $0x544] sm:$0xf] }
 0x3b0   :  { %v9428_v5 = vld [vmem:[#allocation18 + $0x5c] sm:$0xf0] }
 0x3b1   :  { %3947 = vmatpush.bf16.msra.mxu2 %v7703_v14  ;;  %3960 = vmatpush.bf16.msra.mxu3 %v7831_v16  ;;  %v7947_v43 = vor.u32 %v9428_v5, %v7946_v36  ;;  %v8143_v14 = vor.u32 %v9472_v12, %v8140_v17  ;;  %v9464_v16 = vld [vmem:[#allocation18 + $0x184] sm:$0xf]  ;;  %v9548_v36 = vld [vmem:[#allocation18 + $0x41c] sm:$0xf0] }
 0x3b2   :  { %v8111_v22 = vor.u32 %v9464_v16, %v8108_v20  ;;  %v8906_v5 = vld [vmem:[#allocation18 + $0x7c0] sm:$0xf]  ;;  %v8268_v12 = vld [vmem:[#allocation18 + $0x2e0] sm:$0xf0] }
 0x3b3   :  { %3923 = vmatpush.bf16.msra.mxu0 %v7415_v27  ;;  %3936 = vmatpush.bf16.msra.mxu1 %v7543_v13  ;;  %v9492_v27 = vld [vmem:[#allocation18 + $0x25c] sm:$0xf0]  ;;  %v8652_v16 = vld [vmem:[#allocation18 + $0x5e0] sm:$0xf0] }
 0x3b4   :  { %v8586_v13 = vld [vmem:[#allocation18 + $0x540] sm:$0xf]  ;;  %v8203_v29 = vor.u32 %v9492_v27, %v8202_v26  ;;  %v8236_v26 = vld [vmem:[#allocation18 + $0x2a0] sm:$0xf0] }
 0x3b5   :  { %3948 = vmatpush.bf16.msra.mxu2 %v7687_v32  ;;  %3961 = vmatpush.bf16.msra.mxu3 %v7815_v37  ;;  %v8170_v37 = vld [vmem:[#allocation18 + $0x200] sm:$0xf]  ;;  %v9592_v27 = vld [vmem:[#allocation18 + $0x584] sm:$0xf] }
 0x3b6   :  { %3924 = vmatmul.bf16.vlgmr.msra.gmra.mxu0 %v10240_v21  ;;  %3937 = vmatmul.bf16.vlgmr.msra.gmra.mxu1 %v10242_v42  ;;  %v8619_v21 = vor.u32 %v9596_v55, %v8618_v54  ;;  %v8043_v42 = vor.u32 %v9452_v59, %v8042_v57  ;;  %v8171_v39 = vor.u32 %v9484_v35, %v8170_v37  ;;  %v9528_v54 = vld [vmem:[#allocation18 + $0x384] sm:$0xf]  ;;  %v9564_v59 = vld [vmem:[#allocation18 + $0x49c] sm:$0xf0] }
 0x3b7   :  { %5530 = vmatpush.bf16.msrb.mxu0 %v8139_v30  ;;  %5543 = vmatpush.bf16.msrb.mxu1 %v8395_v31  ;;  %v9588_v30 = vld [vmem:[#allocation18 + $0x55c] sm:$0xf0]  ;;  %v8044_v31 = vld [vmem:[#allocation18 + $0x120] sm:$0xf0] }
 0x3b8   :  { %v8587_v32 = vor.u32 %v9588_v30, %v8586_v13  ;;  %v8047_v7 = vor.u32 %v9448_v18, %v8044_v31  ;;  %v8364_v55 = vld [vmem:[#allocation18 + $0x3a0] sm:$0xf0]  ;;  %v9668_v10 = vld [vmem:[#allocation18 + $0x7dc] sm:$0xf0] }
 0x3b9   :  { %3949 = vmatpush.bf16.msra.mxu2 %v7671_v33  ;;  %3962 = vmatpush.bf16.msra.mxu3 %v7799_v47  ;;  %v8522_v33 = vld [vmem:[#allocation18 + $0x4c0] sm:$0xf]  ;;  %v8367_v57 = vor.u32 %v9528_v54, %v8364_v55  ;;  %v8907_v17 = vor.u32 %v9668_v10, %v8906_v5  ;;  %v9488_v37 = vld [vmem:[#allocation18 + $0x244] sm:$0xf]  ;;  %v8146_v10 = vld [vmem:[#allocation18 + $0x1c8] sm:$0xf] }
 0x3ba   :  { %v9572_v47 = vld [vmem:[#allocation18 + $0x4dc] sm:$0xf0]  ;;  %v8204_v35 = vld [vmem:[#allocation18 + $0x260] sm:$0xf0] }
 0x3bb   :  { %5531 = vmatpush.bf16.msrb.mxu0 %v8107_v38  ;;  %5544 = vmatpush.bf16.msrb.mxu1 %v8363_v46  ;;  %v9536_v38 = vld [vmem:[#allocation18 + $0x3c4] sm:$0xf]  ;;  %v8523_v51 = vor.u32 %v9572_v47, %v8522_v33  ;;  %v9660_v4 = vld [vmem:[#allocation18 + $0x79c] sm:$0xf0]  ;;  %v8207_v41 = vor.u32 %v9488_v37, %v8204_v35 }
 0x3bc   :  { %3950 = vmatmul.bf16.vlgmr.msra.gmra.mxu2 %v10246_v44  ;;  %3963 = vmatmul.bf16.vlgmr.msra.gmra.mxu3 %v10248_v45  ;;  %v7979_v44 = vor.u32 %v9436_v6, %v7978_v9  ;;  %v8235_v45 = vor.u32 %v9500_v25, %v8234_v15  ;;  %v8396_v46 = vld [vmem:[#allocation18 + $0x3e0] sm:$0xf0]  ;;  %v8842_v18 = vld [vmem:[#allocation18 + $0x740] sm:$0xf] }
 0x3bd   :  { %5556 = vmatpush.bf16.msrb.mxu2 %v8651_v53  ;;  %v8399_v50 = vor.u32 %v9536_v38, %v8396_v46  ;;  %v7980_v53 = vld [vmem:[#allocation18 + $0xa0] sm:$0xf0]  ;;  %5569 = vmatpush.bf16.msrb.mxu3 %v8907_v17  ;;  %v9652_v31 = vld [vmem:[#allocation18 + $0x75c] sm:$0xf0] }
 0x3be   :  { %v9416_v9 = vld [vmem:[#allocation18 + $0x4] sm:$0xf]  ;;  %v8810_v38 = vld [vmem:[#allocation18 + $0x700] sm:$0xf] }
 0x3bf   :  { %5532 = vmatpush.bf16.msrb.mxu0 %v8075_v56  ;;  %5545 = vmatpush.bf16.msrb.mxu1 %v8331_v58  ;;  %v7983_v56 = vor.u32 %v9432_v52, %v7980_v53  ;;  %v8490_v58 = vld [vmem:[#allocation18 + $0x480] sm:$0xf]  ;;  %v9512_v6 = vld [vmem:[#allocation18 + $0x304] sm:$0xf] }
 0x3c0   :  { %v8491_v60 = vor.u32 %v9564_v59, %v8490_v58  ;;  %v8300_v15 = vld [vmem:[#allocation18 + $0x320] sm:$0xf0]  ;;  %v9644_v46 = vld [vmem:[#allocation18 + $0x71c] sm:$0xf0] }
 0x3c1   :  { %5557 = vmatpush.bf16.msrb.mxu2 %v8619_v21  ;;  %v7948_v21 = vld [vmem:[#allocation18 + $0x60] sm:$0xf0]  ;;  %v8811_v33 = vor.u32 %v9644_v46, %v8810_v38  ;;  %v8778_v55 = vld [vmem:[#allocation18 + $0x6c0] sm:$0xf] }
 0x3c2   :  { %v9480_v47 = vld [vmem:[#allocation18 + $0x204] sm:$0xf] }
 0x3c3   :  { %5533 = vmatpush.bf16.msrb.mxu0 %v8043_v42  ;;  %5546 = vmatpush.bf16.msrb.mxu1 %v8299_v8  ;;  %v9520_v42 = vld [vmem:[#allocation18 + $0x344] sm:$0xf]  ;;  %v7951_v8 = vor.u32 %v9424_v61, %v7948_v21 }
 0x3c4   :  { %v8335_v0 = vor.u32 %v9520_v42, %v8332_v62  ;;  %v8556_v53 = vld [vmem:[#allocation18 + $0x520] sm:$0xf0]  ;;  %v8746_v62 = vld [vmem:[#allocation18 + $0x680] sm:$0xf] }
 0x3c5   :  { %5558 = vmatpush.bf16.msrb.mxu2 %v8587_v32  ;;  %v8843_v32 = vor.u32 %v9652_v31, %v8842_v18  ;;  %v9568_v58 = vld [vmem:[#allocation18 + $0x4c4] sm:$0xf] }
 0x3c6   :  { %v8524_v59 = vld [vmem:[#allocation18 + $0x4e0] sm:$0xf0] }
 0x3c7   :  { %5534 = vmatpush.bf16.msrb.mxu0 %v8011_v3  ;;  %5547 = vmatpush.bf16.msrb.mxu1 %v8267_v63  ;;  %v8459_v3 = vor.u32 %v9556_v2, %v8458_v1  ;;  %v7916_v63 = vld [vmem:[#allocation18 + $0x20] sm:$0xf0]  ;;  %v8527_v42 = vor.u32 %v9568_v58, %v8524_v59  ;;  %v8018_v59 = vld [vmem:[#allocation18 + $0xc8] sm:$0xf] }
 0x3c8   :  { %v7919_v25 = vor.u32 %v9416_v9, %v7916_v63  ;;  %v9560_v1 = vld [vmem:[#allocation18 + $0x484] sm:$0xf] }
 0x3c9   :  { %5559 = vmatpush.bf16.msrb.mxu2 %v8555_v40  ;;  %v8588_v40 = vld [vmem:[#allocation18 + $0x560] sm:$0xf0] }
 0x3ca   :  { %v8591_v48 = vor.u32 %v9584_v28, %v8588_v40  ;;  %v8492_v2 = vld [vmem:[#allocation18 + $0x4a0] sm:$0xf0] }
 0x3cb   :  { %5535 = vmatpush.bf16.msrb.mxu0 %v7979_v44  ;;  %5548 = vmatpush.bf16.msrb.mxu1 %v8235_v45  ;;  %v8303_v44 = vor.u32 %v9512_v6, %v8300_v15  ;;  %v8426_v45 = vld [vmem:[#allocation18 + $0x400] sm:$0xf]  ;;  %v8495_v9 = vor.u32 %v9560_v1, %v8492_v2  ;;  %v8460_v5 = vld [vmem:[#allocation18 + $0x460] sm:$0xf0] }
 0x3cc   :  { %v8908_v31 = vld [vmem:[#allocation18 + $0x7e0] sm:$0xf0] }
 0x3cd   :  { %5560 = vmatpush.bf16.msrb.mxu2 %v8523_v51  ;;  %v3112_v51 = vperm.slane %v10264_v34, 0  ;;  %v9656_v40 = vld [vmem:[#allocation18 + $0x784] sm:$0xf] }
 0x3cf   :  { %5536 = vmatpush.bf16.msrb.mxu0 %v7947_v43  ;;  %5549 = vmatpush.bf16.msrb.mxu1 %v8203_v29  ;;  %v8427_v43 = vor.u32 %v9548_v36, %v8426_v45  ;;  %v8620_v29 = vld [vmem:[#allocation18 + $0x5a0] sm:$0xf0] }
 0x3d0   :  { %v8623_v30 = vor.u32 %v9592_v27, %v8620_v29  ;;  %v9552_v36 = vld [vmem:[#allocation18 + $0x444] sm:$0xf]  ;;  %v8114_v29 = vld [vmem:[#allocation18 + $0x188] sm:$0xf] }
 0x3d1   :  { %5561 = vmatpush.bf16.msrb.mxu2 %v8491_v60  ;;  %v9664_v27 = vld [vmem:[#allocation18 + $0x7c4] sm:$0xf] }
 0x3d2   :  { %v8911_v35 = vor.u32 %v9664_v27, %v8908_v31  ;;  %v7922_v31 = vld [vmem:[#allocation18 + $0x8] sm:$0xf] }
 0x3d3   :  { %5537 = vmatpush.bf16.msrb.mxu0 %v7915_v19  ;;  %5550 = vmatpush.bf16.msrb.mxu1 %v8171_v39  ;;  %v8271_v19 = vor.u32 %v9504_v11, %v8268_v12  ;;  %v9477_v11 = vld [vmem:[#allocation18 + $0x1e4] sm:$0xf0]  ;;  %v8463_v12 = vor.u32 %v9552_v36, %v8460_v5  ;;  %v9632_v36 = vld [vmem:[#allocation18 + $0x6c4] sm:$0xf] }
 0x3d4   :  { %v8780_v5 = vld [vmem:[#allocation18 + $0x6e0] sm:$0xf0] }
 0x3d5   :  { %5562 = vmatpush.bf16.msrb.mxu2 %v8459_v3 }
 0x3d7   :  { %5582 = vmatpush.bf16.msra.mxu0 %v8143_v14  ;;  %5595 = vmatpush.bf16.msra.mxu1 %v8399_v50  ;;  %v9600_v14 = vld [vmem:[#allocation18 + $0x5c4] sm:$0xf] }
 0x3d8   :  { %v8655_v20 = vor.u32 %v9600_v14, %v8652_v16  ;;  %v9576_v50 = vld [vmem:[#allocation18 + $0x504] sm:$0xf]  ;;  %v3113_v16 = vperm.slane %v10264_v34, 1 }
 0x3d9   :  { %5563 = vmatpush.bf16.msrb.mxu2 %v8427_v43  ;;  %v8559_v54 = vor.u32 %v9576_v50, %v8556_v53  ;;  %v8844_v53 = vld [vmem:[#allocation18 + $0x760] sm:$0xf0] }
 0x3db   :  { %5583 = vmatpush.bf16.msra.mxu0 %v8111_v22  ;;  %5596 = vmatpush.bf16.msra.mxu1 %v8367_v57  ;;  %v8874_v22 = vld [vmem:[#allocation18 + $0x780] sm:$0xf] }
 0x3dc   :  { %v8875_v23 = vor.u32 %v9660_v4, %v8874_v22  ;;  %v9612_v22 = vld [vmem:[#allocation18 + $0x61c] sm:$0xf0]  ;;  %v8147_v4 = vor.u32 %v9477_v11, %v8146_v10 }
 0x3dd   :  { %5608 = vmatpush.bf16.msra.mxu2 %v8655_v20  ;;  %v8682_v20 = vld [vmem:[#allocation18 + $0x600] sm:$0xf] }
 0x3de   :  { %5570 = vmatpush.bf16.msrb.mxu3 %v8875_v23  ;;  %v8683_v23 = vor.u32 %v9612_v22, %v8682_v20  ;;  %v8338_v20 = vld [vmem:[#allocation18 + $0x348] sm:$0xf] }
 0x3df   :  { %5584 = vmatpush.bf16.msra.mxu0 %v8079_v24  ;;  %5597 = vmatpush.bf16.msra.mxu1 %v8335_v0  ;;  %v9496_v24 = vld [vmem:[#allocation18 + $0x284] sm:$0xf]  ;;  %v9525_v22 = vld [vmem:[#allocation18 + $0x364] sm:$0xf0] }
 0x3e0   :  { %v8239_v13 = vor.u32 %v9496_v24, %v8236_v26  ;;  %v9544_v24 = vld [vmem:[#allocation18 + $0x404] sm:$0xf] }
 0x3e1   :  { %5609 = vmatpush.bf16.msra.mxu2 %v8623_v30  ;;  %v8428_v26 = vld [vmem:[#allocation18 + $0x420] sm:$0xf0]  ;;  %v9469_v30 = vld [vmem:[#allocation18 + $0x1a4] sm:$0xf0] }
 0x3e2   :  { %5571 = vmatpush.bf16.msrb.mxu3 %v8843_v32  ;;  %v8431_v18 = vor.u32 %v9544_v24, %v8428_v26  ;;  %v8115_v28 = vor.u32 %v9469_v30, %v8114_v29 }
 0x3e3   :  { %5585 = vmatpush.bf16.msra.mxu0 %v8047_v7  ;;  %5598 = vmatpush.bf16.msra.mxu1 %v8303_v44  ;;  %v9620_v44 = vld [vmem:[#allocation18 + $0x65c] sm:$0xf0] }
 0x3e5   :  { %5610 = vmatpush.bf16.msra.mxu2 %v8591_v48  ;;  %v8876_v48 = vld [vmem:[#allocation18 + $0x7a0] sm:$0xf0] }
 0x3e6   :  { %5572 = vmatpush.bf16.msrb.mxu3 %v8811_v33  ;;  %v8879_v33 = vor.u32 %v9656_v40, %v8876_v48  ;;  %v8148_v40 = vld [vmem:[#allocation18 + $0x1e8] sm:$0xf0] }
 0x3e7   :  { %5586 = vmatpush.bf16.msra.mxu0 %v8015_v49  ;;  %5599 = vmatpush.bf16.msra.mxu1 %v8271_v19  ;;  %v8172_v49 = vld [vmem:[#allocation18 + $0x220] sm:$0xf0] }
 0x3e8   :  { %v8175_v52 = vor.u32 %v9480_v47, %v8172_v49  ;;  %v8050_v49 = vld [vmem:[#allocation18 + $0x108] sm:$0xf] }
 0x3e9   :  { %5611 = vmatpush.bf16.msra.mxu2 %v8559_v54 }
 0x3eb   :  { %5587 = vmatpush.bf16.msra.mxu0 %v7983_v56  ;;  %5600 = vmatpush.bf16.msra.mxu1 %v8239_v13  ;;  %v9636_v56 = vld [vmem:[#allocation18 + $0x6dc] sm:$0xf0] }
 0x3ec   :  { %v8779_v57 = vor.u32 %v9636_v56, %v8778_v55 }
 0x3ed   :  { %5612 = vmatpush.bf16.msra.mxu2 %v8527_v42  ;;  %v9541_v42 = vld [vmem:[#allocation18 + $0x3e4] sm:$0xf0] }
 0x3ee   :  { %5573 = vmatpush.bf16.msrb.mxu3 %v8779_v57 }
 0x3ef   :  { %5588 = vmatpush.bf16.msra.mxu0 %v7951_v8  ;;  %5601 = vmatpush.bf16.msra.mxu1 %v8207_v41  ;;  %v9628_v8 = vld [vmem:[#allocation18 + $0x69c] sm:$0xf0]  ;;  %v9461_v41 = vld [vmem:[#allocation18 + $0x164] sm:$0xf0] }
 0x3f0   :  { %v8747_v0 = vor.u32 %v9628_v8, %v8746_v62  ;;  %v9640_v62 = vld [vmem:[#allocation18 + $0x704] sm:$0xf] }
 0x3f1   :  { %5613 = vmatpush.bf16.msra.mxu2 %v8495_v9  ;;  %v8812_v8 = vld [vmem:[#allocation18 + $0x720] sm:$0xf0] }
 0x3f2   :  { %v3769_v7 = vpop.f32.mrf.mxu0  ;;  %v3782_v39 = vpop.f32.mrf.mxu1  ;;  %5574 = vmatpush.bf16.msrb.mxu3 %v8747_v0  ;;  %v8815_v2 = vor.u32 %v9640_v62, %v8812_v8  ;;  %v8242_v8 = vld [vmem:[#allocation18 + $0x288] sm:$0xf] }
 0x3f3   :  { %5589 = vmatpush.bf16.msra.mxu0 %v7919_v25  ;;  %5602 = vmatpush.bf16.msra.mxu1 %v8175_v52  ;;  %v3770_v60 = vadd.f32 %v3769_v7, %v3112_v51  ;;  %v8714_v25 = vld [vmem:[#allocation18 + $0x640] sm:$0xf]  ;;  %v8082_v7 = vld [vmem:[#allocation18 + $0x148] sm:$0xf]  ;;  %v9648_v52 = vld [vmem:[#allocation18 + $0x744] sm:$0xf] }
 0x3f4   :  { %v8715_v45 = vor.u32 %v9620_v44, %v8714_v25  ;;  %v8083_v47 = vor.u32 %v9461_v41, %v8082_v7  ;;  %v9453_v51 = vld [vmem:[#allocation18 + $0x124] sm:$0xf0]  ;;  %v8847_v56 = vor.u32 %v9648_v52, %v8844_v53  ;;  %v8716_v7 = vld [vmem:[#allocation18 + $0x660] sm:$0xf0]  ;;  %v9473_v41 = vld [vmem:[#allocation18 + $0x1cc] sm:$0xf] }
 0x3f5   :  { %v3783_v3 = vadd.f32 %v3782_v39, %v3770_v60  ;;  %5614 = vmatpush.bf16.msra.mxu2 %v8463_v12  ;;  %v8051_v58 = vor.u32 %v9453_v51, %v8050_v49  ;;  %v9445_v60 = vld [vmem:[#allocation18 + $0xe4] sm:$0xf0]  ;;  %v8783_v12 = vor.u32 %v9632_v36, %v8780_v5  ;;  %v8151_v52 = vor.u32 %v9473_v41, %v8148_v40  ;;  %v9433_v41 = vld [vmem:[#allocation18 + $0x8c] sm:$0xf] }
 0x3f6   :  { %5575 = vmatpush.bf16.msrb.mxu3 %v8715_v45  ;;  %v8019_v9 = vor.u32 %v9445_v60, %v8018_v59  ;;  %v8370_v25 = vld [vmem:[#allocation18 + $0x388] sm:$0xf]  ;;  %v8116_v59 = vld [vmem:[#allocation18 + $0x1a8] sm:$0xf0] }
 0x3f7   :  { %v9533_v45 = vld [vmem:[#allocation18 + $0x3a4] sm:$0xf0]  ;;  %v7988_v40 = vld [vmem:[#allocation18 + $0xa8] sm:$0xf0] }
 0x3f8   :  { %v9509_v51 = vld [vmem:[#allocation18 + $0x2e4] sm:$0xf0] }
 0x3f9   :  { %5615 = vmatpush.bf16.msra.mxu2 %v8431_v18  ;;  %v8339_v18 = vor.u32 %v9525_v22, %v8338_v20  ;;  %v8658_v53 = vld [vmem:[#allocation18 + $0x5c8] sm:$0xf] }
 0x3fa   :  { %v3771_v61 = vpop.f32.mrf.mxu0  ;;  %v3784_v21 = vpop.f32.mrf.mxu1  ;;  %5576 = vmatpush.bf16.msrb.mxu3 %v8683_v23  ;;  %v8748_v23 = vld [vmem:[#allocation18 + $0x6a0] sm:$0xf0]  ;;  %v8210_v5 = vld [vmem:[#allocation18 + $0x248] sm:$0xf] }
 0x3fb   :  { %v8402_v61 = vld [vmem:[#allocation18 + $0x3c8] sm:$0xf] }
 0x3fc   :  { %v8178_v20 = vld [vmem:[#allocation18 + $0x208] sm:$0xf] }
 0x3fd   :  { %v9485_v22 = vld [vmem:[#allocation18 + $0x224] sm:$0xf0] }
 0x3fe   :  { %5621 = vmatpush.bf16.msra.mxu3 %v8911_v35  ;;  %v9517_v35 = vld [vmem:[#allocation18 + $0x324] sm:$0xf0] }
 0x3ff   :  { %v3795_v63 = vpop.f32.mrf.mxu2  ;;  %v3808_v6 = vpop.f32.mrf.mxu3 }
 0x400   :  { %v3796_v15 = vadd.f32 %v3795_v63, %v3783_v3  ;;  %v8403_v63 = vor.u32 %v9541_v42, %v8402_v61 }
 0x402   :  { %v3809_v43 = vadd.f32 %v3808_v6, %v3796_v15  ;;  %5622 = vmatpush.bf16.msra.mxu3 %v8879_v33  ;;  %v7986_v6 = vld [vmem:[#allocation18 + $0x88] sm:$0xf] }
 0x403   :  { %v3821_v17 = vpop.f32.mrf.mxu0  ;;  %v3834_v19 = vpop.f32.mrf.mxu1  ;;  %v9437_v15 = vld [vmem:[#allocation18 + $0xa4] sm:$0xf0] }
 0x404   :  { %v3968_v14 = vmax.f32 %v3809_v43, 0.0  ;;  %v3822_v39 = vadd.f32 %v3821_v17, %v3113_v16  ;;  %v3114_v43 = vperm.slane %v10264_v34, 2  ;;  %v7987_v17 = vor.u32 %v9437_v15, %v7986_v6  ;;  %v9429_v16 = vld [vmem:[#allocation18 + $0x64] sm:$0xf0] }
 0x406   :  { %v10268_v13 = vpack.c.bf16 %v3968_v14, %v3968_v14  ;;  %v3835_v50 = vadd.f32 %v3834_v19, %v3822_v39  ;;  %5623 = vmatpush.bf16.msra.mxu3 %v8847_v56  ;;  %v8371_v19 = vor.u32 %v9533_v45, %v8370_v25  ;;  %v7954_v14 = vld [vmem:[#allocation18 + $0x48] sm:$0xf] }
 0x407   :  { %v3797_v32 = vpop.f32.mrf.mxu2  ;;  %v3810_v37 = vpop.f32.mrf.mxu3  ;;  %v7955_v30 = vor.u32 %v9429_v16, %v7954_v14 }
 0x408   :  { %5538 = vmatmul.bf16.vlgmr.msrb.gmra.mxu0 %v10268_v13  ;;  %v9421_v32 = vld [vmem:[#allocation18 + $0x24] sm:$0xf0] }
 0x409   :  { %5634 = vmatpush.bf16.msrb.mxu0 %v8147_v4  ;;  %v9624_v4 = vld [vmem:[#allocation18 + $0x684] sm:$0xf]  ;;  %v8306_v37 = vld [vmem:[#allocation18 + $0x308] sm:$0xf] }
 0x40a   :  { %5624 = vmatpush.bf16.msra.mxu3 %v8815_v2  ;;  %v8751_v29 = vor.u32 %v9624_v4, %v8748_v23  ;;  %v8307_v49 = vor.u32 %v9517_v35, %v8306_v37  ;;  %v8562_v4 = vld [vmem:[#allocation18 + $0x508] sm:$0xf] }
 0x40b   :  { %v3823_v38 = vpop.f32.mrf.mxu0  ;;  %v3836_v46 = vpop.f32.mrf.mxu1  ;;  %v9581_v23 = vld [vmem:[#allocation18 + $0x524] sm:$0xf0] }
 0x40c   :  { %v8563_v37 = vor.u32 %v9581_v23, %v8562_v4  ;;  %v9470_v4 = vld [vmem:[#allocation18 + $0x1ac] sm:$0xf0] }
 0x40d   :  { %5635 = vmatpush.bf16.msrb.mxu0 %v8115_v28  ;;  %v9616_v28 = vld [vmem:[#allocation18 + $0x644] sm:$0xf] }
 0x40e   :  { %5625 = vmatpush.bf16.msra.mxu3 %v8783_v12  ;;  %v8719_v48 = vor.u32 %v9616_v28, %v8716_v7  ;;  %v9449_v12 = vld [vmem:[#allocation18 + $0x10c] sm:$0xf]  ;;  %v8530_v28 = vld [vmem:[#allocation18 + $0x4c8] sm:$0xf] }
 0x40f   :  { %v3847_v54 = vpop.f32.mrf.mxu2  ;;  %v3860_v55 = vpop.f32.mrf.mxu3 }
 0x410   :  { %v3848_v57 = vadd.f32 %v3847_v54, %v3835_v50  ;;  %v8274_v50 = vld [vmem:[#allocation18 + $0x2c8] sm:$0xf]  ;;  %v9608_v54 = vld [vmem:[#allocation18 + $0x604] sm:$0xf] }
 0x411   :  { %5636 = vmatpush.bf16.msrb.mxu0 %v8083_v47  ;;  %v7923_v47 = vor.u32 %v9421_v32, %v7922_v31  ;;  %v8179_v31 = vor.u32 %v9485_v22, %v8178_v20  ;;  %v3115_v32 = vperm.slane %v10264_v34, 3  ;;  %v8122_v22 = vld [vmem:[#allocation18 + $0x190] sm:$0xf] }
 0x412   :  { %v3861_v21 = vadd.f32 %v3860_v55, %v3848_v57  ;;  %5626 = vmatpush.bf16.msra.mxu3 %v8751_v29  ;;  %v8684_v55 = vld [vmem:[#allocation18 + $0x620] sm:$0xf0]  ;;  %v9605_v57 = vld [vmem:[#allocation18 + $0x5e4] sm:$0xf0] }
 0x413   :  { %v3873_v0 = vpop.f32.mrf.mxu0  ;;  %v3886_v1 = vpop.f32.mrf.mxu1  ;;  %v8687_v60 = vor.u32 %v9608_v54, %v8684_v55  ;;  %v8659_v42 = vor.u32 %v9605_v57, %v8658_v53  ;;  %v9521_v55 = vld [vmem:[#allocation18 + $0x34c] sm:$0xf] }
 0x414   :  { %v3969_v3 = vmax.f32 %v3861_v21, 0.0  ;;  %v3874_v24 = vadd.f32 %v3873_v0, %v3114_v43  ;;  %v8275_v21 = vor.u32 %v9509_v51, %v8274_v50  ;;  %v9501_v0 = vld [vmem:[#allocation18 + $0x2a4] sm:$0xf0]  ;;  %v9425_v51 = vld [vmem:[#allocation18 + $0x4c] sm:$0xf] }
 0x415   :  { %5637 = vmatpush.bf16.msrb.mxu0 %v8051_v58  ;;  %v9465_v58 = vld [vmem:[#allocation18 + $0x18c] sm:$0xf]  ;;  %v8243_v25 = vor.u32 %v9501_v0, %v8242_v8  ;;  %v9493_v43 = vld [vmem:[#allocation18 + $0x264] sm:$0xf0] }
 0x416   :  { %v10271_v44 = vpack.c.bf16 %v3969_v3, %v3969_v3  ;;  %v3887_v39 = vadd.f32 %v3886_v1, %v3874_v24  ;;  %5627 = vmatpush.bf16.msra.mxu3 %v8719_v48  ;;  %v8119_v62 = vor.u32 %v9465_v58, %v8116_v59  ;;  %v8626_v1 = vld [vmem:[#allocation18 + $0x588] sm:$0xf]  ;;  %v9441_v24 = vld [vmem:[#allocation18 + $0xcc] sm:$0xf] }
 0x417   :  { %v3849_v10 = vpop.f32.mrf.mxu2  ;;  %v3862_v11 = vpop.f32.mrf.mxu3  ;;  %v9597_v3 = vld [vmem:[#allocation18 + $0x5a4] sm:$0xf0]  ;;  %v9529_v48 = vld [vmem:[#allocation18 + $0x38c] sm:$0xf] }
 0x418   :  { %5551 = vmatmul.bf16.vlgmr.msrb.gmra.mxu1 %v10271_v44  ;;  %5590 = vmatmul.bf16.vlgmr.msra.gmra.mxu0 %v10268_v13  ;;  %v8627_v45 = vor.u32 %v9597_v3, %v8626_v1  ;;  %v8594_v10 = vld [vmem:[#allocation18 + $0x548] sm:$0xf]  ;;  %v9513_v8 = vld [vmem:[#allocation18 + $0x30c] sm:$0xf] }
 0x419   :  { %5638 = vmatpush.bf16.msrb.mxu0 %v8019_v9  ;;  %5647 = vmatpush.bf16.msrb.mxu1 %v8403_v63  ;;  %v9457_v9 = vld [vmem:[#allocation18 + $0x14c] sm:$0xf]  ;;  %v9589_v11 = vld [vmem:[#allocation18 + $0x564] sm:$0xf0] }
 0x41a   :  { %5628 = vmatpush.bf16.msra.mxu3 %v8687_v60  ;;  %v8084_v63 = vld [vmem:[#allocation18 + $0x168] sm:$0xf0]  ;;  %v8595_v14 = vor.u32 %v9589_v11, %v8594_v10  ;;  %v9565_v50 = vld [vmem:[#allocation18 + $0x4a4] sm:$0xf0] }
 0x41b   :  { %v3875_v26 = vpop.f32.mrf.mxu0  ;;  %v3888_v27 = vpop.f32.mrf.mxu1  ;;  %v8087_v36 = vor.u32 %v9457_v9, %v8084_v63  ;;  %v8466_v59 = vld [vmem:[#allocation18 + $0x448] sm:$0xf]  ;;  %v8308_v3 = vld [vmem:[#allocation18 + $0x328] sm:$0xf0]  ;;  %v8154_v9 = vld [vmem:[#allocation18 + $0x1d0] sm:$0xf] }
 0x41c   :  { %v8020_v26 = vld [vmem:[#allocation18 + $0xe8] sm:$0xf0]  ;;  %v9557_v60 = vld [vmem:[#allocation18 + $0x464] sm:$0xf0]  ;;  %v9478_v63 = vld [vmem:[#allocation18 + $0x1ec] sm:$0xf0] }
 0x41d   :  { %5639 = vmatpush.bf16.msrb.mxu0 %v7987_v17  ;;  %5648 = vmatpush.bf16.msrb.mxu1 %v8371_v19  ;;  %v8052_v17 = vld [vmem:[#allocation18 + $0x128] sm:$0xf0]  ;;  %v8211_v19 = vor.u32 %v9493_v43, %v8210_v5  ;;  %v8023_v35 = vor.u32 %v9441_v24, %v8020_v26  ;;  %v8311_v43 = vor.u32 %v9513_v8, %v8308_v3  ;;  %v8914_v11 = vld [vmem:[#allocation18 + $0x7c8] sm:$0xf]  ;;  %v8026_v8 = vld [vmem:[#allocation18 + $0xd0] sm:$0xf] }
 0x41e   :  { %v8055_v16 = vor.u32 %v9449_v12, %v8052_v17  ;;  %v8155_v10 = vor.u32 %v9478_v63, %v8154_v9  ;;  %v9669_v12 = vld [vmem:[#allocation18 + $0x7e4] sm:$0xf0]  ;;  %v9505_v17 = vld [vmem:[#allocation18 + $0x2cc] sm:$0xf]  ;;  %v9542_v3 = vld [vmem:[#allocation18 + $0x3ec] sm:$0xf0] }
 0x41f   :  { %v3899_v38 = vpop.f32.mrf.mxu2  ;;  %v3912_v46 = vpop.f32.mrf.mxu3  ;;  %v8915_v24 = vor.u32 %v9669_v12, %v8914_v11  ;;  %v9438_v11 = vld [vmem:[#allocation18 + $0xac] sm:$0xf0] }
 0x420   :  { %v3900_v33 = vadd.f32 %v3899_v38, %v3887_v39  ;;  %v9573_v39 = vld [vmem:[#allocation18 + $0x4e4] sm:$0xf0]  ;;  %v8372_v38 = vld [vmem:[#allocation18 + $0x3a8] sm:$0xf0]  ;;  %v8378_v12 = vld [vmem:[#allocation18 + $0x390] sm:$0xf] }
 0x421   :  { %5640 = vmatpush.bf16.msrb.mxu0 %v7955_v30  ;;  %5649 = vmatpush.bf16.msrb.mxu1 %v8339_v18  ;;  %v9537_v30 = vld [vmem:[#allocation18 + $0x3cc] sm:$0xf]  ;;  %v8375_v34 = vor.u32 %v9529_v48, %v8372_v38 }
 0x422   :  { %v3913_v56 = vadd.f32 %v3912_v46, %v3900_v33  ;;  %v8404_v18 = vld [vmem:[#allocation18 + $0x3e8] sm:$0xf0]  ;;  %v8531_v46 = vor.u32 %v9573_v39, %v8530_v28  ;;  %v7991_v33 = vor.u32 %v9433_v41, %v7988_v40  ;;  %v8090_v41 = vld [vmem:[#allocation18 + $0x150] sm:$0xf] }
 0x423   :  { %v8407_v7 = vor.u32 %v9537_v30, %v8404_v18  ;;  %v8882_v30 = vld [vmem:[#allocation18 + $0x788] sm:$0xf]  ;;  %v8244_v28 = vld [vmem:[#allocation18 + $0x2a8] sm:$0xf0]  ;;  %v9462_v40 = vld [vmem:[#allocation18 + $0x16c] sm:$0xf0] }
 0x424   :  { %v3970_v61 = vmax.f32 %v3913_v56, 0.0  ;;  %v8340_v56 = vld [vmem:[#allocation18 + $0x368] sm:$0xf0]  ;;  %v9661_v18 = vld [vmem:[#allocation18 + $0x7a4] sm:$0xf0] }
 0x425   :  { %5641 = vmatpush.bf16.msrb.mxu0 %v7923_v47  ;;  %5650 = vmatpush.bf16.msrb.mxu1 %v8307_v49  ;;  %v8498_v47 = vld [vmem:[#allocation18 + $0x488] sm:$0xf]  ;;  %v8628_v39 = vld [vmem:[#allocation18 + $0x5a8] sm:$0xf0]  ;;  %v8883_v48 = vor.u32 %v9661_v18, %v8882_v30  ;;  %v8346_v30 = vld [vmem:[#allocation18 + $0x350] sm:$0xf] }
 0x426   :  { %v10276_v2 = vpack.c.bf16 %v3970_v61, %v3970_v61  ;;  %v8499_v57 = vor.u32 %v9565_v50, %v8498_v47  ;;  %v9653_v47 = vld [vmem:[#allocation18 + $0x764] sm:$0xf0]  ;;  %v8212_v50 = vld [vmem:[#allocation18 + $0x268] sm:$0xf0]  ;;  %v9526_v18 = vld [vmem:[#allocation18 + $0x36c] sm:$0xf0] }
 0x427   :  { %v3901_v6 = vpop.f32.mrf.mxu2  ;;  %v3914_v15 = vpop.f32.mrf.mxu3 }
 0x428   :  { %5603 = vmatmul.bf16.vlgmr.msra.gmra.mxu1 %v10271_v44  ;;  %5642 = vmatmul.bf16.vlgmr.msrb.gmra.mxu0 %v10268_v13  ;;  %v8467_v15 = vor.u32 %v9557_v60, %v8466_v59  ;;  %v9645_v59 = vld [vmem:[#allocation18 + $0x724] sm:$0xf0]  ;;  %v9481_v60 = vld [vmem:[#allocation18 + $0x20c] sm:$0xf] }
 0x429   :  { %5686 = vmatpush.bf16.msra.mxu0 %v8151_v52  ;;  %5564 = vmatmul.bf16.vlgmr.msrb.gmra.mxu2 %v10276_v2  ;;  %v7956_v52 = vld [vmem:[#allocation18 + $0x68] sm:$0xf0] }
 0x42a   :  { %5651 = vmatpush.bf16.msrb.mxu1 %v8275_v21  ;;  %5660 = vmatpush.bf16.msrb.mxu2 %v8659_v42  ;;  %v7959_v58 = vor.u32 %v9425_v51, %v7956_v52  ;;  %v8343_v21 = vor.u32 %v9521_v55, %v8340_v56  ;;  %v9417_v42 = vld [vmem:[#allocation18 + $0xc] sm:$0xf]  ;;  %v8818_v56 = vld [vmem:[#allocation18 + $0x708] sm:$0xf] }
 0x42b   :  { %v9585_v51 = vld [vmem:[#allocation18 + $0x54c] sm:$0xf]  ;;  %v8819_v9 = vor.u32 %v9645_v59, %v8818_v56  ;;  %v8282_v59 = vld [vmem:[#allocation18 + $0x2d0] sm:$0xf] }
 0x42c   :  { %v8596_v52 = vld [vmem:[#allocation18 + $0x568] sm:$0xf0] }
 0x42d   :  { %5687 = vmatpush.bf16.msra.mxu0 %v8119_v62  ;;  %v7924_v62 = vld [vmem:[#allocation18 + $0x28] sm:$0xf0] }
 0x42e   :  { %5652 = vmatpush.bf16.msrb.mxu1 %v8243_v25  ;;  %5661 = vmatpush.bf16.msrb.mxu2 %v8627_v45  ;;  %v7927_v25 = vor.u32 %v9417_v42, %v7924_v62  ;;  %v8434_v45 = vld [vmem:[#allocation18 + $0x408] sm:$0xf]  ;;  %v9577_v42 = vld [vmem:[#allocation18 + $0x50c] sm:$0xf] }
 0x42f   :  { %v8564_v62 = vld [vmem:[#allocation18 + $0x528] sm:$0xf0] }
 0x430   :  { %v9665_v56 = vld [vmem:[#allocation18 + $0x7cc] sm:$0xf] }
 0x431   :  { %5688 = vmatpush.bf16.msra.mxu0 %v8087_v36  ;;  %v9549_v36 = vld [vmem:[#allocation18 + $0x424] sm:$0xf0] }
 0x432   :  { %5653 = vmatpush.bf16.msrb.mxu1 %v8211_v19  ;;  %5662 = vmatpush.bf16.msrb.mxu2 %v8595_v14  ;;  %v8276_v19 = vld [vmem:[#allocation18 + $0x2e8] sm:$0xf0]  ;;  %v8435_v23 = vor.u32 %v9549_v36, %v8434_v45 }
 0x433   :  { %v3925_v27 = vpop.f32.mrf.mxu0  ;;  %v3938_v29 = vpop.f32.mrf.mxu1  ;;  %v9601_v14 = vld [vmem:[#allocation18 + $0x5cc] sm:$0xf] }
 0x434   :  { %v3926_v49 = vadd.f32 %v3925_v27, %v3115_v32  ;;  %v8279_v27 = vor.u32 %v9505_v17, %v8276_v19  ;;  %v9534_v17 = vld [vmem:[#allocation18 + $0x3ac] sm:$0xf0] }
 0x435   :  { %5689 = vmatpush.bf16.msra.mxu0 %v8055_v16  ;;  %v8660_v16 = vld [vmem:[#allocation18 + $0x5e8] sm:$0xf0] }
 0x436   :  { %5654 = vmatpush.bf16.msrb.mxu1 %v8179_v31  ;;  %5663 = vmatpush.bf16.msrb.mxu2 %v8563_v37  ;;  %v3939_v61 = vadd.f32 %v3938_v29, %v3926_v49  ;;  %v8663_v29 = vor.u32 %v9601_v14, %v8660_v16  ;;  %v9497_v31 = vld [vmem:[#allocation18 + $0x28c] sm:$0xf]  ;;  %v8754_v16 = vld [vmem:[#allocation18 + $0x688] sm:$0xf] }
 0x437   :  { %v8247_v38 = vor.u32 %v9497_v31, %v8244_v28  ;;  %v9489_v49 = vld [vmem:[#allocation18 + $0x24c] sm:$0xf] }
 0x439   :  { %5690 = vmatpush.bf16.msra.mxu0 %v8023_v35  ;;  %5655 = vmatmul.bf16.vlgmr.msrb.gmra.mxu1 %v10271_v44  ;;  %v8123_v35 = vor.u32 %v9470_v4, %v8122_v22  ;;  %v8379_v4 = vor.u32 %v9534_v17, %v8378_v12  ;;  %v9649_v17 = vld [vmem:[#allocation18 + $0x74c] sm:$0xf] }
 0x43a   :  { %5699 = vmatpush.bf16.msra.mxu1 %v8407_v7  ;;  %5616 = vmatmul.bf16.vlgmr.msra.gmra.mxu2 %v10276_v2  ;;  %v9593_v7 = vld [vmem:[#allocation18 + $0x58c] sm:$0xf] }
 0x43b   :  { %v3927_v53 = vpop.f32.mrf.mxu0  ;;  %v3940_v54 = vpop.f32.mrf.mxu1  ;;  %5664 = vmatpush.bf16.msrb.mxu2 %v8531_v46  ;;  %v8631_v46 = vor.u32 %v9593_v7, %v8628_v39  ;;  %v8347_v7 = vor.u32 %v9526_v18, %v8346_v30  ;;  %v9553_v39 = vld [vmem:[#allocation18 + $0x44c] sm:$0xf] }
 0x43c   :  { %v8058_v53 = vld [vmem:[#allocation18 + $0x110] sm:$0xf]  ;;  %v9641_v18 = vld [vmem:[#allocation18 + $0x70c] sm:$0xf] }
 0x43d   :  { %5691 = vmatpush.bf16.msra.mxu0 %v7991_v33  ;;  %v8850_v33 = vld [vmem:[#allocation18 + $0x748] sm:$0xf]  ;;  %v9454_v54 = vld [vmem:[#allocation18 + $0x12c] sm:$0xf0] }
 0x43e   :  { %5700 = vmatpush.bf16.msra.mxu1 %v8375_v34  ;;  %v8091_v34 = vor.u32 %v9462_v40, %v8090_v41  ;;  %v8851_v55 = vor.u32 %v9653_v47, %v8850_v33  ;;  %v8468_v41 = vld [vmem:[#allocation18 + $0x468] sm:$0xf0]  ;;  %v7930_v40 = vld [vmem:[#allocation18 + $0x10] sm:$0xf]  ;;  %v9474_v47 = vld [vmem:[#allocation18 + $0x1d4] sm:$0xf] }
 0x43f   :  { %v3951_v0 = vpop.f32.mrf.mxu2  ;;  %v3964_v1 = vpop.f32.mrf.mxu3  ;;  %5665 = vmatpush.bf16.msrb.mxu2 %v8499_v57  ;;  %v8215_v57 = vor.u32 %v9489_v49, %v8212_v50  ;;  %v8156_v49 = vld [vmem:[#allocation18 + $0x1f0] sm:$0xf0]  ;;  %v8690_v50 = vld [vmem:[#allocation18 + $0x608] sm:$0xf] }
 0x440   :  { %v3952_v6 = vadd.f32 %v3951_v0, %v3939_v61  ;;  %v8180_v61 = vld [vmem:[#allocation18 + $0x228] sm:$0xf0]  ;;  %v9446_v0 = vld [vmem:[#allocation18 + $0xec] sm:$0xf0] }
 0x441   :  { %5692 = vmatpush.bf16.msra.mxu0 %v7959_v58  ;;  %v8599_v58 = vor.u32 %v9585_v51, %v8596_v52  ;;  %v8183_v63 = vor.u32 %v9481_v60, %v8180_v61  ;;  %v8027_v45 = vor.u32 %v9446_v0, %v8026_v8  ;;  %v9613_v51 = vld [vmem:[#allocation18 + $0x624] sm:$0xf0]  ;;  %v9545_v52 = vld [vmem:[#allocation18 + $0x40c] sm:$0xf]  ;;  %v9510_v60 = vld [vmem:[#allocation18 + $0x2ec] sm:$0xf0] }
 0x442   :  { %v3965_v5 = vadd.f32 %v3964_v1, %v3952_v6  ;;  %5701 = vmatpush.bf16.msra.mxu1 %v8343_v21  ;;  %v8059_v21 = vor.u32 %v9454_v54, %v8058_v53  ;;  %v8410_v1 = vld [vmem:[#allocation18 + $0x3d0] sm:$0xf]  ;;  %v8567_v6 = vor.u32 %v9577_v42, %v8564_v62  ;;  %v9466_v62 = vld [vmem:[#allocation18 + $0x194] sm:$0xf] }
 0x443   :  { %5666 = vmatpush.bf16.msrb.mxu2 %v8467_v15  ;;  %v8786_v15 = vld [vmem:[#allocation18 + $0x6c8] sm:$0xf]  ;;  %v8411_v36 = vor.u32 %v9542_v3, %v8410_v1  ;;  %v8666_v61 = vld [vmem:[#allocation18 + $0x5d0] sm:$0xf]  ;;  %v8124_v8 = vld [vmem:[#allocation18 + $0x1b0] sm:$0xf0]  ;;  %v8283_v3 = vor.u32 %v9510_v60, %v8282_v59 }
 0x444   :  { %v3971_v20 = vmax.f32 %v3965_v5, 0.0  ;;  %v9569_v5 = vld [vmem:[#allocation18 + $0x4cc] sm:$0xf]  ;;  %v9606_v42 = vld [vmem:[#allocation18 + $0x5ec] sm:$0xf0] }
 0x445   :  { %5693 = vmatpush.bf16.msra.mxu0 %v7927_v25  ;;  %v9637_v25 = vld [vmem:[#allocation18 + $0x6e4] sm:$0xf0]  ;;  %v9625_v59 = vld [vmem:[#allocation18 + $0x68c] sm:$0xf] }
 0x446   :  { %v10284_v26 = vpack.c.bf16 %v3971_v20, %v3971_v20  ;;  %5702 = vmatpush.bf16.msra.mxu1 %v8311_v43  ;;  %v8532_v43 = vld [vmem:[#allocation18 + $0x4e8] sm:$0xf0]  ;;  %v8787_v19 = vor.u32 %v9637_v25, %v8786_v15  ;;  %v9629_v20 = vld [vmem:[#allocation18 + $0x6a4] sm:$0xf0]  ;;  %v8127_v15 = vor.u32 %v9466_v62, %v8124_v8  ;;  %v8250_v25 = vld [vmem:[#allocation18 + $0x290] sm:$0xf] }
 0x447   :  { %v3953_v32 = vpop.f32.mrf.mxu2  ;;  %v3966_v37 = vpop.f32.mrf.mxu3  ;;  %5667 = vmatpush.bf16.msrb.mxu2 %v8435_v23  ;;  %v8535_v14 = vor.u32 %v9569_v5, %v8532_v43  ;;  %v9561_v23 = vld [vmem:[#allocation18 + $0x48c] sm:$0xf]  ;;  %v8755_v31 = vor.u32 %v9629_v20, %v8754_v16  ;;  %v9598_v5 = vld [vmem:[#allocation18 + $0x5ac] sm:$0xf0]  ;;  %v9458_v43 = vld [vmem:[#allocation18 + $0x154] sm:$0xf] }
 0x448   :  { %5577 = vmatmul.bf16.vlgmr.msrb.gmra.mxu3 %v10284_v26  ;;  %5694 = vmatmul.bf16.vlgmr.msra.gmra.mxu0 %v10268_v13  ;;  %v8722_v37 = vld [vmem:[#allocation18 + $0x648] sm:$0xf]  ;;  %v8218_v20 = vld [vmem:[#allocation18 + $0x250] sm:$0xf]  ;;  %v8756_v60 = vld [vmem:[#allocation18 + $0x6a8] sm:$0xf0] }
 0x449   :  { %5738 = vmatpush.bf16.msrb.mxu0 %v8155_v10  ;;  %5673 = vmatpush.bf16.msrb.mxu3 %v8915_v24  ;;  %v7994_v10 = vld [vmem:[#allocation18 + $0x90] sm:$0xf]  ;;  %v8500_v24 = vld [vmem:[#allocation18 + $0x4a8] sm:$0xf0] }
 0x44a   :  { %5703 = vmatpush.bf16.msra.mxu1 %v8279_v27  ;;  %5668 = vmatmul.bf16.vlgmr.msrb.gmra.mxu2 %v10276_v2  ;;  %v7995_v22 = vor.u32 %v9438_v11, %v7994_v10  ;;  %v7962_v27 = vld [vmem:[#allocation18 + $0x50] sm:$0xf]  ;;  %v8503_v32 = vor.u32 %v9561_v23, %v8500_v24  ;;  %v8092_v10 = vld [vmem:[#allocation18 + $0x170] sm:$0xf0] }
 0x44b   :  { %5712 = vmatpush.bf16.msra.mxu2 %v8663_v29  ;;  %v9430_v29 = vld [vmem:[#allocation18 + $0x6c] sm:$0xf0]  ;;  %v8095_v16 = vor.u32 %v9458_v43, %v8092_v10  ;;  %v9450_v24 = vld [vmem:[#allocation18 + $0x114] sm:$0xf] }
 0x44c   :  { %v7963_v28 = vor.u32 %v9430_v29, %v7962_v27  ;;  %v9590_v23 = vld [vmem:[#allocation18 + $0x56c] sm:$0xf0]  ;;  %v8060_v27 = vld [vmem:[#allocation18 + $0x130] sm:$0xf0] }
 0x44d   :  { %5739 = vmatpush.bf16.msrb.mxu0 %v8123_v35  ;;  %5674 = vmatpush.bf16.msrb.mxu3 %v8883_v48  ;;  %v9621_v35 = vld [vmem:[#allocation18 + $0x664] sm:$0xf0]  ;;  %v9422_v48 = vld [vmem:[#allocation18 + $0x2c] sm:$0xf0]  ;;  %v9418_v10 = vld [vmem:[#allocation18 + $0x14] sm:$0xf] }
 0x44e   :  { %5704 = vmatpush.bf16.msra.mxu1 %v8247_v38  ;;  %v8314_v38 = vld [vmem:[#allocation18 + $0x310] sm:$0xf]  ;;  %v8723_v33 = vor.u32 %v9621_v35, %v8722_v37  ;;  %v7931_v53 = vor.u32 %v9422_v48, %v7930_v40  ;;  %v8063_v37 = vor.u32 %v9450_v24, %v8060_v27  ;;  %v8028_v40 = vld [vmem:[#allocation18 + $0xf0] sm:$0xf0] }
 0x44f   :  { %5713 = vmatpush.bf16.msra.mxu2 %v8631_v46  ;;  %v9518_v46 = vld [vmem:[#allocation18 + $0x32c] sm:$0xf0] }
 0x450   :  { %v8315_v54 = vor.u32 %v9518_v46, %v8314_v38  ;;  %v8186_v35 = vld [vmem:[#allocation18 + $0x210] sm:$0xf]  ;;  %v9538_v38 = vld [vmem:[#allocation18 + $0x3d4] sm:$0xf] }
 0x451   :  { %5740 = vmatpush.bf16.msrb.mxu0 %v8091_v34  ;;  %5675 = vmatpush.bf16.msrb.mxu3 %v8851_v55  ;;  %v8471_v34 = vor.u32 %v9553_v39, %v8468_v41  ;;  %v8436_v55 = vld [vmem:[#allocation18 + $0x428] sm:$0xf0]  ;;  %v9582_v39 = vld [vmem:[#allocation18 + $0x52c] sm:$0xf0]  ;;  %v9442_v41 = vld [vmem:[#allocation18 + $0xd4] sm:$0xf] }
 0x452   :  { %5705 = vmatpush.bf16.msra.mxu1 %v8215_v57  ;;  %v8916_v57 = vld [vmem:[#allocation18 + $0x7e8] sm:$0xf0]  ;;  %v8439_v0 = vor.u32 %v9545_v52, %v8436_v55  ;;  %v8412_v46 = vld [vmem:[#allocation18 + $0x3f0] sm:$0xf0]  ;;  %v9566_v8 = vld [vmem:[#allocation18 + $0x4ac] sm:$0xf0] }
 0x453   :  { %5714 = vmatpush.bf16.msra.mxu2 %v8599_v58  ;;  %v8159_v58 = vor.u32 %v9474_v47, %v8156_v49  ;;  %v8919_v1 = vor.u32 %v9665_v56, %v8916_v57  ;;  %v9633_v47 = vld [vmem:[#allocation18 + $0x6cc] sm:$0xf]  ;;  %v8415_v52 = vor.u32 %v9538_v38, %v8412_v46  ;;  %v7996_v55 = vld [vmem:[#allocation18 + $0xb0] sm:$0xf0]  ;;  %v8922_v24 = vld [vmem:[#allocation18 + $0x7d0] sm:$0xf] }
 0x454   :  { %v8788_v49 = vld [vmem:[#allocation18 + $0x6e8] sm:$0xf0]  ;;  %v9530_v57 = vld [vmem:[#allocation18 + $0x394] sm:$0xf]  ;;  %v9670_v27 = vld [vmem:[#allocation18 + $0x7ec] sm:$0xf0] }
 0x455   :  { %5741 = vmatpush.bf16.msrb.mxu0 %v8059_v21  ;;  %5676 = vmatpush.bf16.msrb.mxu3 %v8819_v9  ;;  %v8691_v21 = vor.u32 %v9613_v51, %v8690_v50  ;;  %v9657_v9 = vld [vmem:[#allocation18 + $0x78c] sm:$0xf]  ;;  %v8031_v50 = vor.u32 %v9442_v41, %v8028_v40  ;;  %v8538_v51 = vld [vmem:[#allocation18 + $0x4d0] sm:$0xf]  ;;  %v8791_v56 = vor.u32 %v9633_v47, %v8788_v49  ;;  %v8130_v41 = vld [vmem:[#allocation18 + $0x198] sm:$0xf] }
 0x456   :  { %5706 = vmatpush.bf16.msra.mxu1 %v8183_v63  ;;  %v8884_v63 = vld [vmem:[#allocation18 + $0x7a8] sm:$0xf0]  ;;  %v9471_v40 = vld [vmem:[#allocation18 + $0x1b4] sm:$0xf0]  ;;  %v8890_v38 = vld [vmem:[#allocation18 + $0x790] sm:$0xf] }
 0x457   :  { %5715 = vmatpush.bf16.msra.mxu2 %v8567_v6  ;;  %v8667_v6 = vor.u32 %v9606_v42, %v8666_v61  ;;  %v8887_v11 = vor.u32 %v9657_v9, %v8884_v63  ;;  %v8506_v42 = vld [vmem:[#allocation18 + $0x490] sm:$0xf]  ;;  %v9522_v9 = vld [vmem:[#allocation18 + $0x354] sm:$0xf] }
 0x458   :  { %5629 = vmatmul.bf16.vlgmr.msra.gmra.mxu3 %v10284_v26  ;;  %v8348_v63 = vld [vmem:[#allocation18 + $0x370] sm:$0xf0]  ;;  %v9662_v46 = vld [vmem:[#allocation18 + $0x7ac] sm:$0xf0] }
 0x459   :  { %5742 = vmatpush.bf16.msrb.mxu0 %v8027_v45  ;;  %5677 = vmatpush.bf16.msrb.mxu3 %v8787_v19  ;;  %v9502_v45 = vld [vmem:[#allocation18 + $0x2ac] sm:$0xf0]  ;;  %v8852_v19 = vld [vmem:[#allocation18 + $0x768] sm:$0xf0]  ;;  %v8351_v43 = vor.u32 %v9522_v9, %v8348_v63  ;;  %v9498_v49 = vld [vmem:[#allocation18 + $0x294] sm:$0xf] }
 0x45a   :  { %5751 = vmatpush.bf16.msrb.mxu1 %v8411_v36  ;;  %v8634_v36 = vld [vmem:[#allocation18 + $0x590] sm:$0xf]  ;;  %v8251_v12 = vor.u32 %v9502_v45, %v8250_v25  ;;  %v8855_v29 = vor.u32 %v9649_v17, %v8852_v19  ;;  %v8507_v25 = vor.u32 %v9566_v8, %v8506_v42  ;;  %v8316_v19 = vld [vmem:[#allocation18 + $0x330] sm:$0xf0] }
 0x45b   :  { %5707 = vmatmul.bf16.vlgmr.msra.gmra.mxu1 %v10271_v44  ;;  %5716 = vmatpush.bf16.msra.mxu2 %v8535_v14  ;;  %v8635_v14 = vor.u32 %v9598_v5, %v8634_v36  ;;  %v8474_v36 = vld [vmem:[#allocation18 + $0x450] sm:$0xf]  ;;  %v9586_v42 = vld [vmem:[#allocation18 + $0x554] sm:$0xf] }
 0x45c   :  { %v9558_v5 = vld [vmem:[#allocation18 + $0x46c] sm:$0xf0] }
 0x45d   :  { %5743 = vmatpush.bf16.msrb.mxu0 %v7995_v22  ;;  %5678 = vmatpush.bf16.msrb.mxu3 %v8755_v31  ;;  %v9494_v22 = vld [vmem:[#allocation18 + $0x26c] sm:$0xf0]  ;;  %v8820_v31 = vld [vmem:[#allocation18 + $0x728] sm:$0xf0] }
 0x45e   :  { %5752 = vmatpush.bf16.msrb.mxu1 %v8379_v4  ;;  %v8602_v4 = vld [vmem:[#allocation18 + $0x550] sm:$0xf]  ;;  %v8219_v30 = vor.u32 %v9494_v22, %v8218_v20  ;;  %v8823_v48 = vor.u32 %v9641_v18, %v8820_v31  ;;  %v9609_v20 = vld [vmem:[#allocation18 + $0x60c] sm:$0xf] }
 0x45f   :  { %5717 = vmatpush.bf16.msra.mxu2 %v8503_v32  ;;  %v8603_v32 = vor.u32 %v9590_v23, %v8602_v4  ;;  %v8692_v22 = vld [vmem:[#allocation18 + $0x628] sm:$0xf0]  ;;  %v8475_v4 = vor.u32 %v9558_v5, %v8474_v36  ;;  %v8442_v18 = vld [vmem:[#allocation18 + $0x410] sm:$0xf]  ;;  %v9578_v5 = vld [vmem:[#allocation18 + $0x514] sm:$0xf] }
 0x460   :  { %v9550_v31 = vld [vmem:[#allocation18 + $0x42c] sm:$0xf0] }
 0x461   :  { %5744 = vmatpush.bf16.msrb.mxu0 %v7963_v28  ;;  %5679 = vmatpush.bf16.msrb.mxu3 %v8723_v33  ;;  %v9486_v28 = vld [vmem:[#allocation18 + $0x22c] sm:$0xf0] }
 0x462   :  { %5753 = vmatpush.bf16.msrb.mxu1 %v8347_v7  ;;  %v8570_v7 = vld [vmem:[#allocation18 + $0x510] sm:$0xf]  ;;  %v8187_v33 = vor.u32 %v9486_v28, %v8186_v35  ;;  %v8284_v35 = vld [vmem:[#allocation18 + $0x2f0] sm:$0xf0] }
 0x463   :  { %5718 = vmatpush.bf16.msra.mxu2 %v8471_v34  ;;  %v8571_v34 = vor.u32 %v9582_v39, %v8570_v7  ;;  %v9602_v28 = vld [vmem:[#allocation18 + $0x5d4] sm:$0xf]  ;;  %v8923_v39 = vor.u32 %v9670_v27, %v8922_v24  ;;  %v8826_v9 = vld [vmem:[#allocation18 + $0x710] sm:$0xf] }
 0x464   :  { %v8668_v7 = vld [vmem:[#allocation18 + $0x5f0] sm:$0xf0]  ;;  %v9646_v63 = vld [vmem:[#allocation18 + $0x72c] sm:$0xf0] }
 0x465   :  { %5745 = vmatpush.bf16.msrb.mxu0 %v7931_v53  ;;  %5680 = vmatpush.bf16.msrb.mxu3 %v8691_v21  ;;  %v9574_v53 = vld [vmem:[#allocation18 + $0x4ec] sm:$0xf0]  ;;  %v8671_v47 = vor.u32 %v9602_v28, %v8668_v7  ;;  %v9570_v24 = vld [vmem:[#allocation18 + $0x4d4] sm:$0xf] }
 0x466   :  { %5754 = vmatpush.bf16.msrb.mxu1 %v8315_v54  ;;  %v9434_v54 = vld [vmem:[#allocation18 + $0x94] sm:$0xf]  ;;  %v8539_v61 = vor.u32 %v9574_v53, %v8538_v51  ;;  %v8891_v53 = vor.u32 %v9662_v46, %v8890_v38  ;;  %v9630_v28 = vld [vmem:[#allocation18 + $0x6ac] sm:$0xf0]  ;;  %v7970_v38 = vld [vmem:[#allocation18 + $0x58] sm:$0xf] }
 0x467   :  { %5719 = vmatpush.bf16.msra.mxu2 %v8439_v0  ;;  %v7999_v21 = vor.u32 %v9434_v54, %v7996_v55  ;;  %v9426_v0 = vld [vmem:[#allocation18 + $0x54] sm:$0xf]  ;;  %v8098_v54 = vld [vmem:[#allocation18 + $0x158] sm:$0xf] }
 0x468   :  { %5746 = vmatmul.bf16.vlgmr.msrb.gmra.mxu0 %v10268_v13  ;;  %5681 = vmatmul.bf16.vlgmr.msrb.gmra.mxu3 %v10284_v26  ;;  %v9594_v51 = vld [vmem:[#allocation18 + $0x594] sm:$0xf]  ;;  %v9463_v55 = vld [vmem:[#allocation18 + $0x174] sm:$0xf0] }
 0x469   :  { %5790 = vmatpush.bf16.msra.mxu0 %v8159_v58  ;;  %5725 = vmatpush.bf16.msra.mxu3 %v8919_v1  ;;  %v8380_v58 = vld [vmem:[#allocation18 + $0x3b0] sm:$0xf0] }
 0x46a   :  { %5755 = vmatpush.bf16.msrb.mxu1 %v8283_v3  ;;  %5720 = vmatmul.bf16.vlgmr.msra.gmra.mxu2 %v10276_v2  ;;  %v8383_v62 = vor.u32 %v9530_v57, %v8380_v58  ;;  %v7964_v1 = vld [vmem:[#allocation18 + $0x70] sm:$0xf0]  ;;  %v8759_v3 = vor.u32 %v9625_v59, %v8756_v60  ;;  %v9654_v57 = vld [vmem:[#allocation18 + $0x76c] sm:$0xf0] }
 0x46b   :  { %5764 = vmatpush.bf16.msrb.mxu2 %v8667_v6  ;;  %v9617_v6 = vld [vmem:[#allocation18 + $0x64c] sm:$0xf]  ;;  %v7967_v45 = vor.u32 %v9426_v0, %v7964_v1  ;;  %v9490_v60 = vld [vmem:[#allocation18 + $0x254] sm:$0xf]  ;;  %v8066_v0 = vld [vmem:[#allocation18 + $0x118] sm:$0xf] }
 0x46c   :  { %v9455_v1 = vld [vmem:[#allocation18 + $0x134] sm:$0xf0]  ;;  %v8540_v27 = vld [vmem:[#allocation18 + $0x4f0] sm:$0xf0] }
 0x46d   :  { %5791 = vmatpush.bf16.msra.mxu0 %v8127_v15  ;;  %5726 = vmatpush.bf16.msra.mxu3 %v8887_v11  ;;  %v8724_v15 = vld [vmem:[#allocation18 + $0x668] sm:$0xf0]  ;;  %v7932_v11 = vld [vmem:[#allocation18 + $0x30] sm:$0xf0]  ;;  %v8067_v36 = vor.u32 %v9455_v1, %v8066_v0  ;;  %v8543_v7 = vor.u32 %v9570_v24, %v8540_v27  ;;  %v9614_v0 = vld [vmem:[#allocation18 + $0x62c] sm:$0xf0] }
 0x46e   :  { %5756 = vmatpush.bf16.msrb.mxu1 %v8251_v12  ;;  %v9514_v12 = vld [vmem:[#allocation18 + $0x314] sm:$0xf]  ;;  %v8727_v17 = vor.u32 %v9617_v6, %v8724_v15  ;;  %v7935_v23 = vor.u32 %v9418_v10, %v7932_v11  ;;  %v8034_v10 = vld [vmem:[#allocation18 + $0xd8] sm:$0xf]  ;;  %v8827_v11 = vor.u32 %v9646_v63, %v8826_v9 }
 0x46f   :  { %5765 = vmatpush.bf16.msrb.mxu2 %v8635_v14  ;;  %v8162_v14 = vld [vmem:[#allocation18 + $0x1d8] sm:$0xf]  ;;  %v9666_v9 = vld [vmem:[#allocation18 + $0x7d4] sm:$0xf] }
 0x470   :  { %v8924_v63 = vld [vmem:[#allocation18 + $0x7f0] sm:$0xf0]  ;;  %v8258_v24 = vld [vmem:[#allocation18 + $0x298] sm:$0xf] }
 0x471   :  { %5792 = vmatpush.bf16.msra.mxu0 %v8095_v16  ;;  %5727 = vmatpush.bf16.msra.mxu3 %v8855_v29  ;;  %v9479_v16 = vld [vmem:[#allocation18 + $0x1f4] sm:$0xf0]  ;;  %v8319_v29 = vor.u32 %v9514_v12, %v8316_v19 }
 0x472   :  { %5757 = vmatpush.bf16.msrb.mxu1 %v8219_v30  ;;  %v8163_v30 = vor.u32 %v9479_v16, %v8162_v14  ;;  %v9447_v12 = vld [vmem:[#allocation18 + $0xf4] sm:$0xf0]  ;;  %v8794_v14 = vld [vmem:[#allocation18 + $0x6d0] sm:$0xf] }
 0x473   :  { %5766 = vmatpush.bf16.msrb.mxu2 %v8603_v32  ;;  %v9506_v32 = vld [vmem:[#allocation18 + $0x2d4] sm:$0xf]  ;;  %v9543_v19 = vld [vmem:[#allocation18 + $0x3f4] sm:$0xf0]  ;;  %v9638_v16 = vld [vmem:[#allocation18 + $0x6ec] sm:$0xf0] }
 0x475   :  { %5793 = vmatpush.bf16.msra.mxu0 %v8063_v37  ;;  %5728 = vmatpush.bf16.msra.mxu3 %v8823_v48  ;;  %v8695_v37 = vor.u32 %v9609_v20, %v8692_v22  ;;  %v8443_v48 = vor.u32 %v9550_v31, %v8442_v18  ;;  %v9439_v18 = vld [vmem:[#allocation18 + $0xb4] sm:$0xf0] }
 0x476   :  { %5758 = vmatpush.bf16.msrb.mxu1 %v8187_v33  ;;  %v8287_v33 = vor.u32 %v9506_v32, %v8284_v35  ;;  %v8386_v31 = vld [vmem:[#allocation18 + $0x398] sm:$0xf]  ;;  %v8762_v35 = vld [vmem:[#allocation18 + $0x690] sm:$0xf] }
 0x477   :  { %5767 = vmatpush.bf16.msrb.mxu2 %v8571_v34  ;;  %v8131_v34 = vor.u32 %v9471_v40, %v8130_v41  ;;  %v9535_v32 = vld [vmem:[#allocation18 + $0x3b4] sm:$0xf0]  ;;  %v9562_v40 = vld [vmem:[#allocation18 + $0x494] sm:$0xf]  ;;  %v8763_v46 = vor.u32 %v9630_v28, %v8762_v35  ;;  %v9459_v35 = vld [vmem:[#allocation18 + $0x15c] sm:$0xf] }
 0x478   :  { %v8387_v41 = vor.u32 %v9535_v32, %v8386_v31  ;;  %v8100_v28 = vld [vmem:[#allocation18 + $0x178] sm:$0xf0] }
 0x479   :  { %5794 = vmatpush.bf16.msra.mxu0 %v8031_v50  ;;  %5729 = vmatpush.bf16.msra.mxu3 %v8791_v56  ;;  %v8252_v50 = vld [vmem:[#allocation18 + $0x2b0] sm:$0xf0]  ;;  %v8858_v56 = vld [vmem:[#allocation18 + $0x750] sm:$0xf] }
 0x47a   :  { %5803 = vmatpush.bf16.msra.mxu1 %v8415_v52  ;;  %v8636_v52 = vld [vmem:[#allocation18 + $0x5b0] sm:$0xf0]  ;;  %v8255_v58 = vor.u32 %v9498_v49, %v8252_v50  ;;  %v8859_v8 = vor.u32 %v9654_v57, %v8858_v56  ;;  %v9527_v49 = vld [vmem:[#allocation18 + $0x374] sm:$0xf0]  ;;  %v9622_v50 = vld [vmem:[#allocation18 + $0x66c] sm:$0xf0] }
 0x47b   :  { %5759 = vmatmul.bf16.vlgmr.msrb.gmra.mxu1 %v10271_v44  ;;  %5768 = vmatpush.bf16.msrb.mxu2 %v8539_v61  ;;  %v8639_v59 = vor.u32 %v9594_v51, %v8636_v52  ;;  %v8099_v61 = vor.u32 %v9463_v55, %v8098_v54  ;;  %v9554_v52 = vld [vmem:[#allocation18 + $0x454] sm:$0xf]  ;;  %v7938_v56 = vld [vmem:[#allocation18 + $0x18] sm:$0xf] }
 0x47c   :  { %v8476_v55 = vld [vmem:[#allocation18 + $0x470] sm:$0xf0]  ;;  %v9423_v57 = vld [vmem:[#allocation18 + $0x34] sm:$0xf0] }
 0x47d   :  { %5795 = vmatpush.bf16.msra.mxu0 %v7999_v21  ;;  %5730 = vmatpush.bf16.msra.mxu3 %v8759_v3  ;;  %v8220_v21 = vld [vmem:[#allocation18 + $0x270] sm:$0xf0]  ;;  %v8479_v1 = vor.u32 %v9554_v52, %v8476_v55  ;;  %v8194_v55 = vld [vmem:[#allocation18 + $0x218] sm:$0xf] }
 0x47e   :  { %5804 = vmatpush.bf16.msra.mxu1 %v8383_v62  ;;  %v8604_v62 = vld [vmem:[#allocation18 + $0x570] sm:$0xf0]  ;;  %v8223_v6 = vor.u32 %v9490_v60, %v8220_v21  ;;  %v9519_v60 = vld [vmem:[#allocation18 + $0x334] sm:$0xf0] }
 0x47f   :  { %5769 = vmatpush.bf16.msrb.mxu2 %v8507_v25  ;;  %v8607_v15 = vor.u32 %v9586_v42, %v8604_v62  ;;  %v9482_v25 = vld [vmem:[#allocation18 + $0x214] sm:$0xf]  ;;  %v8164_v62 = vld [vmem:[#allocation18 + $0x1f8] sm:$0xf0] }
 0x480   :  { %v8828_v52 = vld [vmem:[#allocation18 + $0x730] sm:$0xf0] }
 0x481   :  { %5796 = vmatpush.bf16.msra.mxu0 %v7967_v45  ;;  %5731 = vmatpush.bf16.msra.mxu3 %v8727_v17  ;;  %v8188_v45 = vld [vmem:[#allocation18 + $0x230] sm:$0xf0]  ;;  %v8418_v17 = vld [vmem:[#allocation18 + $0x3d8] sm:$0xf] }
 0x482   :  { %5805 = vmatpush.bf16.msra.mxu1 %v8351_v43  ;;  %v8572_v43 = vld [vmem:[#allocation18 + $0x530] sm:$0xf0]  ;;  %v8191_v20 = vor.u32 %v9482_v25, %v8188_v45 }
 0x483   :  { %5770 = vmatpush.bf16.msrb.mxu2 %v8475_v4  ;;  %v8575_v22 = vor.u32 %v9578_v5, %v8572_v43  ;;  %v8035_v4 = vor.u32 %v9447_v12, %v8034_v10  ;;  %v9546_v25 = vld [vmem:[#allocation18 + $0x414] sm:$0xf]  ;;  %v9511_v10 = vld [vmem:[#allocation18 + $0x2f4] sm:$0xf0] }
 0x484   :  { %v8444_v45 = vld [vmem:[#allocation18 + $0x430] sm:$0xf0]  ;;  %v9607_v12 = vld [vmem:[#allocation18 + $0x5f4] sm:$0xf0] }
 0x485   :  { %5797 = vmatpush.bf16.msra.mxu0 %v7935_v23  ;;  %5732 = vmatpush.bf16.msra.mxu3 %v8695_v37  ;;  %v10298_v3 = vpop.f32.mrf.mxu0  ;;  %v8419_v23 = vor.u32 %v9543_v19, %v8418_v17  ;;  %v8927_v17 = vor.u32 %v9666_v9, %v8924_v63  ;;  %v9467_v19 = vld [vmem:[#allocation18 + $0x19c] sm:$0xf]  ;;  %v9634_v63 = vld [vmem:[#allocation18 + $0x6d4] sm:$0xf] }
 0x486   :  { %5806 = vmatpush.bf16.msra.mxu1 %v8319_v29  ;;  %v8002_v29 = vld [vmem:[#allocation18 + $0x98] sm:$0xf]  ;;  %v8420_v9 = vld [vmem:[#allocation18 + $0x3f8] sm:$0xf0] }
 0x487   :  { %5771 = vmatpush.bf16.msrb.mxu2 %v8443_v48  ;;  %v8508_v48 = vld [vmem:[#allocation18 + $0x4b0] sm:$0xf0] }
 0x488   :  { %5798 = vmatmul.bf16.vlgmr.msra.gmra.mxu0 %v10268_v13  ;;  %5733 = vmatmul.bf16.vlgmr.msra.gmra.mxu3 %v10284_v26  ;;  %v8511_v51 = vor.u32 %v9562_v40, %v8508_v48  ;;  %v8226_v48 = vld [vmem:[#allocation18 + $0x258] sm:$0xf] }
 0x489   :  { %5842 = vmatpush.bf16.msrb.mxu0 %v8163_v30  ;;  %5777 = vmatpush.bf16.msrb.mxu3 %v8923_v39  ;;  %v8795_v30 = vor.u32 %v9638_v16, %v8794_v14  ;;  %v8003_v39 = vor.u32 %v9439_v18, %v8002_v29  ;;  %v8132_v14 = vld [vmem:[#allocation18 + $0x1b8] sm:$0xf0]  ;;  %v8447_v16 = vor.u32 %v9546_v25, %v8444_v45  ;;  %v9503_v29 = vld [vmem:[#allocation18 + $0x2b4] sm:$0xf0] }
 0x48a   :  { %5807 = vmatpush.bf16.msra.mxu1 %v8287_v33  ;;  %5772 = vmatmul.bf16.vlgmr.msrb.gmra.mxu2 %v10276_v2  ;;  %v9431_v33 = vld [vmem:[#allocation18 + $0x74] sm:$0xf0]  ;;  %v8135_v27 = vor.u32 %v9467_v19, %v8132_v14  ;;  %v8388_v19 = vld [vmem:[#allocation18 + $0x3b8] sm:$0xf0]  ;;  %v9626_v14 = vld [vmem:[#allocation18 + $0x694] sm:$0xf] }
 0x48b   :  { %5816 = vmatpush.bf16.msra.mxu2 %v8671_v47  ;;  %v8354_v47 = vld [vmem:[#allocation18 + $0x358] sm:$0xf] }
 0x48c   :  { %v8355_v54 = vor.u32 %v9527_v49, %v8354_v47  ;;  %v9599_v18 = vld [vmem:[#allocation18 + $0x5b4] sm:$0xf0] }
 0x48d   :  { %5843 = vmatpush.bf16.msrb.mxu0 %v8131_v34  ;;  %5778 = vmatpush.bf16.msrb.mxu3 %v8891_v53  ;;  %v5541_v37 = vpop.f32.mrf.mxu0  ;;  %v8730_v34 = vld [vmem:[#allocation18 + $0x650] sm:$0xf]  ;;  %v7971_v53 = vor.u32 %v9431_v33, %v7970_v38  ;;  %v8103_v38 = vor.u32 %v9459_v35, %v8100_v28  ;;  %v8610_v33 = vld [vmem:[#allocation18 + $0x558] sm:$0xf]  ;;  %v8356_v35 = vld [vmem:[#allocation18 + $0x378] sm:$0xf0] }
 0x48e   :  { %5808 = vmatpush.bf16.msra.mxu1 %v8255_v58  ;;  %v8731_v58 = vor.u32 %v9622_v50, %v8730_v34  ;;  %v9591_v47 = vld [vmem:[#allocation18 + $0x574] sm:$0xf0]  ;;  %v9451_v34 = vld [vmem:[#allocation18 + $0x11c] sm:$0xf]  ;;  %v9618_v28 = vld [vmem:[#allocation18 + $0x654] sm:$0xf] }
 0x48f   :  { %5817 = vmatpush.bf16.msra.mxu2 %v8639_v59  ;;  %v8322_v59 = vld [vmem:[#allocation18 + $0x318] sm:$0xf]  ;;  %v8068_v50 = vld [vmem:[#allocation18 + $0x138] sm:$0xf0] }
 0x491   :  { %5844 = vmatpush.bf16.msrb.mxu0 %v8099_v61  ;;  %5779 = vmatpush.bf16.msrb.mxu3 %v8859_v8  ;;  %v9475_v61 = vld [vmem:[#allocation18 + $0x1dc] sm:$0xf]  ;;  %v8698_v8 = vld [vmem:[#allocation18 + $0x610] sm:$0xf] }
 0x492   :  { %5809 = vmatpush.bf16.msra.mxu1 %v8223_v6  ;;  %v7939_v6 = vor.u32 %v9423_v57, %v7938_v56  ;;  %v8167_v5 = vor.u32 %v9475_v61, %v8164_v62  ;;  %v8699_v43 = vor.u32 %v9614_v0, %v8698_v8  ;;  %v9487_v56 = vld [vmem:[#allocation18 + $0x234] sm:$0xf0]  ;;  %v8071_v57 = vor.u32 %v9451_v34, %v8068_v50  ;;  %v8036_v0 = vld [vmem:[#allocation18 + $0xf8] sm:$0xf0]  ;;  %v9610_v50 = vld [vmem:[#allocation18 + $0x614] sm:$0xf] }
 0x493   :  { %5818 = vmatpush.bf16.msra.mxu2 %v8607_v15  ;;  %v8323_v15 = vor.u32 %v9519_v60, %v8322_v59  ;;  %v9583_v59 = vld [vmem:[#allocation18 + $0x534] sm:$0xf0]  ;;  %v9443_v60 = vld [vmem:[#allocation18 + $0xdc] sm:$0xf] }
 0x494   :  { %v8039_v45 = vor.u32 %v9443_v60, %v8036_v0  ;;  %v8324_v34 = vld [vmem:[#allocation18 + $0x338] sm:$0xf0] }
 0x495   :  { %5845 = vmatpush.bf16.msrb.mxu0 %v8067_v36  ;;  %5780 = vmatpush.bf16.msrb.mxu3 %v8827_v11  ;;  %v10301_v21 = vpop.f32.mrf.mxu1  ;;  %v10303_v42 = vpop.f32.mrf.mxu0  ;;  %v8290_v36 = vld [vmem:[#allocation18 + $0x2d8] sm:$0xf]  ;;  %v9507_v60 = vld [vmem:[#allocation18 + $0x2dc] sm:$0xf] }
 0x496   :  { %5810 = vmatpush.bf16.msra.mxu1 %v8191_v20  ;;  %v8674_v11 = vld [vmem:[#allocation18 + $0x5d8] sm:$0xf]  ;;  %v9658_v20 = vld [vmem:[#allocation18 + $0x794] sm:$0xf] }
 0x497   :  { %5819 = vmatpush.bf16.msra.mxu2 %v8575_v22  ;;  %v8892_v22 = vld [vmem:[#allocation18 + $0x7b0] sm:$0xf0] }
 0x498   :  { %v8895_v37 = vor.u32 %v9658_v20, %v8892_v22 }
 0x499   :  { %5846 = vmatpush.bf16.msrb.mxu0 %v8035_v4  ;;  %5781 = vmatpush.bf16.msrb.mxu3 %v8795_v30  ;;  %v8291_v4 = vor.u32 %v9511_v10, %v8290_v36  ;;  %v8642_v30 = vld [vmem:[#allocation18 + $0x598] sm:$0xf]  ;;  %v9435_v10 = vld [vmem:[#allocation18 + $0x9c] sm:$0xf] }
 0x49a   :  { %5855 = vmatpush.bf16.msrb.mxu1 %v8419_v23  ;;  %v8675_v23 = vor.u32 %v9607_v12, %v8674_v11  ;;  %v8643_v40 = vor.u32 %v9599_v18, %v8642_v30  ;;  %v8004_v12 = vld [vmem:[#allocation18 + $0xb8] sm:$0xf0] }
 0x49b   :  { %5811 = vmatmul.bf16.vlgmr.msra.gmra.mxu1 %v10271_v44  ;;  %5820 = vmatpush.bf16.msra.mxu2 %v8543_v7  ;;  %v9650_v7 = vld [vmem:[#allocation18 + $0x754] sm:$0xf] }
 0x49d   :  { %5847 = vmatpush.bf16.msrb.mxu0 %v8003_v39  ;;  %5782 = vmatpush.bf16.msrb.mxu3 %v8763_v46  ;;  %v5554_v31 = vpop.f32.mrf.mxu1  ;;  %v5593_v32 = vpop.f32.mrf.mxu0  ;;  %v8860_v39 = vld [vmem:[#allocation18 + $0x770] sm:$0xf0]  ;;  %v9495_v46 = vld [vmem:[#allocation18 + $0x274] sm:$0xf0] }
 0x49e   :  { %5856 = vmatpush.bf16.msrb.mxu1 %v8387_v41  ;;  %v8259_v41 = vor.u32 %v9503_v29, %v8258_v24  ;;  %v8863_v49 = vor.u32 %v9650_v7, %v8860_v39  ;;  %v8514_v24 = vld [vmem:[#allocation18 + $0x498] sm:$0xf]  ;;  %v9427_v29 = vld [vmem:[#allocation18 + $0x5c] sm:$0xf]  ;;  %v8732_v7 = vld [vmem:[#allocation18 + $0x670] sm:$0xf0] }
 0x49f   :  { %5821 = vmatpush.bf16.msra.mxu2 %v8511_v51  ;;  %v9642_v51 = vld [vmem:[#allocation18 + $0x714] sm:$0xf]  ;;  %v7972_v32 = vld [vmem:[#allocation18 + $0x78] sm:$0xf0] }
 0x4a0   :  { %v8831_v8 = vor.u32 %v9642_v51, %v8828_v52  ;;  %v8700_v51 = vld [vmem:[#allocation18 + $0x630] sm:$0xf0] }
 0x4a1   :  { %5848 = vmatpush.bf16.msrb.mxu0 %v7971_v53  ;;  %5783 = vmatpush.bf16.msrb.mxu3 %v8731_v58  ;;  %v8227_v53 = vor.u32 %v9495_v46, %v8226_v48  ;;  %v8578_v58 = vld [vmem:[#allocation18 + $0x518] sm:$0xf]  ;;  %v9419_v46 = vld [vmem:[#allocation18 + $0x1c] sm:$0xf]  ;;  %v8703_v0 = vor.u32 %v9610_v50, %v8700_v51 }
 0x4a2   :  { %5857 = vmatpush.bf16.msrb.mxu1 %v8355_v54  ;;  %v8611_v54 = vor.u32 %v9591_v47, %v8610_v33  ;;  %v8579_v25 = vor.u32 %v9583_v59, %v8578_v58  ;;  %v8482_v48 = vld [vmem:[#allocation18 + $0x458] sm:$0xf]  ;;  %v8735_v33 = vor.u32 %v9618_v28, %v8732_v7  ;;  %v7940_v47 = vld [vmem:[#allocation18 + $0x38] sm:$0xf0] }
 0x4a3   :  { %5822 = vmatpush.bf16.msra.mxu2 %v8479_v1  ;;  %v9539_v1 = vld [vmem:[#allocation18 + $0x3dc] sm:$0xf]  ;;  %v8450_v58 = vld [vmem:[#allocation18 + $0x418] sm:$0xf] }
 0x4a4   :  { %v8423_v36 = vor.u32 %v9539_v1, %v8420_v9  ;;  %v9551_v59 = vld [vmem:[#allocation18 + $0x434] sm:$0xf0]  ;;  %v8292_v1 = vld [vmem:[#allocation18 + $0x2f8] sm:$0xf0] }
 0x4a5   :  { %5849 = vmatpush.bf16.msrb.mxu0 %v7939_v6  ;;  %5784 = vmatpush.bf16.msrb.mxu3 %v8699_v43  ;;  %v10308_v61 = vpop.f32.mrf.mxu1  ;;  %v10310_v62 = vpop.f32.mrf.mxu0  ;;  %v8796_v6 = vld [vmem:[#allocation18 + $0x6f0] sm:$0xf0]  ;;  %v9575_v43 = vld [vmem:[#allocation18 + $0x4f4] sm:$0xf0]  ;;  %v9603_v9 = vld [vmem:[#allocation18 + $0x5dc] sm:$0xf] }
 0x4a6   :  { %5858 = vmatpush.bf16.msrb.mxu1 %v8323_v15  ;;  %v8195_v15 = vor.u32 %v9487_v56, %v8194_v55  ;;  %v8799_v11 = vor.u32 %v9634_v63, %v8796_v6  ;;  %v7943_v56 = vor.u32 %v9419_v46, %v7940_v47  ;;  %v8676_v63 = vld [vmem:[#allocation18 + $0x5f8] sm:$0xf0]  ;;  %v9639_v47 = vld [vmem:[#allocation18 + $0x6f4] sm:$0xf0] }
 0x4a7   :  { %5823 = vmatpush.bf16.msra.mxu2 %v8447_v16  ;;  %v8764_v16 = vld [vmem:[#allocation18 + $0x6b0] sm:$0xf0]  ;;  %v9483_v7 = vld [vmem:[#allocation18 + $0x21c] sm:$0xf] }
 0x4a8   :  { %5850 = vmatmul.bf16.vlgmr.msrb.gmra.mxu0 %v10268_v13  ;;  %5785 = vmatmul.bf16.vlgmr.msrb.gmra.mxu3 %v10284_v26  ;;  %v8767_v31 = vor.u32 %v9626_v14, %v8764_v16  ;;  %v9655_v14 = vld [vmem:[#allocation18 + $0x774] sm:$0xf0] }
 0x4a9   :  { %5894 = vmatpush.bf16.msra.mxu0 %v8167_v5  ;;  %5829 = vmatpush.bf16.msra.mxu3 %v8927_v17  ;;  %v8546_v5 = vld [vmem:[#allocation18 + $0x4d8] sm:$0xf]  ;;  %v9531_v17 = vld [vmem:[#allocation18 + $0x39c] sm:$0xf] }
 0x4aa   :  { %5859 = vmatpush.bf16.msrb.mxu1 %v8291_v4  ;;  %5824 = vmatmul.bf16.vlgmr.msra.gmra.mxu2 %v10276_v2  ;;  %v8547_v20 = vor.u32 %v9575_v43, %v8546_v5  ;;  %v8007_v4 = vor.u32 %v9435_v10, %v8004_v12  ;;  %v8679_v5 = vor.u32 %v9603_v9, %v8676_v63  ;;  %v9499_v43 = vld [vmem:[#allocation18 + $0x29c] sm:$0xf]  ;;  %v10321_v16 = vld [vmem:[%s10371_s12] sm:$0xff] }
 0x4ab   :  { %5868 = vmatpush.bf16.msrb.mxu2 %v8675_v23  ;;  %v8391_v23 = vor.u32 %v9531_v17, %v8388_v19  ;;  %v8260_v10 = vld [vmem:[#allocation18 + $0x2b8] sm:$0xf0]  ;;  %v8866_v19 = vld [vmem:[#allocation18 + $0x758] sm:$0xf] }
 0x4ac   :  { %v10312_v22 = vpop.f32.mrf.mxu2  ;;  %v8644_v12 = vld [vmem:[#allocation18 + $0x5b8] sm:$0xf0]  ;;  %v9623_v63 = vld [vmem:[#allocation18 + $0x674] sm:$0xf0] }
 0x4ad   :  { %5895 = vmatpush.bf16.msra.mxu0 %v8135_v27  ;;  %5830 = vmatpush.bf16.msra.mxu3 %v8895_v37  ;;  %v9567_v27 = vld [vmem:[#allocation18 + $0x4b4] sm:$0xf0]  ;;  %v5606_v30 = vpop.f32.mrf.mxu1  ;;  %v5645_v18 = vpop.f32.mrf.mxu0  ;;  %v9523_v37 = vld [vmem:[#allocation18 + $0x35c] sm:$0xf] }
 0x4ae   :  { %5860 = vmatpush.bf16.msrb.mxu1 %v8259_v41  ;;  %v8515_v39 = vor.u32 %v9567_v27, %v8514_v24  ;;  %v7975_v41 = vor.u32 %v9427_v29, %v7972_v32  ;;  %v9491_v24 = vld [vmem:[#allocation18 + $0x25c] sm:$0xf]  ;;  %v8867_v18 = vor.u32 %v9655_v14, %v8866_v19  ;;  %v8834_v32 = vld [vmem:[#allocation18 + $0x718] sm:$0xf] }
 0x4af   :  { %5869 = vmatpush.bf16.msrb.mxu2 %v8643_v40  ;;  %v8359_v40 = vor.u32 %v9523_v37, %v8356_v35  ;;  %v8228_v29 = vld [vmem:[#allocation18 + $0x278] sm:$0xf0]  ;;  %v9647_v37 = vld [vmem:[#allocation18 + $0x734] sm:$0xf0] }
 0x4b0   :  { %v9587_v30 = vld [vmem:[#allocation18 + $0x55c] sm:$0xf]  ;;  %v8231_v35 = vor.u32 %v9491_v24, %v8228_v29 }
 0x4b1   :  { %5896 = vmatpush.bf16.msra.mxu0 %v8103_v38  ;;  %5831 = vmatpush.bf16.msra.mxu3 %v8863_v49  ;;  %v9559_v38 = vld [vmem:[#allocation18 + $0x474] sm:$0xf0]  ;;  %v9515_v49 = vld [vmem:[#allocation18 + $0x31c] sm:$0xf] }
 0x4b2   :  { %5861 = vmatpush.bf16.msrb.mxu1 %v8227_v53  ;;  %v8483_v52 = vor.u32 %v9559_v38, %v8482_v48  ;;  %v8930_v53 = vld [vmem:[#allocation18 + $0x7d8] sm:$0xf]  ;;  %v8835_v38 = vor.u32 %v9647_v37, %v8834_v32  ;;  %v9547_v19 = vld [vmem:[#allocation18 + $0x41c] sm:$0xf] }
 0x4b3   :  { %5870 = vmatpush.bf16.msrb.mxu2 %v8611_v54  ;;  %v9671_v54 = vld [vmem:[#allocation18 + $0x7f4] sm:$0xf0] }
 0x4b4   :  { %v5567_v55 = vpop.f32.mrf.mxu2  ;;  %v8931_v6 = vor.u32 %v9671_v54, %v8930_v53  ;;  %v8548_v53 = vld [vmem:[#allocation18 + $0x4f8] sm:$0xf0] }
 0x4b5   :  { %5897 = vmatpush.bf16.msra.mxu0 %v8071_v57  ;;  %5832 = vmatpush.bf16.msra.mxu3 %v8831_v8  ;;  %v8327_v57 = vor.u32 %v9515_v49, %v8324_v34 }
 0x4b6   :  { %5862 = vmatpush.bf16.msrb.mxu1 %v8195_v15  ;;  %v10315_v8 = vpop.f32.mrf.mxu1  ;;  %v8451_v15 = vor.u32 %v9551_v59, %v8450_v58 }
 0x4b7   :  { %5871 = vmatpush.bf16.msrb.mxu2 %v8579_v25  ;;  %v8898_v25 = vld [vmem:[#allocation18 + $0x798] sm:$0xf] }
 0x4b9   :  { %5898 = vmatpush.bf16.msra.mxu0 %v8039_v45  ;;  %5833 = vmatpush.bf16.msra.mxu3 %v8799_v11  ;;  %v9663_v45 = vld [vmem:[#allocation18 + $0x7b4] sm:$0xf0]  ;;  %v9595_v11 = vld [vmem:[#allocation18 + $0x59c] sm:$0xf] }
 0x4ba   :  { %5907 = vmatpush.bf16.msra.mxu1 %v8423_v36  ;;  %v8295_v36 = vor.u32 %v9507_v60, %v8292_v1  ;;  %v8899_v17 = vor.u32 %v9663_v45, %v8898_v25  ;;  %v9563_v60 = vld [vmem:[#allocation18 + $0x49c] sm:$0xf] }
 0x4bb   :  { %5863 = vmatmul.bf16.vlgmr.msrb.gmra.mxu1 %v10271_v44  ;;  %5872 = vmatpush.bf16.msrb.mxu2 %v8547_v20  ;;  %v8484_v25 = vld [vmem:[#allocation18 + $0x478] sm:$0xf0] }
 0x4bd   :  { %5899 = vmatpush.bf16.msra.mxu0 %v8007_v4  ;;  %5834 = vmatpush.bf16.msra.mxu3 %v8767_v31  ;;  %v10323_v20 = vpop.f32.mrf.mxu2  ;;  %v8263_v4 = vor.u32 %v9499_v43, %v8260_v10  ;;  %v4234_v31 = vperm.slane %v10321_v16, 0  ;;  %v9615_v43 = vld [vmem:[#allocation18 + $0x634] sm:$0xf0] }
 0x4be   :  { %5908 = vmatpush.bf16.msra.mxu1 %v8391_v23  ;;  %v8647_v23 = vor.u32 %v9595_v11, %v8644_v12  ;;  %v5658_v27 = vpop.f32.mrf.mxu1  ;;  %v9667_v12 = vld [vmem:[#allocation18 + $0x7dc] sm:$0xf] }
 0x4bf   :  { %5873 = vmatpush.bf16.msrb.mxu2 %v8515_v39  ;;  %v8196_v39 = vld [vmem:[#allocation18 + $0x238] sm:$0xf0]  ;;  %v5540_v46 = vadd.f32 %v10298_v3, %v4234_v31 }
 0x4c0   :  { %v8199_v34 = vor.u32 %v9483_v7, %v8196_v39 }
 0x4c1   :  { %5900 = vmatpush.bf16.msra.mxu0 %v7975_v41  ;;  %5835 = vmatpush.bf16.msra.mxu3 %v8735_v33  ;;  %v9579_v41 = vld [vmem:[#allocation18 + $0x51c] sm:$0xf]  ;;  %v8802_v33 = vld [vmem:[#allocation18 + $0x6d8] sm:$0xf]  ;;  %v5553_v51 = vadd.f32 %v10301_v21, %v5540_v46 }
 0x4c2   :  { %5909 = vmatpush.bf16.msra.mxu1 %v8359_v40  ;;  %v8580_v40 = vld [vmem:[#allocation18 + $0x538] sm:$0xf0]  ;;  %v8803_v54 = vor.u32 %v9639_v47, %v8802_v33  ;;  %v8738_v21 = vld [vmem:[#allocation18 + $0x658] sm:$0xf] }
 0x4c3   :  { %5874 = vmatpush.bf16.msrb.mxu2 %v8483_v52  ;;  %v8583_v50 = vor.u32 %v9579_v41, %v8580_v40  ;;  %v9571_v52 = vld [vmem:[#allocation18 + $0x4dc] sm:$0xf]  ;;  %v5566_v55 = vadd.f32 %v10312_v22, %v5553_v51  ;;  %v8739_v45 = vor.u32 %v9623_v63, %v8738_v21  ;;  %v4237_v63 = vperm.slane %v10321_v16, 3 }
 0x4c4   :  { %v8551_v58 = vor.u32 %v9571_v52, %v8548_v53  ;;  %v9643_v41 = vld [vmem:[#allocation18 + $0x71c] sm:$0xf] }
 0x4c5   :  { %5901 = vmatpush.bf16.msra.mxu0 %v7943_v56  ;;  %5836 = vmatpush.bf16.msra.mxu3 %v8703_v0  ;;  %v10328_v48 = vpop.f32.mrf.mxu0  ;;  %v5619_v49 = vpop.f32.mrf.mxu2  ;;  %v8770_v56 = vld [vmem:[#allocation18 + $0x698] sm:$0xf]  ;;  %v8516_v0 = vld [vmem:[#allocation18 + $0x4b8] sm:$0xf0] }
 0x4c6   :  { %5910 = vmatpush.bf16.msra.mxu1 %v8327_v57  ;;  %v9631_v57 = vld [vmem:[#allocation18 + $0x6b4] sm:$0xf0]  ;;  %v8519_v22 = vor.u32 %v9563_v60, %v8516_v0  ;;  %v9635_v46 = vld [vmem:[#allocation18 + $0x6dc] sm:$0xf] }
 0x4c7   :  { %5875 = vmatpush.bf16.msrb.mxu2 %v8451_v15  ;;  %v8771_v9 = vor.u32 %v9631_v57, %v8770_v56  ;;  %v9555_v15 = vld [vmem:[#allocation18 + $0x45c] sm:$0xf] }
 0x4c8   :  { %5902 = vmatmul.bf16.vlgmr.msra.gmra.mxu0 %v10268_v13  ;;  %5837 = vmatmul.bf16.vlgmr.msra.gmra.mxu3 %v10284_v26  ;;  %v8612_v13 = vld [vmem:[#allocation18 + $0x578] sm:$0xf0]  ;;  %v8487_v11 = vor.u32 %v9555_v15, %v8484_v25 }
 0x4c9   :  { %5881 = vmatpush.bf16.msrb.mxu3 %v8931_v6  ;;  %v8615_v28 = vor.u32 %v9587_v30, %v8612_v13  ;;  %v9659_v30 = vld [vmem:[#allocation18 + $0x79c] sm:$0xf] }
 0x4ca   :  { %5911 = vmatpush.bf16.msra.mxu1 %v8295_v36  ;;  %5876 = vmatmul.bf16.vlgmr.msrb.gmra.mxu2 %v10276_v2  ;;  %v4235_v36 = vperm.slane %v10321_v16, 1  ;;  %v8900_v13 = vld [vmem:[#allocation18 + $0x7b8] sm:$0xf0] }
 0x4cb   :  { %5920 = vmatpush.bf16.msra.mxu2 %v8679_v5  ;;  %v5578_v3 = vpop.f32.mrf.mxu3  ;;  %v8706_v5 = vld [vmem:[#allocation18 + $0x618] sm:$0xf]  ;;  %v8903_v32 = vor.u32 %v9659_v30, %v8900_v13  ;;  %v8804_v33 = vld [vmem:[#allocation18 + $0x6f8] sm:$0xf0] }
 0x4cc   :  { %v5579_v59 = vadd.f32 %v5578_v3, %v5566_v55  ;;  %v8707_v14 = vor.u32 %v9615_v43, %v8706_v5  ;;  %v8807_v49 = vor.u32 %v9635_v46, %v8804_v33  ;;  %v8772_v51 = vld [vmem:[#allocation18 + $0x6b8] sm:$0xf0]  ;;  %v4240_v46 = vperm.slane %v10321_v16, 6 }
 0x4cd   :  { %5882 = vmatpush.bf16.msrb.mxu3 %v8899_v17  ;;  %v5697_v1 = vpop.f32.mrf.mxu0  ;;  %v5669_v6 = vpop.f32.mrf.mxu2  ;;  %v8932_v17 = vld [vmem:[#allocation18 + $0x7f8] sm:$0xf0] }
 0x4ce   :  { %5912 = vmatpush.bf16.msra.mxu1 %v8263_v4  ;;  %5946 = vst [vmem:[#allocation20] sm:$0xff] %v5579_v59  ;;  %v5592_v4 = vadd.f32 %v10303_v42, %v4235_v36  ;;  %v8935_v24 = vor.u32 %v9667_v12, %v8932_v17  ;;  %v8740_v55 = vld [vmem:[#allocation18 + $0x678] sm:$0xf0] }
 0x4cf   :  { %5921 = vmatpush.bf16.msra.mxu2 %v8647_v23  ;;  %v9611_v60 = vld [vmem:[#allocation18 + $0x61c] sm:$0xf] }
 0x4d0   :  { %v8708_v0 = vld [vmem:[#allocation18 + $0x638] sm:$0xf0] }
 0x4d1   :  { %5883 = vmatpush.bf16.msrb.mxu3 %v8867_v18  ;;  %v5605_v18 = vadd.f32 %v10308_v61, %v5592_v4  ;;  %v8836_v61 = vld [vmem:[#allocation18 + $0x738] sm:$0xf0] }
 0x4d2   :  { %5913 = vmatpush.bf16.msra.mxu1 %v8231_v35  ;;  %v9651_v35 = vld [vmem:[#allocation18 + $0x75c] sm:$0xf]  ;;  %v8839_v40 = vor.u32 %v9643_v41, %v8836_v61 }
 0x4d3   :  { %5922 = vmatpush.bf16.msra.mxu2 %v8615_v28  ;;  %v5580_v10 = vpop.f32.mrf.mxu3  ;;  %v5618_v31 = vadd.f32 %v10323_v20, %v5605_v18  ;;  %v8868_v28 = vld [vmem:[#allocation18 + $0x778] sm:$0xf0]  ;;  %v4236_v20 = vperm.slane %v10321_v16, 2 }
 0x4d4   :  { %v8871_v39 = vor.u32 %v9651_v35, %v8868_v28 }
 0x4d5   :  { %5884 = vmatpush.bf16.msrb.mxu3 %v8835_v38  ;;  %v5671_v27 = vpop.f32.mrf.mxu2 }
 0x4d6   :  { %5914 = vmatpush.bf16.msra.mxu1 %v8199_v34  ;;  %v5644_v34 = vadd.f32 %v10310_v62, %v4236_v20  ;;  %v8711_v62 = vor.u32 %v9611_v60, %v8708_v0 }
 0x4d7   :  { %5923 = vmatpush.bf16.msra.mxu2 %v8583_v50  ;;  %v9627_v50 = vld [vmem:[#allocation18 + $0x69c] sm:$0xf] }
 0x4d8   :  { %v10336_v23 = vpop.f32.mrf.mxu1  ;;  %v8775_v52 = vor.u32 %v9627_v50, %v8772_v51 }
 0x4d9   :  { %5885 = vmatpush.bf16.msrb.mxu3 %v8803_v54  ;;  %5915 = vmatmul.bf16.vlgmr.msra.gmra.mxu1 %v10271_v44  ;;  %v8452_v44 = vld [vmem:[#allocation18 + $0x438] sm:$0xf0] }
 0x4da   :  { %v8455_v29 = vor.u32 %v9547_v19, %v8452_v44  ;;  %v9619_v54 = vld [vmem:[#allocation18 + $0x65c] sm:$0xf] }
 0x4db   :  { %5924 = vmatpush.bf16.msra.mxu2 %v8551_v58  ;;  %v5630_v37 = vpop.f32.mrf.mxu3  ;;  %v8743_v59 = vor.u32 %v9619_v54, %v8740_v55 }
 0x4dc   :  { %v5631_v42 = vadd.f32 %v5630_v37, %v5618_v31  ;;  %v4239_v31 = vperm.slane %v10321_v16, 5 }
 0x4dd   :  { %5886 = vmatpush.bf16.msrb.mxu3 %v8771_v9 }
 0x4de   :  { %5947 = vst [vmem:[#allocation20 + $0x8] sm:$0xff] %v5631_v42 }
 0x4df   :  { %5925 = vmatpush.bf16.msra.mxu2 %v8519_v22  ;;  %v5696_v22 = vadd.f32 %v10328_v48, %v4237_v63  ;;  %v4238_v48 = vperm.slane %v10321_v16, 4 }
 0x4e0   :  { %v5710_v7 = vpop.f32.mrf.mxu1 }
 0x4e1   :  { %5887 = vmatpush.bf16.msrb.mxu3 %v8739_v45  ;;  %v5709_v15 = vadd.f32 %v10336_v23, %v5696_v22 }
 0x4e3   :  { %5926 = vmatpush.bf16.msra.mxu2 %v8487_v11  ;;  %v5632_v38 = vpop.f32.mrf.mxu3 }
 0x4e5   :  { %5888 = vmatpush.bf16.msrb.mxu3 %v8707_v14  ;;  %v5747_v47 = vpop.f32.mrf.mxu0 }
 0x4e6   :  { %v5748_v19 = vadd.f32 %v5747_v47, %v4238_v48 }
 0x4e7   :  { %5927 = vmatpush.bf16.msra.mxu2 %v8455_v29 }
 0x4e8   :  { %5889 = vmatmul.bf16.vlgmr.msrb.gmra.mxu3 %v10284_v26 }
 0x4e9   :  { %5933 = vmatpush.bf16.msra.mxu3 %v8935_v24 }
 0x4ea   :  { %5928 = vmatmul.bf16.vlgmr.msra.gmra.mxu2 %v10276_v2  ;;  %v5657_v2 = vadd.f32 %v10315_v8, %v5644_v34 }
 0x4eb   :  { %v5682_v57 = vpop.f32.mrf.mxu3 }
 0x4ec   :  { %v5670_v53 = vadd.f32 %v5669_v6, %v5657_v2 }
 0x4ed   :  { %5934 = vmatpush.bf16.msra.mxu3 %v8903_v32  ;;  %v5749_v56 = vpop.f32.mrf.mxu0  ;;  %v5721_v58 = vpop.f32.mrf.mxu2 }
 0x4ee   :  { %v5683_v3 = vadd.f32 %v5682_v57, %v5670_v53  ;;  %v5722_v25 = vadd.f32 %v5721_v58, %v5709_v15  ;;  %v4241_v53 = vperm.slane %v10321_v16, 7 }
 0x4f0   :  { %5948 = vst [vmem:[#allocation20 + $0x10] sm:$0xff] %v5683_v3 }
 0x4f1   :  { %5935 = vmatpush.bf16.msra.mxu3 %v8871_v39 }
 0x4f3   :  { %v5684_v9 = vpop.f32.mrf.mxu3 }
 0x4f5   :  { %5936 = vmatpush.bf16.msra.mxu3 %v8839_v40  ;;  %v5723_v21 = vpop.f32.mrf.mxu2 }
 0x4f8   :  { %v5760_v1 = vpop.f32.mrf.mxu1 }
 0x4f9   :  { %5937 = vmatpush.bf16.msra.mxu3 %v8807_v49  ;;  %v5761_v44 = vadd.f32 %v5760_v1, %v5748_v19 }
 0x4fd   :  { %5938 = vmatpush.bf16.msra.mxu3 %v8775_v52 }
 0x500   :  { %v5762_v8 = vpop.f32.mrf.mxu1 }
 0x501   :  { %5939 = vmatpush.bf16.msra.mxu3 %v8743_v59 }
 0x505   :  { %5940 = vmatpush.bf16.msra.mxu3 %v8711_v62  ;;  %v5799_v6 = vpop.f32.mrf.mxu0 }
 0x506   :  { %v5800_v37 = vadd.f32 %v5799_v6, %v4239_v31 }
 0x508   :  { %5941 = vmatmul.bf16.vlgmr.msra.gmra.mxu3 %v10284_v26 }
 0x50b   :  { %v5734_v36 = vpop.f32.mrf.mxu3 }
 0x50c   :  { %v5735_v5 = vadd.f32 %v5734_v36, %v5722_v25 }
 0x50d   :  { %v5801_v45 = vpop.f32.mrf.mxu0  ;;  %v5773_v26 = vpop.f32.mrf.mxu2 }
 0x50e   :  { %5949 = vst [vmem:[#allocation20 + $0x18] sm:$0xff] %v5735_v5  ;;  %v5774_v14 = vadd.f32 %v5773_v26, %v5761_v44 }
 0x513   :  { %v5736_v43 = vpop.f32.mrf.mxu3 }
 0x515   :  { %v5775_v11 = vpop.f32.mrf.mxu2 }
 0x518   :  { %v5812_v10 = vpop.f32.mrf.mxu1 }
 0x519   :  { %v5813_v35 = vadd.f32 %v5812_v10, %v5800_v37 }
 0x520   :  { %v5814_v12 = vpop.f32.mrf.mxu1 }
 0x525   :  { %v5851_v17 = vpop.f32.mrf.mxu0 }
 0x526   :  { %v5852_v33 = vadd.f32 %v5851_v17, %v4240_v46 }
 0x52b   :  { %v5786_v4 = vpop.f32.mrf.mxu3 }
 0x52c   :  { %v5787_v24 = vadd.f32 %v5786_v4, %v5774_v14 }
 0x52d   :  { %v5853_v23 = vpop.f32.mrf.mxu0  ;;  %v5825_v27 = vpop.f32.mrf.mxu2 }
 0x52e   :  { %5950 = vst [vmem:[#allocation20 + $0x20] sm:$0xff] %v5787_v24  ;;  %v5826_v28 = vadd.f32 %v5825_v27, %v5813_v35 }
 0x533   :  { %v5788_v29 = vpop.f32.mrf.mxu3 }
 0x535   :  { %v5827_v13 = vpop.f32.mrf.mxu2 }
 0x538   :  { %v5864_v30 = vpop.f32.mrf.mxu1 }
 0x539   :  { %v5865_v47 = vadd.f32 %v5864_v30, %v5852_v33 }
 0x540   :  { %v5866_v18 = vpop.f32.mrf.mxu1 }
 0x545   :  { %v5903_v32 = vpop.f32.mrf.mxu0 }
 0x546   :  { %v5904_v54 = vadd.f32 %v5903_v32, %v4241_v53 }
 0x54b   :  { %v5838_v42 = vpop.f32.mrf.mxu3 }
 0x54c   :  { %v5839_v39 = vadd.f32 %v5838_v42, %v5826_v28 }
 0x54d   :  { %v5905_v7 = vpop.f32.mrf.mxu0  ;;  %v5877_v41 = vpop.f32.mrf.mxu2 }
 0x54e   :  { %5951 = vst [vmem:[#allocation20 + $0x28] sm:$0xff] %v5839_v39  ;;  %v5878_v49 = vadd.f32 %v5877_v41, %v5865_v47 }
 0x553   :  { %v5840_v61 = vpop.f32.mrf.mxu3 }
 0x555   :  { %v5879_v20 = vpop.f32.mrf.mxu2 }
 0x556   :  { %v5916_v40 = vpop.f32.mrf.mxu1 }
 0x557   :  { %v5917_v55 = vadd.f32 %v5916_v40, %v5904_v54 }
 0x55e   :  { %v5918_v38 = vpop.f32.mrf.mxu1 }
 0x56b   :  { %v5890_v34 = vpop.f32.mrf.mxu3 }
 0x56c   :  { %v5891_v50 = vadd.f32 %v5890_v34, %v5878_v49 }
 0x56d   :  { %v5929_v51 = vpop.f32.mrf.mxu2 }
 0x56e   :  { %5952 = vst [vmem:[#allocation20 + $0x30] sm:$0xff] %v5891_v50  ;;  %v5930_v56 = vadd.f32 %v5929_v51, %v5917_v55 }
 0x573   :  { %v5892_v2 = vpop.f32.mrf.mxu3 }
 0x575   :  { %v5931_v52 = vpop.f32.mrf.mxu2 }
 0x58b   :  { %v5942_v57 = vpop.f32.mrf.mxu3 }
 0x58c   :  { %v5943_v3 = vadd.f32 %v5942_v57, %v5930_v56 }
 0x58e   :  { %5953 = vst [vmem:[#allocation20 + $0x38] sm:$0xff] %v5943_v3 }
 0x58f   :  { %5964 = dma.vmem_to_hbm [thread:$0]  %s5960_s22, 1024, %s5962_s5, [#allocation4]  }
 0x593   :  { %v5944_v58 = vpop.f32.mrf.mxu3 }
 0x594   :  { %9987 = dma.done.wait [#allocation4], 1024  }
 0x595   :  { %9988 = vsyncadd [#allocation4], 4294966272 }
 0x596   :  { %9989 = dma.done.wait [#allocation5], 16  }
 0x597   :  { %9990 = vsyncadd [#allocation5], 4294967280 }
 0x598   :  { %5982 = sfence }
 0x599   :  { %5983 = vsyncpa [#allocation3], 1 }
 0x59a   :  { %5984 = vsyncpa [#allocation7], 1 }
 0x59b   :  { %5985 = vsyncpa [#allocation10], 1 }
 0x59c   :  { %5986 = vsyncpa [#allocation13], 1 }
 0x59d   :  { %5987 = vsyncpa [#allocation16], 1 }
 0x59e   :  { %5988 = vsyncpa [#allocation19], 1 }
 0x59f   :  { %5989 = vsyncpa [#allocation4], 1 }
 0x5a0   :  { %5990 = vsyncpa [#allocation5], 1 }

</bundles_post_ra>
